<compile_context>
chip_gen: v5e
topology: v5e:2x2
jax: 0.10.0
libtpu: 0.0.40
codegen_flags: <defaults>
</compile_context>

<pallas_src>
import functools

import jax
import jax.numpy as jnp
from jax.experimental import pallas as pl
from jax.experimental.pallas import tpu as pltpu

BN_EPS = 1e-5


def _round_up(x, m):
    return (x + m - 1) // m * m


def fused_conv_bn_add_relu_kernel(true_m, x_ref, wt_ref, res_ref, gb_ref, o_ref):
    # x_ref:   [M_p, Cin_p]  bf16   (per-channel scale already folded into wt)
    # wt_ref:  [Cin_p, tn]   bf16   (scaled conv weight, transposed, Cout tile)
    # res_ref: [M_p, tn]     bf16   (residual x331 tile)
    # gb_ref:  [2, tn]       f32    (row 0 = gamma, row 1 = beta)
    # o_ref:   [M_p, tn]     f32
    # 1x1 conv == channel matmul on the MXU; accumulate in f32.
    y = jnp.dot(x_ref[...], wt_ref[...], preferred_element_type=jnp.float32)

    # Train-mode BatchNorm over the (true) batch*spatial rows, one pass over y.
    # Zero-padded rows contribute 0 to s1/s2 -> divide by the TRUE row count.
    inv_m = 1.0 / true_m
    s1 = jnp.sum(y, axis=0, keepdims=True)
    s2 = jnp.sum(y * y, axis=0, keepdims=True)
    mean = s1 * inv_m
    var = jnp.maximum(s2 * inv_m - mean * mean, 0.0)   # biased variance (train mode)
    a = gb_ref[0:1, :] * jax.lax.rsqrt(var + BN_EPS)
    b = gb_ref[1:2, :] - mean * a

    # BN + residual add + ReLU in a single elementwise pass (all f32 math).
    o_ref[...] = jnp.maximum(res_ref[...].astype(jnp.float32) + y * a + b, 0.0)


def fused_forward(x342, x337, x331, weight, gamma, beta):
    """x342: [1 or N, C, 1, 1]; x337/x331: [N, C, H, W]; weight: [Cout, Cin(,1,1)]."""
    N, C, H, W = x337.shape
    Cout = weight.shape[0]
    Cin = C
    M = N * H * W
    w2d = weight.reshape(Cout, -1).astype(jnp.float32)     # [Cout, Cin] (1x1 kernel)

    # Fold the per-channel scale into the Cin rows of the weight when the scale
    # is batch-broadcast (the module's case: x342 has batch dim 1).  Otherwise
    # apply it per-sample on the activations in the wrapper (XLA fuses it).
    if x342.shape[0] == 1:
        w_eff = w2d * x342.reshape(1, Cin)
        x_src = x337
    else:
        w_eff = w2d
        x_src = x342 * x337

    # Cast to bf16 BEFORE the NCHW->NHWC transpose so the layout pass writes
    # half the bytes; the zero-pads below fuse with the same pass.
    x_rows = jnp.transpose(x_src.astype(jnp.bfloat16), (0, 2, 3, 1)).reshape(M, Cin)
    res_rows = jnp.transpose(x331.astype(jnp.bfloat16), (0, 2, 3, 1)).reshape(M, Cout)

    # Tile selection: full-width 256 tiles for large Cout (real module:
    # 1512 -> 1536 -> 6 tiles, even split for v7x's two cores); single block
    # for small Cout so grid-step overhead disappears.
    Cin_p = _round_up(Cin, 128)
    if Cout <= 512:
        Cout_p = _round_up(Cout, 128)
        tn = Cout_p
    else:
        Cout_p = _round_up(Cout, 256)
        tn = 256
    num_tiles = Cout_p // tn
    M_p = _round_up(M, 8)            # sublane-align rows (zero rows are inert)

    x_rows = jnp.pad(x_rows, ((0, M_p - M), (0, Cin_p - Cin)))
    res_rows = jnp.pad(res_rows, ((0, M_p - M), (0, Cout_p - Cout)))
    wt = jnp.pad(w_eff.T, ((0, Cin_p - Cin), (0, Cout_p - Cout))).astype(jnp.bfloat16)
    gb = jnp.pad(
        jnp.stack([gamma, beta], axis=0).astype(jnp.float32),
        ((0, 0), (0, Cout_p - Cout)),
    )                                                       # [2, Cout_p]

    # Explicit VMEM budget from the per-step footprint:
    #   slab (single buffer) + double-buffered weight/residual/gamma-beta/output.
    vmem_bytes = (
        M_p * Cin_p * 2                 # activation slab, 1 buffer
        + Cin_p * tn * 2 * 2            # weight tile
        + M_p * tn * 2 * 2              # residual tile (bf16)
        + 2 * tn * 4 * 2                # gamma/beta tile
        + M_p * tn * 4 * 2              # output tile (f32)
    )
    vmem_limit = min(max(int(vmem_bytes * 1.5) + (4 << 20), 16 << 20), 48 << 20)

    kernel = functools.partial(fused_conv_bn_add_relu_kernel, float(M))

    def run(single_buffer_slab):
        if single_buffer_slab:
            # Grid-invariant slab: one buffer is enough (index_map is constant).
            x_spec = pl.BlockSpec((M_p, Cin_p), lambda j: (0, 0),
                                  pipeline_mode=pl.Buffered(1))
        else:
            x_spec = pl.BlockSpec((M_p, Cin_p), lambda j: (0, 0))
        return pl.pallas_call(
            kernel,
            out_shape=jax.ShapeDtypeStruct((M_p, Cout_p), jnp.float32),
            grid=(num_tiles,),
            in_specs=[
                x_spec,                                        # activation slab
                pl.BlockSpec((Cin_p, tn), lambda j: (0, j)),   # weight column tile
                pl.BlockSpec((M_p, tn), lambda j: (0, j)),     # residual tile
                pl.BlockSpec((2, tn), lambda j: (0, j)),       # gamma/beta tile
            ],
            out_specs=pl.BlockSpec((M_p, tn), lambda j: (0, j)),
            compiler_params=pltpu.CompilerParams(
                # "parallel" shards Cout tiles across v7x's two TensorCores;
                # it is a no-op on single-TC v5e/v6e.
                dimension_semantics=("parallel",),
                vmem_limit_bytes=vmem_limit,
            ),
        )(x_rows, wt, res_rows, gb)

    try:
        out_rows = run(True)
    except Exception:  # pragma: no cover - older jax without pipeline_mode support
        out_rows = run(False)

    # (M_p, Cout_p) -> strip row/channel padding -> NCHW
    out_rows = out_rows[:M, :Cout]
    return jnp.transpose(out_rows.reshape(N, H, W, Cout), (0, 3, 1, 2))


def reference_forward(x342, x337, x331, weight, gamma, beta):
    # Pure-JAX f32 reference with the module's semantics.
    x343 = x342 * x337
    N, C, H, W = x343.shape
    Cout = weight.shape[0]
    w2d = weight.reshape(Cout, -1)
    xr = jnp.transpose(x343, (0, 2, 3, 1)).reshape(-1, C)
    y = xr @ w2d.T
    mean = jnp.mean(y, axis=0, keepdims=True)
    var = jnp.mean((y - mean) ** 2, axis=0, keepdims=True)
    y = (y - mean) / jnp.sqrt(var + BN_EPS) * gamma[None, :] + beta[None, :]
    y = jnp.transpose(y.reshape(N, H, W, Cout), (0, 3, 1, 2))
    return jnp.maximum(x331 + y, 0.0)


if __name__ == "__main__":
    # Small instance mirroring the module's structure (1x1 conv C->C, batch-1
    # per-channel scale).  C=264 exercises channel padding (-> 384, single
    # block path); H=W=7 makes M=98 -> exercises the M-padding (98 -> 104)
    # and the true-row-count BN statistics.
    N, C, H, W = 2, 264, 7, 7

    key = jax.random.PRNGKey(0)
    k1, k2, k3, k4, k5, k6 = jax.random.split(key, 6)
    x342 = jax.random.normal(k1, (1, C, 1, 1), dtype=jnp.float32)   # per-channel scale (batch 1)
    x337 = jax.random.normal(k2, (N, C, H, W), dtype=jnp.float32)
    x331 = jax.random.normal(k3, (N, C, H, W), dtype=jnp.float32)

    # Conv2d-like weight [Cout, Cin, 1, 1]; BN affine params (randomized).
    weight = jax.random.normal(k4, (C, C, 1, 1), dtype=jnp.float32) * (1.0 / jnp.sqrt(C))
    gamma = 1.0 + 0.1 * jax.random.normal(k5, (C,), dtype=jnp.float32)
    beta = 0.1 * jax.random.normal(k6, (C,), dtype=jnp.float32)

    out = fused_forward(x342, x337, x331, weight, gamma, beta)
    out = jax.block_until_ready(out)

    ref = reference_forward(x342, x337, x331, weight, gamma, beta)
    assert out.shape == (N, C, H, W)
    # bf16 matmul operands + bf16 residual with f32 accumulation -> loose tolerance.
    assert jnp.allclose(out, ref, atol=5e-2, rtol=5e-2), float(jnp.max(jnp.abs(out - ref)))

    print("KERNEL_OK")
</pallas_src>

<mosaic_0001>
module attributes {stable_mosaic.version = 11 : i64} {
  func.func @fused_conv_bn_add_relu_kernel(%arg0: i32, %arg1: memref<104x384xbf16, #tpu.memory_space<vmem>>, %arg2: memref<384x384xbf16, #tpu.memory_space<vmem>>, %arg3: memref<104x384xbf16, #tpu.memory_space<vmem>>, %arg4: memref<2x384xf32, #tpu.memory_space<vmem>>, %arg5: memref<104x384xf32, #tpu.memory_space<vmem>>) attributes {dimension_semantics = [#tpu.dimension_semantics<parallel>], iteration_bounds = array<i64: 1>, scalar_prefetch = 0 : i64, scratch_operands = 0 : i64, tpu.core_type = #tpu.core_type<tc>, window_params = [{pipeline_mode = #tpu.pipeline_mode<synchronous>, transform_indices = @transform_0, window_bounds = array<i64: 104, 384>}, {transform_indices = @transform_1, window_bounds = array<i64: 384, 384>}, {transform_indices = @transform_2, window_bounds = array<i64: 104, 384>}, {transform_indices = @transform_3, window_bounds = array<i64: 2, 384>}, {transform_indices = @transform_4, window_bounds = array<i64: 104, 384>}]} {
    %c0 = arith.constant 0 : index
    %c0_0 = arith.constant 0 : index
    %0 = vector.load %arg1[%c0, %c0_0] : memref<104x384xbf16, #tpu.memory_space<vmem>>, vector<104x384xbf16>
    %c0_1 = arith.constant 0 : index
    %c0_2 = arith.constant 0 : index
    %1 = vector.load %arg2[%c0_1, %c0_2] : memref<384x384xbf16, #tpu.memory_space<vmem>>, vector<384x384xbf16>
    %cst = arith.constant dense<0.000000e+00> : vector<104x384xf32>
    %2 = tpu.matmul %0, %1, %cst {dimension_numbers = #tpu.dot_dimension_numbers<[1], [0], [0], [1], [0, 0, 1, 1], [], []>} : vector<104x384xbf16>, vector<384x384xbf16>, vector<104x384xf32> -> vector<104x384xf32>
    %cst_3 = arith.constant dense<0.000000e+00> : vector<384xf32>
    %3 = vector.multi_reduction <add>, %2, %cst_3 [0] : vector<104x384xf32> to vector<384xf32>
    %4 = vector.shape_cast %3 : vector<384xf32> to vector<1x384xf32>
    %5 = arith.mulf %2, %2 : vector<104x384xf32>
    %cst_4 = arith.constant dense<0.000000e+00> : vector<384xf32>
    %6 = vector.multi_reduction <add>, %5, %cst_4 [0] : vector<104x384xf32> to vector<384xf32>
    %7 = vector.shape_cast %6 : vector<384xf32> to vector<1x384xf32>
    %cst_5 = arith.constant 0.0102040814 : f32
    %8 = vector.broadcast %cst_5 : f32 to vector<1x384xf32>
    %9 = arith.mulf %4, %8 : vector<1x384xf32>
    %cst_6 = arith.constant 0.0102040814 : f32
    %10 = vector.broadcast %cst_6 : f32 to vector<1x384xf32>
    %11 = arith.mulf %7, %10 : vector<1x384xf32>
    %12 = arith.mulf %9, %9 : vector<1x384xf32>
    %13 = arith.subf %11, %12 : vector<1x384xf32>
    %cst_7 = arith.constant 0.000000e+00 : f32
    %14 = vector.broadcast %cst_7 : f32 to vector<1x384xf32>
    %15 = arith.maximumf %13, %14 : vector<1x384xf32>
    %c0_8 = arith.constant 0 : index
    %c0_9 = arith.constant 0 : index
    %16 = vector.load %arg4[%c0_8, %c0_9] : memref<2x384xf32, #tpu.memory_space<vmem>>, vector<1x384xf32>
    %cst_10 = arith.constant 9.99999974E-6 : f32
    %17 = vector.broadcast %cst_10 : f32 to vector<1x384xf32>
    %18 = arith.addf %15, %17 : vector<1x384xf32>
    %19 = math.rsqrt %18 : vector<1x384xf32>
    %20 = arith.mulf %16, %19 : vector<1x384xf32>
    %c1 = arith.constant 1 : index
    %c0_11 = arith.constant 0 : index
    %21 = vector.load %arg4[%c1, %c0_11] : memref<2x384xf32, #tpu.memory_space<vmem>>, vector<1x384xf32>
    %22 = arith.mulf %9, %20 : vector<1x384xf32>
    %23 = arith.subf %21, %22 : vector<1x384xf32>
    %c0_12 = arith.constant 0 : index
    %c0_13 = arith.constant 0 : index
    %24 = vector.load %arg3[%c0_12, %c0_13] : memref<104x384xbf16, #tpu.memory_space<vmem>>, vector<104x384xbf16>
    %25 = arith.extf %24 : vector<104x384xbf16> to vector<104x384xf32>
    %26 = vector.broadcast %20 : vector<1x384xf32> to vector<104x384xf32>
    %27 = arith.mulf %2, %26 : vector<104x384xf32>
    %28 = arith.addf %25, %27 : vector<104x384xf32>
    %29 = vector.broadcast %23 : vector<1x384xf32> to vector<104x384xf32>
    %30 = arith.addf %28, %29 : vector<104x384xf32>
    %cst_14 = arith.constant 0.000000e+00 : f32
    %31 = vector.broadcast %cst_14 : f32 to vector<104x384xf32>
    %32 = arith.maximumf %30, %31 : vector<104x384xf32>
    %c0_15 = arith.constant 0 : index
    %c0_16 = arith.constant 0 : index
    %33 = vector.load %arg5[%c0_15, %c0_16] : memref<104x384xf32, #tpu.memory_space<vmem>>, vector<104x384xf32>
    tpu.vector_store %arg5[%c0_15, %c0_16], %32 {strides = array<i32>} : memref<104x384xf32, #tpu.memory_space<vmem>>, vector<104x384xf32>,
    return
  }
  func.func @transform_0(%arg0: i32) -> (i32, i32) {
    %c0_i32 = arith.constant 0 : i32
    %c0_i32_0 = arith.constant 0 : i32
    %c0_i32_1 = arith.constant 0 : i32
    return %c0_i32, %c0_i32_0 : i32, i32
  }
  func.func @transform_1(%arg0: i32) -> (i32, i32) {
    %c0_i32 = arith.constant 0 : i32
    %c0_i32_0 = arith.constant 0 : i32
    return %c0_i32, %arg0 : i32, i32
  }
  func.func @transform_2(%arg0: i32) -> (i32, i32) {
    %c0_i32 = arith.constant 0 : i32
    %c0_i32_0 = arith.constant 0 : i32
    return %c0_i32, %arg0 : i32, i32
  }
  func.func @transform_3(%arg0: i32) -> (i32, i32) {
    %c0_i32 = arith.constant 0 : i32
    %c0_i32_0 = arith.constant 0 : i32
    return %c0_i32, %arg0 : i32, i32
  }
  func.func @transform_4(%arg0: i32) -> (i32, i32) {
    %c0_i32 = arith.constant 0 : i32
    %c0_i32_0 = arith.constant 0 : i32
    return %c0_i32, %arg0 : i32, i32
  }
}

module attributes {stable_mosaic.version = 11 : i64} {
  func.func @fused_conv_bn_add_relu_kernel(%arg0: i32, %arg1: memref<104x384xbf16, #tpu.memory_space<vmem>>, %arg2: memref<384x384xbf16, #tpu.memory_space<vmem>>, %arg3: memref<104x384xbf16, #tpu.memory_space<vmem>>, %arg4: memref<2x384xf32, #tpu.memory_space<vmem>>, %arg5: memref<104x384xf32, #tpu.memory_space<vmem>>) attributes {dimension_semantics = [#tpu.dimension_semantics<parallel>], iteration_bounds = array<i64: 1>, scalar_prefetch = 0 : i64, scratch_operands = 0 : i64, tpu.core_type = #tpu.core_type<tc>, window_params = [{pipeline_mode = #tpu.pipeline_mode<synchronous>, transform_indices = @transform_0, window_bounds = array<i64: 104, 384>}, {transform_indices = @transform_1, window_bounds = array<i64: 384, 384>}, {transform_indices = @transform_2, window_bounds = array<i64: 104, 384>}, {transform_indices = @transform_3, window_bounds = array<i64: 2, 384>}, {transform_indices = @transform_4, window_bounds = array<i64: 104, 384>}]} {
    %c0 = arith.constant 0 : index
    %c0_0 = arith.constant 0 : index
    %0 = vector.load %arg1[%c0, %c0_0] : memref<104x384xbf16, #tpu.memory_space<vmem>>, vector<104x384xbf16>
    %c0_1 = arith.constant 0 : index
    %c0_2 = arith.constant 0 : index
    %1 = vector.load %arg2[%c0_1, %c0_2] : memref<384x384xbf16, #tpu.memory_space<vmem>>, vector<384x384xbf16>
    %cst = arith.constant dense<0.000000e+00> : vector<104x384xf32>
    %2 = tpu.matmul %0, %1, %cst {dimension_numbers = #tpu.dot_dimension_numbers<[1], [0], [0], [1], [0, 0, 1, 1], [], []>} : vector<104x384xbf16>, vector<384x384xbf16>, vector<104x384xf32> -> vector<104x384xf32>
    %cst_3 = arith.constant dense<0.000000e+00> : vector<384xf32>
    %3 = vector.multi_reduction <add>, %2, %cst_3 [0] : vector<104x384xf32> to vector<384xf32>
    %4 = vector.shape_cast %3 : vector<384xf32> to vector<1x384xf32>
    %5 = arith.mulf %2, %2 : vector<104x384xf32>
    %cst_4 = arith.constant dense<0.000000e+00> : vector<384xf32>
    %6 = vector.multi_reduction <add>, %5, %cst_4 [0] : vector<104x384xf32> to vector<384xf32>
    %7 = vector.shape_cast %6 : vector<384xf32> to vector<1x384xf32>
    %cst_5 = arith.constant 0.0102040814 : f32
    %8 = vector.broadcast %cst_5 : f32 to vector<1x384xf32>
    %9 = arith.mulf %4, %8 : vector<1x384xf32>
    %cst_6 = arith.constant 0.0102040814 : f32
    %10 = vector.broadcast %cst_6 : f32 to vector<1x384xf32>
    %11 = arith.mulf %7, %10 : vector<1x384xf32>
    %12 = arith.mulf %9, %9 : vector<1x384xf32>
    %13 = arith.subf %11, %12 : vector<1x384xf32>
    %cst_7 = arith.constant 0.000000e+00 : f32
    %14 = vector.broadcast %cst_7 : f32 to vector<1x384xf32>
    %15 = arith.maximumf %13, %14 : vector<1x384xf32>
    %c0_8 = arith.constant 0 : index
    %c0_9 = arith.constant 0 : index
    %16 = vector.load %arg4[%c0_8, %c0_9] : memref<2x384xf32, #tpu.memory_space<vmem>>, vector<1x384xf32>
    %cst_10 = arith.constant 9.99999974E-6 : f32
    %17 = vector.broadcast %cst_10 : f32 to vector<1x384xf32>
    %18 = arith.addf %15, %17 : vector<1x384xf32>
    %19 = math.rsqrt %18 : vector<1x384xf32>
    %20 = arith.mulf %16, %19 : vector<1x384xf32>
    %c1 = arith.constant 1 : index
    %c0_11 = arith.constant 0 : index
    %21 = vector.load %arg4[%c1, %c0_11] : memref<2x384xf32, #tpu.memory_space<vmem>>, vector<1x384xf32>
    %22 = arith.mulf %9, %20 : vector<1x384xf32>
    %23 = arith.subf %21, %22 : vector<1x384xf32>
    %c0_12 = arith.constant 0 : index
    %c0_13 = arith.constant 0 : index
    %24 = vector.load %arg3[%c0_12, %c0_13] : memref<104x384xbf16, #tpu.memory_space<vmem>>, vector<104x384xbf16>
    %25 = arith.extf %24 : vector<104x384xbf16> to vector<104x384xf32>
    %26 = vector.broadcast %20 : vector<1x384xf32> to vector<104x384xf32>
    %27 = arith.mulf %2, %26 : vector<104x384xf32>
    %28 = arith.addf %25, %27 : vector<104x384xf32>
    %29 = vector.broadcast %23 : vector<1x384xf32> to vector<104x384xf32>
    %30 = arith.addf %28, %29 : vector<104x384xf32>
    %cst_14 = arith.constant 0.000000e+00 : f32
    %31 = vector.broadcast %cst_14 : f32 to vector<104x384xf32>
    %32 = arith.maximumf %30, %31 : vector<104x384xf32>
    %c0_15 = arith.constant 0 : index
    %c0_16 = arith.constant 0 : index
    %33 = vector.load %arg5[%c0_15, %c0_16] : memref<104x384xf32, #tpu.memory_space<vmem>>, vector<104x384xf32>
    tpu.vector_store %arg5[%c0_15, %c0_16], %32 {strides = array<i32>} : memref<104x384xf32, #tpu.memory_space<vmem>>, vector<104x384xf32>,
    return
  }
  func.func @transform_0(%arg0: i32) -> (i32, i32) {
    %c0_i32 = arith.constant 0 : i32
    %c0_i32_0 = arith.constant 0 : i32
    %c0_i32_1 = arith.constant 0 : i32
    return %c0_i32, %c0_i32_0 : i32, i32
  }
  func.func @transform_1(%arg0: i32) -> (i32, i32) {
    %c0_i32 = arith.constant 0 : i32
    %c0_i32_0 = arith.constant 0 : i32
    return %c0_i32, %arg0 : i32, i32
  }
  func.func @transform_2(%arg0: i32) -> (i32, i32) {
    %c0_i32 = arith.constant 0 : i32
    %c0_i32_0 = arith.constant 0 : i32
    return %c0_i32, %arg0 : i32, i32
  }
  func.func @transform_3(%arg0: i32) -> (i32, i32) {
    %c0_i32 = arith.constant 0 : i32
    %c0_i32_0 = arith.constant 0 : i32
    return %c0_i32, %arg0 : i32, i32
  }
  func.func @transform_4(%arg0: i32) -> (i32, i32) {
    %c0_i32 = arith.constant 0 : i32
    %c0_i32_0 = arith.constant 0 : i32
    return %c0_i32, %arg0 : i32, i32
  }
}

</mosaic_0001>

<bundles_post_ra>
// kernel: tpu_custom_call.1
= control target key start
LH: loop header
LB: loop body
LE: loop exit
PB: predicated region body
PF: predicated region fallthrough
CT: control target
= control target key end

     0   :  { %9 = vsyncpa [#allocation3], 0  ;;  %s2968_s0 = inlined_call_operand.hbm [shape: bf16[104,384], index: 0, kind: input, shape index: {}]   ;;  %s2969_s1 = inlined_call_operand.hbm [shape: bf16[384,384], index: 1, kind: input, shape index: {}]   ;;  %s2970_s2 = inlined_call_operand.hbm [shape: bf16[104,384], index: 2, kind: input, shape index: {}]   ;;  %s2971_s3 = inlined_call_operand.hbm [shape: f32[2,384], index: 3, kind: input, shape index: {}]   ;;  %s2972_s4 = inlined_call_operand.hbm [shape: f32[104,384], index: 4, kind: output, shape index: {}]  }
   0x1   :  { %10 = vsyncpa [#allocation6], 0 }
   0x2   :  { %11 = vsyncpa [#allocation9], 0 }
   0x3   :  { %12 = vsyncpa [#allocation4], 0  ;;  %s30_s17 = sshll.u32 %s2969_s1, 4  ;;  %s2212_s18 = smov [#allocation5]   ;;  %s31_s17 = int_to_ptr.hbm [resolvable:$true] %s30_s17 }
   0x4   :  { %s32_s19 = sshll.u32 %s2212_s18, 4  ;;  %s17_s22 = sshll.u32 %s2968_s0, 4  ;;  %s33_s19 = int_to_ptr.vmem [resolvable:$true] %s32_s19  ;;  %s18_s22 = int_to_ptr.hbm [resolvable:$true] %s17_s22 }
   0x5   :  { %s2213_s23 = smov 192   ;;  %s2214_s24 = smov 12  }
   0x6   :  { %38 = dma.hbm_to_vmem [thread:$0]  %s31_s17, 9216, %s33_s19, [#allocation6], %s2213_s23, %s2213_s23, %s2214_s24  }
   0x7   :  { %s2215_s25 = smov [#allocation2]   ;;  %s43_s29 = sshll.u32 %s2970_s2, 4  ;;  %s44_s29 = int_to_ptr.hbm [resolvable:$true] %s43_s29 }
   0x8   :  { %s19_s26 = sshll.u32 %s2215_s25, 4  ;;  %s57_s5 = sshll.u32 %s2971_s3, 4  ;;  %s20_s26 = int_to_ptr.vmem [resolvable:$true] %s19_s26  ;;  %s58_s5 = int_to_ptr.hbm [resolvable:$true] %s57_s5 }
   0x9   :  { %25 = dma.hbm_to_vmem [thread:$0]  %s18_s22, 2496, %s20_s26, [#allocation3], %s2213_s23, %s2213_s23, %s2214_s24  }
   0xa   :  { %s2216_s6 = smov [#allocation7]   ;;  %s2217_s0 = smov [#allocation8]  }
   0xb   :  { %s45_s7 = sshll.u32 %s2216_s6, 4  ;;  %s59_s8 = sshll.u32 %s2217_s0, 4  ;;  %s46_s7 = int_to_ptr.vmem [resolvable:$true] %s45_s7  ;;  %s60_s8 = int_to_ptr.vmem [resolvable:$true] %s59_s8 }
   0xc   :  { %51 = dma.hbm_to_vmem [thread:$0]  %s44_s29, 2496, %s46_s7, [#allocation6], %s2213_s23, %s2213_s23, %s2214_s24  }
   0xd   :  { %62 = dma.hbm_to_vmem [thread:$0]  %s58_s5, 96, %s60_s8, [#allocation9]  }
   0xe   :  { %2204 = dma.done.wait [#allocation3], 2496  }
   0xf   :  { %2205 = vsyncadd [#allocation3], 4294964800 }
  0x10   :  { %2206 = dma.done.wait [#allocation6], 11712  }
  0x11   :  { %2207 = vsyncadd [#allocation6], 4294955584 }
  0x12   :  { %2208 = dma.done.wait [#allocation9], 96  }
  0x13   :  { %2209 = vsyncadd [#allocation9], 4294967200  ;;  %v1753_v0 = vld [vmem:[#allocation5 + $0xa8] sm:$0xf]  ;;  %v1995_v1 = vld [vmem:[#allocation5 + $0xb0] sm:$0xf0] }
  0x14   :  { %v1741_v2 = vld [vmem:[#allocation5 + $0x90] sm:$0xf]  ;;  %v1754_v3 = vor.u32 %v1995_v1, %v1753_v0  ;;  %v1992_v4 = vld [vmem:[#allocation5 + $0x98] sm:$0xf0]  ;;  %v1729_v6 = vld [vmem:[#allocation5 + $0x78] sm:$0xf] }
  0x15   :  { %v1742_v5 = vor.u32 %v1992_v4, %v1741_v2  ;;  %v1989_v7 = vld [vmem:[#allocation5 + $0x80] sm:$0xf0]  ;;  %v1717_v9 = vld [vmem:[#allocation5 + $0x60] sm:$0xf]  ;;  %v1986_v10 = vld [vmem:[#allocation5 + $0x68] sm:$0xf0] }
  0x16   :  { %692 = vmatpush.bf16.msra.mxu0 %v1754_v3  ;;  %2045 = vmatpush.bf16.msra.mxu1 %v1754_v3  ;;  %v1730_v8 = vor.u32 %v1989_v7, %v1729_v6  ;;  %v1718_v11 = vor.u32 %v1986_v10, %v1717_v9  ;;  %v1705_v12 = vld [vmem:[#allocation5 + $0x48] sm:$0xf]  ;;  %v1983_v13 = vld [vmem:[#allocation5 + $0x50] sm:$0xf0]  ;;  %v1693_v15 = vld [vmem:[#allocation5 + $0x30] sm:$0xf] }
  0x17   :  { %2046 = vmatpush.bf16.msra.mxu2 %v1754_v3  ;;  %2047 = vmatpush.bf16.msra.mxu3 %v1754_v3  ;;  %v1706_v14 = vor.u32 %v1983_v13, %v1705_v12  ;;  %v1980_v16 = vld [vmem:[#allocation5 + $0x38] sm:$0xf0]  ;;  %v1681_v18 = vld [vmem:[#allocation5 + $0x18] sm:$0xf]  ;;  %v1977_v19 = vld [vmem:[#allocation5 + $0x20] sm:$0xf0] }
  0x18   :  { %v1694_v17 = vor.u32 %v1980_v16, %v1693_v15  ;;  %v1682_v20 = vor.u32 %v1977_v19, %v1681_v18  ;;  %v1669_v21 = vld [vmem:[#allocation5] sm:$0xf]  ;;  %v1974_v22 = vld [vmem:[#allocation5 + $0x8] sm:$0xf0]  ;;  %v1755_v24 = vld [vmem:[#allocation5 + $0xb4] sm:$0xf0] }
  0x19   :  { %v1994_v23 = vld [vmem:[#allocation5 + $0xac] sm:$0xf]  ;;  %v1597_v25 = vld [vmem:[#allocation2] sm:$0xf]  ;;  %v2258_v26 = vld [vmem:[#allocation2 + $0x90] sm:$0xff]  ;;  %v1670_v30 = vor.u32 %v1974_v22, %v1669_v21  ;;  %vm1280_vm8 = vcmask 1040384  }
  0x1a   :  { %693 = vmatpush.bf16.msra.mxu0 %v1742_v5  ;;  %2048 = vmatpush.bf16.msra.mxu1 %v1742_v5  ;;  %v1956_v27 = vld [vmem:[#allocation2 + $0x8] sm:$0xf0]  ;;  %v1945_v28 = vld [vmem:[#allocation5 + $0x228] sm:$0xf]  ;;  %v2043_v29 = vld [vmem:[#allocation5 + $0x230] sm:$0xf0]  ;;  %v263_v37 = vunpack.c.l.b16 %v2258_v26  ;;  %v1758_v38 = vor.u32 %v1994_v23, %v1755_v24 }
  0x1b   :  { %2049 = vmatpush.bf16.msra.mxu2 %v1742_v5  ;;  %2050 = vmatpush.bf16.msra.mxu3 %v1742_v5  ;;  %v1621_v31 = vld [vmem:[#allocation2 + $0x30] sm:$0xf]  ;;  %v1962_v32 = vld [vmem:[#allocation2 + $0x38] sm:$0xf0]  ;;  %v1645_v33 = vld [vmem:[#allocation2 + $0x60] sm:$0xf]  ;;  %v1946_v39 = vor.u32 %v2043_v29, %v1945_v28  ;;  %v2261_v43 = vor.u32 %v1956_v27, %v1597_v25 }
  0x1c   :  { %v1968_v34 = vld [vmem:[#allocation2 + $0x68] sm:$0xf0]  ;;  %v1849_v35 = vld [vmem:[#allocation5 + $0x168] sm:$0xf]  ;;  %v2019_v36 = vld [vmem:[#allocation5 + $0x170] sm:$0xf0]  ;;  %v2263_v44 = vor.u32 %v1962_v32, %v1621_v31  ;;  %v2267_v53 = vpack.c.b16 %v263_v37, %v263_v37 }
  0x1d   :  { %v2018_v40 = vld [vmem:[#allocation5 + $0x16c] sm:$0xf]  ;;  %v1851_v41 = vld [vmem:[#allocation5 + $0x174] sm:$0xf0]  ;;  %v1991_v42 = vld [vmem:[#allocation5 + $0x94] sm:$0xf]  ;;  %v2265_v48 = vor.u32 %v1968_v34, %v1645_v33  ;;  %v1850_v49 = vor.u32 %v2019_v36, %v1849_v35 }
  0x1e   :  { %694 = vmatpush.bf16.msra.mxu0 %v1730_v8  ;;  %2051 = vmatpush.bf16.msra.mxu1 %v1730_v8  ;;  %v1743_v45 = vld [vmem:[#allocation5 + $0x9c] sm:$0xf0]  ;;  %v1933_v46 = vld [vmem:[#allocation5 + $0x210] sm:$0xf]  ;;  %v2040_v47 = vld [vmem:[#allocation5 + $0x218] sm:$0xf0]  ;;  %v1854_v50 = vor.u32 %v2018_v40, %v1851_v41 }
  0x1f   :  { %2052 = vmatpush.bf16.msra.mxu2 %v1730_v8  ;;  %2053 = vmatpush.bf16.msra.mxu3 %v1730_v8  ;;  %v1837_v51 = vld [vmem:[#allocation5 + $0x150] sm:$0xf]  ;;  %v2016_v52 = vld [vmem:[#allocation5 + $0x158] sm:$0xf0]  ;;  %v1746_v54 = vor.u32 %v1991_v42, %v1743_v45  ;;  %v1934_v55 = vor.u32 %v2040_v47, %v1933_v46  ;;  %v2015_v56 = vld [vmem:[#allocation5 + $0x154] sm:$0xf] }
  0x20   :  { %v1839_v57 = vld [vmem:[#allocation5 + $0x15c] sm:$0xf0]  ;;  %v1988_v58 = vld [vmem:[#allocation5 + $0x7c] sm:$0xf]  ;;  %v1731_v59 = vld [vmem:[#allocation5 + $0x84] sm:$0xf0]  ;;  %v1838_v62 = vor.u32 %v2016_v52, %v1837_v51 }
  0x21   :  { %v1921_v60 = vld [vmem:[#allocation5 + $0x1f8] sm:$0xf]  ;;  %v2037_v61 = vld [vmem:[#allocation5 + $0x200] sm:$0xf0]  ;;  %v1842_v63 = vor.u32 %v2015_v56, %v1839_v57  ;;  %v1734_v2 = vor.u32 %v1988_v58, %v1731_v59  ;;  %v2012_v4 = vld [vmem:[#allocation5 + $0x13c] sm:$0xf] }
  0x22   :  { %695 = vmatpush.bf16.msra.mxu0 %v1718_v11  ;;  %2054 = vmatpush.bf16.msra.mxu1 %v1718_v11  ;;  %v1825_v0 = vld [vmem:[#allocation5 + $0x138] sm:$0xf]  ;;  %v2013_v1 = vld [vmem:[#allocation5 + $0x140] sm:$0xf0]  ;;  %v1922_v3 = vor.u32 %v2037_v61, %v1921_v60  ;;  %v1827_v5 = vld [vmem:[#allocation5 + $0x144] sm:$0xf0] }
  0x23   :  { %2055 = vmatpush.bf16.msra.mxu2 %v1718_v11  ;;  %2056 = vmatpush.bf16.msra.mxu3 %v1718_v11  ;;  %v1985_v6 = vld [vmem:[#allocation5 + $0x64] sm:$0xf]  ;;  %v1719_v7 = vld [vmem:[#allocation5 + $0x6c] sm:$0xf0]  ;;  %v1909_v8 = vld [vmem:[#allocation5 + $0x1e0] sm:$0xf]  ;;  %v1826_v10 = vor.u32 %v2013_v1, %v1825_v0  ;;  %v1830_v12 = vor.u32 %v2012_v4, %v1827_v5 }
  0x24   :  { %v2034_v9 = vld [vmem:[#allocation5 + $0x1e8] sm:$0xf0]  ;;  %v1813_v11 = vld [vmem:[#allocation5 + $0x120] sm:$0xf]  ;;  %v1815_v15 = vld [vmem:[#allocation5 + $0x12c] sm:$0xf0]  ;;  %v1722_v16 = vor.u32 %v1985_v6, %v1719_v7 }
  0x25   :  { %v2010_v13 = vld [vmem:[#allocation5 + $0x128] sm:$0xf0]  ;;  %v1707_v19 = vld [vmem:[#allocation5 + $0x54] sm:$0xf0]  ;;  %v1959_v21 = vld [vmem:[#allocation2 + $0x20] sm:$0xf0] }
  0x26   :  { %696 = vmatpush.bf16.msra.mxu0 %v1706_v14  ;;  %2057 = vmatpush.bf16.msra.mxu1 %v1706_v14  ;;  %v1982_v18 = vld [vmem:[#allocation5 + $0x4c] sm:$0xf]  ;;  %v1897_v22 = vld [vmem:[#allocation5 + $0x1c8] sm:$0xf]  ;;  %v2031_v23 = vld [vmem:[#allocation5 + $0x1d0] sm:$0xf0]  ;;  %v1814_v24 = vor.u32 %v2010_v13, %v1813_v11 }
  0x27   :  { %2058 = vmatpush.bf16.msra.mxu2 %v1706_v14  ;;  %2059 = vmatpush.bf16.msra.mxu3 %v1706_v14  ;;  %v2009_v14 = vld [vmem:[#allocation5 + $0x124] sm:$0xf]  ;;  %v1633_v25 = vld [vmem:[#allocation2 + $0x48] sm:$0xf]  ;;  %v1965_v27 = vld [vmem:[#allocation2 + $0x50] sm:$0xf0]  ;;  %v1710_v33 = vor.u32 %v1982_v18, %v1707_v19  ;;  %v1898_v34 = vor.u32 %v2031_v23, %v1897_v22 }
  0x28   :  { %v1657_v28 = vld [vmem:[#allocation2 + $0x78] sm:$0xf]  ;;  %v1818_v29 = vor.u32 %v2009_v14, %v1815_v15  ;;  %v1801_v31 = vld [vmem:[#allocation5 + $0x108] sm:$0xf]  ;;  %v2007_v32 = vld [vmem:[#allocation5 + $0x110] sm:$0xf0] }
  0x29   :  { %v2006_v35 = vld [vmem:[#allocation5 + $0x10c] sm:$0xf]  ;;  %v1803_v36 = vld [vmem:[#allocation5 + $0x114] sm:$0xf0]  ;;  %v1979_v37 = vld [vmem:[#allocation5 + $0x34] sm:$0xf]  ;;  %v1802_v46 = vor.u32 %v2007_v32, %v1801_v31 }
  0x2a   :  { %697 = vmatpush.bf16.msra.mxu0 %v1694_v17  ;;  %2060 = vmatpush.bf16.msra.mxu1 %v1694_v17  ;;  %v1695_v40 = vld [vmem:[#allocation5 + $0x3c] sm:$0xf0]  ;;  %v1885_v41 = vld [vmem:[#allocation5 + $0x1b0] sm:$0xf]  ;;  %v2028_v42 = vld [vmem:[#allocation5 + $0x1b8] sm:$0xf0]  ;;  %v1806_v47 = vor.u32 %v2006_v35, %v1803_v36 }
  0x2b   :  { %2061 = vmatpush.bf16.msra.mxu2 %v1694_v17  ;;  %2062 = vmatpush.bf16.msra.mxu3 %v1694_v17  ;;  %v1910_v17 = vor.u32 %v2034_v9, %v1909_v8  ;;  %v1698_v51 = vor.u32 %v1979_v37, %v1695_v40  ;;  %v1886_v52 = vor.u32 %v2028_v42, %v1885_v41  ;;  %v1976_v56 = vld [vmem:[#allocation5 + $0x1c] sm:$0xf]  ;;  %v1683_v57 = vld [vmem:[#allocation5 + $0x24] sm:$0xf0]  ;;  %v1873_v58 = vld [vmem:[#allocation5 + $0x198] sm:$0xf] }
  0x2c   :  { %v2025_v59 = vld [vmem:[#allocation5 + $0x1a0] sm:$0xf0]  ;;  %v2000_v0 = vld [vmem:[#allocation5 + $0xdc] sm:$0xf]  ;;  %v1686_v1 = vor.u32 %v1976_v56, %v1683_v57  ;;  %v1671_v5 = vld [vmem:[#allocation5 + $0xc] sm:$0xf0] }
  0x2d   :  { %v1973_v4 = vld [vmem:[#allocation5 + $0x4] sm:$0xf]  ;;  %v1861_v6 = vld [vmem:[#allocation5 + $0x180] sm:$0xf]  ;;  %v2022_v7 = vld [vmem:[#allocation5 + $0x188] sm:$0xf0] }
  0x2e   :  { %698 = vmatpush.bf16.msra.mxu0 %v1682_v20  ;;  %2063 = vmatpush.bf16.msra.mxu1 %v1682_v20  ;;  %v1761_v8 = vld [vmem:[#allocation5 + $0xb0] sm:$0xf]  ;;  %v1765_v14 = vld [vmem:[#allocation5 + $0xc0] sm:$0xf]  ;;  %v1998_v15 = vld [vmem:[#allocation5 + $0xc8] sm:$0xf0]  ;;  %v1862_v18 = vor.u32 %v2022_v7, %v1861_v6 }
  0x2f   :  { %2064 = vmatpush.bf16.msra.mxu2 %v1682_v20  ;;  %2065 = vmatpush.bf16.msra.mxu3 %v1682_v20  ;;  %v1609_v20 = vld [vmem:[#allocation2 + $0x18] sm:$0xf]  ;;  %v1857_v11 = vld [vmem:[#allocation5 + $0x170] sm:$0xf]  ;;  %v1993_v31 = vld [vmem:[#allocation5 + $0xa0] sm:$0xf0] }
  0x30   :  { %v1767_v19 = vld [vmem:[#allocation5 + $0xcc] sm:$0xf0]  ;;  %v1845_v37 = vld [vmem:[#allocation5 + $0x158] sm:$0xf]  ;;  %v2017_v40 = vld [vmem:[#allocation5 + $0x160] sm:$0xf0] }
  0x31   :  { %v2039_v41 = vld [vmem:[#allocation5 + $0x214] sm:$0xf]  ;;  %v1821_v6 = vld [vmem:[#allocation5 + $0x128] sm:$0xf]  ;;  %vm1282_vm10 = vcmask 1041408   ;;  %s2218_s2 = smov [#allocation10]  }
  0x32   :  { %699 = vmatpush.bf16.msra.mxu0 %v1670_v30  ;;  %2066 = vmatpush.bf16.msra.mxu1 %v1670_v30  ;;  %v2011_v7 = vld [vmem:[#allocation5 + $0x130] sm:$0xf0]  ;;  %s1578_s3 = sshll.u32 %s2218_s2, 4  ;;  %s1580_s11 = sshll.u32 %s2972_s4, 4  ;;  %s1579_s3 = int_to_ptr.vmem [resolvable:$true] %s1578_s3  ;;  %s1581_s11 = int_to_ptr.hbm [resolvable:$true] %s1580_s11 }
  0x33   :  { %2067 = vmatpush.bf16.msra.mxu2 %v1670_v30  ;;  %2068 = vmatpush.bf16.msra.mxu3 %v1670_v30  ;;  %v1971_v30 = vld [vmem:[#allocation2 + $0x80] sm:$0xf0]  ;;  %s2219_s12 = smov 384   ;;  %s2220_s13 = smov 24  }
  0x34   :  { %v2277_v45 = vor.u32 %v1971_v30, %v1657_v28  ;;  %v1766_v28 = vor.u32 %v1998_v15, %v1765_v14  ;;  %v1749_v30 = vld [vmem:[#allocation5 + $0x98] sm:$0xf] }
  0x35   :  { %700 = vmatmul.bf16.vlgmr.msra.gmra.mxu0 %v2261_v43  ;;  %710 = vmatmul.bf16.vlgmr.msra.gmra.mxu1 %v2263_v44 }
  0x36   :  { %720 = vmatmul.bf16.vlgmr.msra.gmra.mxu2 %v2265_v48  ;;  %735 = vmatpush.bf16.msrb.mxu1 %v1850_v49  ;;  %v1789_v49 = vld [vmem:[#allocation5 + $0xf0] sm:$0xf] }
  0x37   :  { %821 = vmatpush.bf16.msrb.mxu3 %v1758_v38  ;;  %778 = vmatpush.bf16.msrb.mxu2 %v1946_v39  ;;  %v2273_v38 = vor.u32 %v1959_v21, %v1609_v20  ;;  %v2275_v39 = vor.u32 %v1965_v27, %v1633_v25  ;;  %v1955_v20 = vld [vmem:[#allocation2 + $0x4] sm:$0xf]  ;;  %v2042_v21 = vld [vmem:[#allocation5 + $0x22c] sm:$0xf]  ;;  %v1953_v25 = vld [vmem:[#allocation5 + $0x230] sm:$0xf] }
  0x38   :  { %864 = vmatpush.bf16.msrb.mxu0 %v1854_v50  ;;  %730 = vmatmul.bf16.vlgmr.msra.gmra.mxu3 %v2267_v53  ;;  %v2004_v50 = vld [vmem:[#allocation5 + $0xf8] sm:$0xf0] }
  0x39   :  { %v1790_v60 = vor.u32 %v2004_v50, %v1789_v49  ;;  %v2044_v27 = vld [vmem:[#allocation5 + $0x238] sm:$0xf0]  ;;  %v1941_v49 = vld [vmem:[#allocation5 + $0x218] sm:$0xf]  ;;  %v2041_v50 = vld [vmem:[#allocation5 + $0x220] sm:$0xf0] }
  0x3a   :  { %736 = vmatpush.bf16.msrb.mxu1 %v1838_v62  ;;  %v1777_v62 = vld [vmem:[#allocation5 + $0xd8] sm:$0xf]  ;;  %v1954_v36 = vor.u32 %v2044_v27, %v1953_v25  ;;  %v1942_v57 = vor.u32 %v2041_v50, %v1941_v49  ;;  %v1809_v25 = vld [vmem:[#allocation5 + $0x110] sm:$0xf]  ;;  %v2008_v27 = vld [vmem:[#allocation5 + $0x118] sm:$0xf0] }
  0x3b   :  { %822 = vmatpush.bf16.msrb.mxu3 %v1746_v54  ;;  %779 = vmatpush.bf16.msrb.mxu2 %v1934_v55  ;;  %v2003_v54 = vld [vmem:[#allocation5 + $0xf4] sm:$0xf]  ;;  %v1791_v55 = vld [vmem:[#allocation5 + $0xfc] sm:$0xf0]  ;;  %v1981_v49 = vld [vmem:[#allocation5 + $0x40] sm:$0xf0] }
  0x3c   :  { %865 = vmatpush.bf16.msrb.mxu0 %v1842_v63  ;;  %v1794_v61 = vor.u32 %v2003_v54, %v1791_v55  ;;  %v2001_v63 = vld [vmem:[#allocation5 + $0xe0] sm:$0xf0]  ;;  %v1990_v54 = vld [vmem:[#allocation5 + $0x88] sm:$0xf0]  ;;  %v1846_v55 = vor.u32 %v2017_v40, %v1845_v37  ;;  %v1905_v40 = vld [vmem:[#allocation5 + $0x1d0] sm:$0xf] }
  0x3d   :  { %v1778_v9 = vor.u32 %v2001_v63, %v1777_v62  ;;  %v1923_v62 = vld [vmem:[#allocation5 + $0x204] sm:$0xf0]  ;;  %v1929_v63 = vld [vmem:[#allocation5 + $0x200] sm:$0xf]  ;;  %v1797_v50 = vld [vmem:[#allocation5 + $0xf8] sm:$0xf] }
  0x3e   :  { %737 = vmatpush.bf16.msrb.mxu1 %v1826_v10  ;;  %v1996_v10 = vld [vmem:[#allocation5 + $0xb8] sm:$0xf0] }
  0x3f   :  { %823 = vmatpush.bf16.msrb.mxu3 %v1734_v2  ;;  %780 = vmatpush.bf16.msrb.mxu2 %v1922_v3  ;;  %v1874_v2 = vor.u32 %v2025_v59, %v1873_v58  ;;  %v1779_v3 = vld [vmem:[#allocation5 + $0xe4] sm:$0xf0]  ;;  %v1762_v22 = vor.u32 %v1996_v10, %v1761_v8  ;;  %v1833_v58 = vld [vmem:[#allocation5 + $0x140] sm:$0xf]  ;;  %v2014_v59 = vld [vmem:[#allocation5 + $0x148] sm:$0xf0] }
  0x40   :  { %866 = vmatpush.bf16.msrb.mxu0 %v1830_v12  ;;  %v2020_v12 = vld [vmem:[#allocation5 + $0x178] sm:$0xf0]  ;;  %v1782_v13 = vor.u32 %v2000_v0, %v1779_v3  ;;  %v1834_v0 = vor.u32 %v2014_v59, %v1833_v58  ;;  %v1987_v3 = vld [vmem:[#allocation5 + $0x70] sm:$0xf0]  ;;  %v1958_v10 = vld [vmem:[#allocation2 + $0x1c] sm:$0xf] }
  0x41   :  { %v1858_v23 = vor.u32 %v2020_v12, %v1857_v11  ;;  %v1611_v11 = vld [vmem:[#allocation2 + $0x24] sm:$0xf0]  ;;  %v1617_v12 = vld [vmem:[#allocation2 + $0x20] sm:$0xf]  ;;  %v1641_v58 = vld [vmem:[#allocation2 + $0x50] sm:$0xf] }
  0x42   :  { %738 = vmatpush.bf16.msrb.mxu1 %v1814_v24  ;;  %v1947_v24 = vld [vmem:[#allocation5 + $0x234] sm:$0xf0]  ;;  %v2290_v14 = vor.u32 %v1958_v10, %v1611_v11  ;;  %v1966_v59 = vld [vmem:[#allocation2 + $0x58] sm:$0xf0]  ;;  %v1875_v10 = vld [vmem:[#allocation5 + $0x1a4] sm:$0xf0] }
  0x43   :  { %824 = vmatpush.bf16.msrb.mxu3 %v1722_v16  ;;  %781 = vmatpush.bf16.msrb.mxu2 %v1910_v17  ;;  %v1997_v16 = vld [vmem:[#allocation5 + $0xc4] sm:$0xf]  ;;  %v1674_v17 = vor.u32 %v1973_v4, %v1671_v5  ;;  %v1950_v35 = vor.u32 %v2042_v21, %v1947_v24  ;;  %v1713_v21 = vld [vmem:[#allocation5 + $0x50] sm:$0xf] }
  0x44   :  { %867 = vmatpush.bf16.msrb.mxu0 %v1818_v29  ;;  %v1599_v29 = vld [vmem:[#allocation2 + $0xc] sm:$0xf0]  ;;  %v1770_v32 = vor.u32 %v1997_v16, %v1767_v19  ;;  %v2033_v16 = vld [vmem:[#allocation5 + $0x1e4] sm:$0xf] }
  0x45   :  { %705 = vmatmul.bf16.gmra.mxu0 %v2273_v38  ;;  %715 = vmatmul.bf16.gmra.mxu1 %v2275_v39  ;;  %v2282_v42 = vor.u32 %v1955_v20, %v1599_v29  ;;  %v2035_v20 = vld [vmem:[#allocation5 + $0x1f0] sm:$0xf0]  ;;  %v1961_v29 = vld [vmem:[#allocation2 + $0x34] sm:$0xf] }
  0x46   :  { %725 = vmatmul.bf16.gmra.mxu2 %v2277_v45  ;;  %739 = vmatpush.bf16.msrb.mxu1 %v1802_v46  ;;  %v1750_v46 = vor.u32 %v1993_v31, %v1749_v30  ;;  %v1623_v30 = vld [vmem:[#allocation2 + $0x3c] sm:$0xf0]  ;;  %v1629_v31 = vld [vmem:[#allocation2 + $0x38] sm:$0xf] }
  0x47   :  { %825 = vmatpush.bf16.msrb.mxu3 %v1710_v33  ;;  %782 = vmatpush.bf16.msrb.mxu2 %v1898_v34  ;;  %v1605_v33 = vld [vmem:[#allocation2 + $0x8] sm:$0xf]  ;;  %v1957_v34 = vld [vmem:[#allocation2 + $0x10] sm:$0xf0] }
  0x48   :  { %868 = vmatpush.bf16.msrb.mxu0 %v1806_v47  ;;  %v1935_v47 = vld [vmem:[#allocation5 + $0x21c] sm:$0xf0] }
  0x49   :  { %v1938_v56 = vor.u32 %v2039_v41, %v1935_v47  ;;  %v2032_v41 = vld [vmem:[#allocation5 + $0x1d8] sm:$0xf0] }
  0x4a   :  { %740 = vmatpush.bf16.msrb.mxu1 %v1790_v60  ;;  %v1906_v47 = vor.u32 %v2032_v41, %v1905_v40  ;;  %v1970_v41 = vld [vmem:[#allocation2 + $0x7c] sm:$0xf] }
  0x4b   :  { %826 = vmatpush.bf16.msrb.mxu3 %v1698_v51  ;;  %783 = vmatpush.bf16.msrb.mxu2 %v1886_v52  ;;  %v2284_v51 = vor.u32 %v1957_v34, %v1605_v33  ;;  %v1737_v52 = vld [vmem:[#allocation5 + $0x80] sm:$0xf]  ;;  %v2298_v33 = vor.u32 %v1961_v29, %v1623_v30  ;;  %v1999_v29 = vld [vmem:[#allocation5 + $0xd0] sm:$0xf0] }
  0x4c   :  { %869 = vmatpush.bf16.msrb.mxu0 %v1794_v61  ;;  %v1738_v60 = vor.u32 %v1990_v54, %v1737_v52  ;;  %v2036_v61 = vld [vmem:[#allocation5 + $0x1fc] sm:$0xf]  ;;  %v2005_v52 = vld [vmem:[#allocation5 + $0x100] sm:$0xf0] }
  0x4d   :  { %v1926_v4 = vor.u32 %v2036_v61, %v1923_v62  ;;  %v2308_v61 = vor.u32 %v1966_v59, %v1641_v58  ;;  %v2027_v62 = vld [vmem:[#allocation5 + $0x1b4] sm:$0xf] }
  0x4e   :  { %741 = vmatpush.bf16.msrb.mxu1 %v1778_v9  ;;  %v1822_v9 = vor.u32 %v2011_v7, %v1821_v6  ;;  %v1785_v6 = vld [vmem:[#allocation5 + $0xe0] sm:$0xf] }
  0x4f   :  { %827 = vmatpush.bf16.msrb.mxu3 %v1686_v1  ;;  %784 = vmatpush.bf16.msrb.mxu2 %v1874_v2  ;;  %v2038_v1 = vld [vmem:[#allocation5 + $0x208] sm:$0xf0]  ;;  %v1725_v2 = vld [vmem:[#allocation5 + $0x68] sm:$0xf] }
  0x50   :  { %870 = vmatpush.bf16.msrb.mxu0 %v1782_v13  ;;  %v1930_v5 = vor.u32 %v2038_v1, %v1929_v63  ;;  %v1726_v8 = vor.u32 %v1987_v3, %v1725_v2  ;;  %v1960_v13 = vld [vmem:[#allocation2 + $0x28] sm:$0xf0]  ;;  %v1887_v63 = vld [vmem:[#allocation5 + $0x1bc] sm:$0xf0]  ;;  %v2029_v2 = vld [vmem:[#allocation5 + $0x1c0] sm:$0xf0] }
  0x51   :  { %v2292_v15 = vor.u32 %v1960_v13, %v1617_v12  ;;  %v1890_v1 = vor.u32 %v2027_v62, %v1887_v63  ;;  %v1881_v13 = vld [vmem:[#allocation5 + $0x1a0] sm:$0xf] }
  0x52   :  { %742 = vmatpush.bf16.msrb.mxu1 %v1766_v28  ;;  %v1810_v28 = vor.u32 %v2008_v27, %v1809_v25  ;;  %v1975_v25 = vld [vmem:[#allocation5 + $0x10] sm:$0xf0]  ;;  %v1773_v27 = vld [vmem:[#allocation5 + $0xc8] sm:$0xf] }
  0x53   :  { %828 = vmatpush.bf16.msrb.mxu3 %v1674_v17  ;;  %785 = vmatpush.bf16.msrb.mxu2 %v1862_v18  ;;  %v1911_v17 = vld [vmem:[#allocation5 + $0x1ec] sm:$0xf0]  ;;  %v1917_v18 = vld [vmem:[#allocation5 + $0x1e8] sm:$0xf]  ;;  %v1774_v30 = vor.u32 %v1999_v29, %v1773_v27 }
  0x54   :  { %871 = vmatpush.bf16.msrb.mxu0 %v1770_v32  ;;  %v1914_v19 = vor.u32 %v2033_v16, %v1911_v17  ;;  %v1963_v32 = vld [vmem:[#allocation2 + $0x40] sm:$0xf0]  ;;  %v2026_v16 = vld [vmem:[#allocation5 + $0x1a8] sm:$0xf0] }
  0x55   :  { %743 = vmatmul.bf16.vlgmr.msrb.gmra.mxu1 %v2282_v42  ;;  %v2300_v34 = vor.u32 %v1963_v32, %v1629_v31  ;;  %v1882_v17 = vor.u32 %v2026_v16, %v1881_v13  ;;  %v2021_v31 = vld [vmem:[#allocation5 + $0x184] sm:$0xf]  ;;  %v1863_v32 = vld [vmem:[#allocation5 + $0x18c] sm:$0xf0] }
  0x56   :  { %829 = vmatmul.bf16.vlgmr.msrb.gmra.mxu3 %v2261_v43  ;;  %907 = vmatpush.bf16.msra.mxu1 %v1950_v35  ;;  %v2030_v35 = vld [vmem:[#allocation5 + $0x1cc] sm:$0xf] }
  0x57   :  { %950 = vmatpush.bf16.msra.mxu2 %v1762_v22  ;;  %993 = vmatpush.bf16.msra.mxu3 %v1858_v23  ;;  %v1984_v22 = vld [vmem:[#allocation5 + $0x58] sm:$0xf0]  ;;  %v1918_v23 = vor.u32 %v2035_v20, %v1917_v18  ;;  %v1967_v18 = vld [vmem:[#allocation2 + $0x64] sm:$0xf]  ;;  %v1653_v20 = vld [vmem:[#allocation2 + $0x68] sm:$0xf] }
  0x58   :  { %1036 = vmatpush.bf16.msra.mxu0 %v1954_v36  ;;  %786 = vmatmul.bf16.vlgmr.msrb.gmra.mxu2 %v2284_v51  ;;  %v1714_v24 = vor.u32 %v1984_v22, %v1713_v21  ;;  %v1899_v36 = vld [vmem:[#allocation5 + $0x1d4] sm:$0xf0] }
  0x59   :  { %872 = vmatmul.bf16.vlgmr.msrb.gmra.mxu0 %v2282_v42  ;;  %v1902_v37 = vor.u32 %v2030_v35, %v1899_v36  ;;  %v1969_v21 = vld [vmem:[#allocation2 + $0x70] sm:$0xf0]  ;;  %v1869_v35 = vld [vmem:[#allocation5 + $0x188] sm:$0xf]  ;;  %v1866_v36 = vor.u32 %v2021_v31, %v1863_v32 }
  0x5a   :  { %908 = vmatpush.bf16.msra.mxu1 %v1938_v56  ;;  %v1964_v56 = vld [vmem:[#allocation2 + $0x4c] sm:$0xf] }
  0x5b   :  { %951 = vmatpush.bf16.msra.mxu2 %v1750_v46  ;;  %994 = vmatpush.bf16.msra.mxu3 %v1846_v55  ;;  %v1701_v46 = vld [vmem:[#allocation5 + $0x38] sm:$0xf]  ;;  %v1798_v55 = vor.u32 %v2005_v52, %v1797_v50 }
  0x5c   :  { %1037 = vmatpush.bf16.msra.mxu0 %v1942_v57  ;;  %v1702_v54 = vor.u32 %v1981_v49, %v1701_v46  ;;  %v1635_v57 = vld [vmem:[#allocation2 + $0x54] sm:$0xf0]  ;;  %v1659_v46 = vld [vmem:[#allocation2 + $0x84] sm:$0xf0]  ;;  %v1972_v49 = vld [vmem:[#allocation2 + $0x88] sm:$0xf0] }
  0x5d   :  { %v2322_v50 = vor.u32 %v1970_v41, %v1659_v46 }
  0x5e   :  { %909 = vmatpush.bf16.msra.mxu1 %v1926_v4  ;;  %v1689_v4 = vld [vmem:[#allocation5 + $0x20] sm:$0xf] }
  0x5f   :  { %952 = vmatpush.bf16.msra.mxu2 %v1738_v60  ;;  %995 = vmatpush.bf16.msra.mxu3 %v1834_v0  ;;  %v2306_v60 = vor.u32 %v1964_v56, %v1635_v57  ;;  %v1893_v0 = vld [vmem:[#allocation5 + $0x1b8] sm:$0xf] }
  0x60   :  { %1038 = vmatpush.bf16.msra.mxu0 %v1930_v5  ;;  %v1894_v3 = vor.u32 %v2029_v2, %v1893_v0  ;;  %v1978_v5 = vld [vmem:[#allocation5 + $0x28] sm:$0xf0] }
  0x61   :  { %v1690_v7 = vor.u32 %v1978_v5, %v1689_v4 }
  0x62   :  { %910 = vmatpush.bf16.msra.mxu1 %v1914_v19  ;;  %v1647_v19 = vld [vmem:[#allocation2 + $0x6c] sm:$0xf0] }
  0x63   :  { %953 = vmatpush.bf16.msra.mxu2 %v1726_v8  ;;  %996 = vmatpush.bf16.msra.mxu3 %v1822_v9  ;;  %v2002_v8 = vld [vmem:[#allocation5 + $0xe8] sm:$0xf0]  ;;  %v2024_v9 = vld [vmem:[#allocation5 + $0x19c] sm:$0xf]  ;;  %v2314_v22 = vor.u32 %v1967_v18, %v1647_v19 }
  0x64   :  { %1039 = vmatpush.bf16.msra.mxu0 %v1918_v23  ;;  %v1786_v11 = vor.u32 %v2002_v8, %v1785_v6  ;;  %v1878_v12 = vor.u32 %v2024_v9, %v1875_v10  ;;  %v2316_v23 = vor.u32 %v1969_v21, %v1653_v20 }
  0x65   :  { %748 = vmatmul.bf16.gmra.mxu1 %v2290_v14 }
  0x66   :  { %834 = vmatmul.bf16.gmra.mxu3 %v2273_v38  ;;  %911 = vmatpush.bf16.msra.mxu1 %v1902_v37  ;;  %v2023_v37 = vld [vmem:[#allocation5 + $0x190] sm:$0xf0] }
  0x67   :  { %954 = vmatpush.bf16.msra.mxu2 %v1714_v24  ;;  %997 = vmatpush.bf16.msra.mxu3 %v1810_v28  ;;  %v1677_v24 = vld [vmem:[#allocation5 + $0x8] sm:$0xf]  ;;  %v1870_v40 = vor.u32 %v2023_v37, %v1869_v35 }
  0x68   :  { %791 = vmatmul.bf16.gmra.mxu2 %v2292_v15  ;;  %1040 = vmatpush.bf16.msra.mxu0 %v1906_v47  ;;  %v1678_v28 = vor.u32 %v1975_v25, %v1677_v24  ;;  %v1665_v47 = vld [vmem:[#allocation2 + $0x80] sm:$0xf] }
  0x69   :  { %877 = vmatmul.bf16.gmra.mxu0 %v2290_v14  ;;  %v2324_v52 = vor.u32 %v1972_v49, %v1665_v47 }
  0x6a   :  { %912 = vmatpush.bf16.msra.mxu1 %v1890_v1 }
  0x6b   :  { %955 = vmatpush.bf16.msra.mxu2 %v1702_v54  ;;  %998 = vmatpush.bf16.msra.mxu3 %v1798_v55  ;;  %v104_v54 = vld [vmem:[#allocation2 + $0x98] sm:$0xf]  ;;  %v264_v55 = vunpack.c.h.b16 %v2258_v26 }
  0x6c   :  { %1041 = vmatpush.bf16.msra.mxu0 %v1894_v3  ;;  %v265_v56 = vunpack.c.l.b16 %v104_v54 }
  0x6d   :  { %v2331_v57 = vpack.c.b16 %v264_v55, %v264_v55 }
  0x6e   :  { %913 = vmatpush.bf16.msra.mxu1 %v1878_v12  ;;  %v2333_v62 = vpack.c.b16 %v265_v56, %v265_v56 }
  0x6f   :  { %956 = vmatpush.bf16.msra.mxu2 %v1690_v7  ;;  %999 = vmatpush.bf16.msra.mxu3 %v1786_v11 }
  0x70   :  { %1042 = vmatpush.bf16.msra.mxu0 %v1882_v17 }
  0x72   :  { %914 = vmatpush.bf16.msra.mxu1 %v1866_v36 }
  0x73   :  { %957 = vmatpush.bf16.msra.mxu2 %v1678_v28  ;;  %1000 = vmatpush.bf16.msra.mxu3 %v1774_v30 }
  0x74   :  { %1043 = vmatpush.bf16.msra.mxu0 %v1870_v40 }
  0x75   :  { %753 = vmatmul.bf16.gmra.mxu1 %v2298_v33 }
  0x76   :  { %839 = vmatmul.bf16.gmra.mxu3 %v2263_v44 }
  0x78   :  { %796 = vmatmul.bf16.gmra.mxu2 %v2300_v34 }
  0x79   :  { %882 = vmatmul.bf16.gmra.mxu0 %v2298_v33 }
  0x85   :  { %758 = vmatmul.bf16.gmra.mxu1 %v2306_v60 }
  0x86   :  { %844 = vmatmul.bf16.gmra.mxu3 %v2275_v39 }
  0x88   :  { %801 = vmatmul.bf16.gmra.mxu2 %v2308_v61 }
  0x89   :  { %887 = vmatmul.bf16.gmra.mxu0 %v2306_v60 }
  0x95   :  { %763 = vmatmul.bf16.gmra.mxu1 %v2314_v22 }
  0x96   :  { %849 = vmatmul.bf16.gmra.mxu3 %v2265_v48 }
  0x98   :  { %806 = vmatmul.bf16.gmra.mxu2 %v2316_v23 }
  0x99   :  { %892 = vmatmul.bf16.gmra.mxu0 %v2314_v22 }
  0xa5   :  { %768 = vmatmul.bf16.gmra.mxu1 %v2322_v50 }
  0xa6   :  { %854 = vmatmul.bf16.gmra.mxu3 %v2277_v45 }
  0xa8   :  { %811 = vmatmul.bf16.gmra.mxu2 %v2324_v52 }
  0xa9   :  { %897 = vmatmul.bf16.gmra.mxu0 %v2322_v50 }
  0xb2   :  { %v701_v58 = vpop.f32.mrf.mxu0  ;;  %v711_v59 = vpop.f32.mrf.mxu1 }
  0xb5   :  { %773 = vmatmul.bf16.gmra.mxu1 %v2331_v57 }
  0xb6   :  { %859 = vmatmul.bf16.gmra.mxu3 %v2267_v53 }
  0xb8   :  { %816 = vmatmul.bf16.gmra.mxu2 %v2333_v62 }
  0xb9   :  { %902 = vmatmul.bf16.gmra.mxu0 %v2331_v57  ;;  %v2339_v63 = vpop.f32.mrf.mxu2 }
  0xba   :  { %v703_v0 = vpop.f32.mrf.mxu0  ;;  %v713_v1 = vpop.f32.mrf.mxu1 }
  0xbb   :  { %v2341_v26 = vpop.f32.mrf.mxu3 }
  0xc1   :  { %v2343_v2 = vpop.f32.mrf.mxu2 }
  0xc2   :  { %v706_v3 = vpop.f32.mrf.mxu0  ;;  %v2345_v4 = vpop.f32.mrf.mxu1 }
  0xc3   :  { %v733_v5 = vpop.f32.mrf.mxu3 }
  0xc5   :  { %915 = vmatmul.bf16.vlgmr.msra.gmra.mxu1 %v2284_v51 }
  0xc6   :  { %1001 = vmatmul.bf16.vlgmr.msra.gmra.mxu3 %v2282_v42 }
  0xc8   :  { %958 = vmatmul.bf16.vlgmr.msra.gmra.mxu2 %v2261_v43 }
  0xc9   :  { %1044 = vmatmul.bf16.vlgmr.msra.gmra.mxu0 %v2284_v51  ;;  %v2351_v6 = vpop.f32.mrf.mxu2 }
  0xca   :  { %v708_v7 = vpop.f32.mrf.mxu0  ;;  %v2353_v8 = vpop.f32.mrf.mxu1 }
  0xd1   :  { %v2355_v9 = vpop.f32.mrf.mxu2 }
  0xd2   :  { %v744_v10 = vpop.f32.mrf.mxu1 }
  0xd3   :  { %v745_v11 = vadd.f32 %v744_v10, %v701_v58 }
  0xd5   :  { %920 = vmatmul.bf16.gmra.mxu1 %v2292_v15 }
  0xd6   :  { %v873_v12 = vpop.f32.mrf.mxu0  ;;  %1006 = vmatmul.bf16.gmra.mxu3 %v2290_v14 }
  0xd8   :  { %963 = vmatmul.bf16.gmra.mxu2 %v2273_v38 }
  0xd9   :  { %v830_v42 = vpop.f32.mrf.mxu3  ;;  %1049 = vmatmul.bf16.gmra.mxu0 %v2292_v15 }
  0xda   :  { %v2361_v43 = vadd.f32 %v873_v12, %v830_v42  ;;  %v746_v16 = vpop.f32.mrf.mxu1 }
  0xdb   :  { %v787_v51 = vpop.f32.mrf.mxu2  ;;  %v747_v17 = vadd.f32 %v746_v16, %v703_v0 }
  0xdc   :  { %v2363_v13 = vadd.f32 %v787_v51, %v745_v11 }
  0xde   :  { %v875_v18 = vpop.f32.mrf.mxu0 }
  0xe1   :  { %v832_v19 = vpop.f32.mrf.mxu3 }
  0xe2   :  { %v2365_v20 = vadd.f32 %v875_v18, %v832_v19  ;;  %v749_v24 = vpop.f32.mrf.mxu1 }
  0xe3   :  { %v789_v21 = vpop.f32.mrf.mxu2  ;;  %v750_v25 = vadd.f32 %v749_v24, %v706_v3 }
  0xe4   :  { %v2367_v14 = vadd.f32 %v789_v21, %v747_v17 }
  0xe5   :  { %925 = vmatmul.bf16.gmra.mxu1 %v2300_v34 }
  0xe6   :  { %v878_v27 = vpop.f32.mrf.mxu0  ;;  %1011 = vmatmul.bf16.gmra.mxu3 %v2298_v33 }
  0xe8   :  { %968 = vmatmul.bf16.gmra.mxu2 %v2263_v44 }
  0xe9   :  { %v835_v38 = vpop.f32.mrf.mxu3  ;;  %1054 = vmatmul.bf16.gmra.mxu0 %v2300_v34 }
  0xea   :  { %v2373_v15 = vadd.f32 %v878_v27, %v835_v38  ;;  %v751_v30 = vpop.f32.mrf.mxu1 }
  0xeb   :  { %v792_v28 = vpop.f32.mrf.mxu2  ;;  %v752_v31 = vadd.f32 %v751_v30, %v708_v7 }
  0xec   :  { %v2375_v29 = vadd.f32 %v792_v28, %v750_v25 }
  0xee   :  { %v880_v32 = vpop.f32.mrf.mxu0 }
  0xf1   :  { %v837_v35 = vpop.f32.mrf.mxu3 }
  0xf2   :  { %v2377_v36 = vadd.f32 %v880_v32, %v837_v35  ;;  %v754_v40 = vpop.f32.mrf.mxu1 }
  0xf3   :  { %v794_v37 = vpop.f32.mrf.mxu2  ;;  %v755_v41 = vadd.f32 %v754_v40, %v711_v59 }
  0xf4   :  { %v2379_v33 = vadd.f32 %v794_v37, %v752_v31 }
  0xf5   :  { %930 = vmatmul.bf16.gmra.mxu1 %v2308_v61 }
  0xf6   :  { %v883_v46 = vpop.f32.mrf.mxu0  ;;  %1016 = vmatmul.bf16.gmra.mxu3 %v2306_v60 }
  0xf8   :  { %973 = vmatmul.bf16.gmra.mxu2 %v2275_v39 }
  0xf9   :  { %v840_v44 = vpop.f32.mrf.mxu3  ;;  %1059 = vmatmul.bf16.gmra.mxu0 %v2308_v61 }
  0xfa   :  { %v2385_v34 = vadd.f32 %v883_v46, %v840_v44  ;;  %v756_v54 = vpop.f32.mrf.mxu1 }
  0xfb   :  { %v797_v47 = vpop.f32.mrf.mxu2  ;;  %v757_v55 = vadd.f32 %v756_v54, %v713_v1 }
  0xfc   :  { %v2387_v49 = vadd.f32 %v797_v47, %v755_v41 }
  0xfe   :  { %v885_v56 = vpop.f32.mrf.mxu0 }
 0x101   :  { %v842_v58 = vpop.f32.mrf.mxu3 }
 0x102   :  { %v2389_v59 = vadd.f32 %v885_v56, %v842_v58  ;;  %v759_v3 = vpop.f32.mrf.mxu1 }
 0x103   :  { %v799_v0 = vpop.f32.mrf.mxu2  ;;  %v760_v5 = vadd.f32 %v759_v3, %v2345_v4 }
 0x104   :  { %v2391_v60 = vadd.f32 %v799_v0, %v757_v55 }
 0x105   :  { %935 = vmatmul.bf16.gmra.mxu1 %v2316_v23 }
 0x106   :  { %v888_v39 = vpop.f32.mrf.mxu0  ;;  %1021 = vmatmul.bf16.gmra.mxu3 %v2314_v22 }
 0x108   :  { %978 = vmatmul.bf16.gmra.mxu2 %v2265_v48 }
 0x109   :  { %v845_v61 = vpop.f32.mrf.mxu3  ;;  %1064 = vmatmul.bf16.gmra.mxu0 %v2316_v23 }
 0x10a   :  { %v2398_v1 = vadd.f32 %v888_v39, %v845_v61  ;;  %v761_v11 = vpop.f32.mrf.mxu1 }
 0x10b   :  { %v802_v7 = vpop.f32.mrf.mxu2  ;;  %v762_v12 = vadd.f32 %v761_v11, %v2353_v8 }
 0x10c   :  { %v2400_v10 = vadd.f32 %v802_v7, %v760_v5 }
 0x10e   :  { %v890_v42 = vpop.f32.mrf.mxu0 }
 0x111   :  { %v847_v4 = vpop.f32.mrf.mxu3 }
 0x112   :  { %v2403_v51 = vadd.f32 %v890_v42, %v847_v4  ;;  %v764_v17 = vpop.f32.mrf.mxu1 }
 0x113   :  { %v804_v22 = vpop.f32.mrf.mxu2  ;;  %v765_v8 = vadd.f32 %v764_v17, %v2339_v63 }
 0x114   :  { %v2405_v16 = vadd.f32 %v804_v22, %v762_v12 }
 0x115   :  { %940 = vmatmul.bf16.gmra.mxu1 %v2324_v52 }
 0x116   :  { %2993 = vst [vmem:[#allocation15_spill] sm:$0xff] %v2405_v16  ;;  %v893_v18 = vpop.f32.mrf.mxu0  ;;  %1026 = vmatmul.bf16.gmra.mxu3 %v2322_v50 }
 0x118   :  { %983 = vmatmul.bf16.gmra.mxu2 %v2277_v45 }
 0x119   :  { %v850_v48 = vpop.f32.mrf.mxu3  ;;  %1069 = vmatmul.bf16.gmra.mxu0 %v2324_v52 }
 0x11a   :  { %v2411_v23 = vadd.f32 %v893_v18, %v850_v48  ;;  %v766_v24 = vpop.f32.mrf.mxu1 }
 0x11b   :  { %v807_v19 = vpop.f32.mrf.mxu2  ;;  %v767_v50 = vadd.f32 %v766_v24, %v2343_v2 }
 0x11c   :  { %v2414_v21 = vadd.f32 %v807_v19, %v765_v8 }
 0x11e   :  { %2994 = vst [vmem:[#allocation16_spill] sm:$0xff] %v2414_v21  ;;  %v895_v25 = vpop.f32.mrf.mxu0 }
 0x121   :  { %v852_v27 = vpop.f32.mrf.mxu3 }
 0x122   :  { %v2416_v38 = vadd.f32 %v895_v25, %v852_v27  ;;  %v769_v45 = vpop.f32.mrf.mxu1 }
 0x123   :  { %v809_v28 = vpop.f32.mrf.mxu2  ;;  %v770_v32 = vadd.f32 %v769_v45, %v2351_v6 }
 0x124   :  { %v2419_v30 = vadd.f32 %v809_v28, %v767_v50 }
 0x125   :  { %945 = vmatmul.bf16.gmra.mxu1 %v2333_v62 }
 0x126   :  { %2995 = vst [vmem:[#allocation17_spill] sm:$0xff] %v2419_v30  ;;  %v898_v31 = vpop.f32.mrf.mxu0  ;;  %1031 = vmatmul.bf16.gmra.mxu3 %v2331_v57 }
 0x128   :  { %988 = vmatmul.bf16.gmra.mxu2 %v2267_v53 }
 0x129   :  { %v855_v52 = vpop.f32.mrf.mxu3  ;;  %1074 = vmatmul.bf16.gmra.mxu0 %v2333_v62 }
 0x12a   :  { %v2425_v63 = vadd.f32 %v898_v31, %v855_v52  ;;  %v771_v37 = vpop.f32.mrf.mxu1 }
 0x12b   :  { %v812_v35 = vpop.f32.mrf.mxu2  ;;  %v772_v57 = vadd.f32 %v771_v37, %v2355_v9 }
 0x12c   :  { %v2428_v2 = vadd.f32 %v812_v35, %v770_v32 }
 0x12e   :  { %2996 = vst [vmem:[#allocation18_spill] sm:$0xff] %v2428_v2  ;;  %v900_v40 = vpop.f32.mrf.mxu0 }
 0x131   :  { %v857_v41 = vpop.f32.mrf.mxu3 }
 0x132   :  { %v2430_v46 = vadd.f32 %v900_v40, %v857_v41  ;;  %v774_v53 = vpop.f32.mrf.mxu1 }
 0x133   :  { %v814_v44 = vpop.f32.mrf.mxu2  ;;  %v775_v6 = vadd.f32 %v774_v53, %v2341_v26 }
 0x134   :  { %v2433_v47 = vadd.f32 %v814_v44, %v772_v57 }
 0x136   :  { %2997 = vst [vmem:[#allocation19_spill] sm:$0xff] %v2433_v47  ;;  %v903_v54 = vpop.f32.mrf.mxu0 }
 0x139   :  { %v860_v62 = vpop.f32.mrf.mxu3 }
 0x13a   :  { %v2435_v55 = vadd.f32 %v903_v54, %v860_v62  ;;  %v776_v0 = vpop.f32.mrf.mxu1  ;;  %v1079_v54 = vadd.f32 %v2367_v14, %v2363_v13 }
 0x13b   :  { %v817_v56 = vpop.f32.mrf.mxu2  ;;  %v1136_v0 = vmul.f32 %v2367_v14, %v2367_v14 }
 0x13c   :  { %v2438_v58 = vadd.f32 %v817_v56, %v775_v6 }
 0x13e   :  { %2998 = vst [vmem:[#allocation20_spill] sm:$0xff] %v2438_v58  ;;  %v905_v3 = vpop.f32.mrf.mxu0 }
 0x141   :  { %v862_v5 = vpop.f32.mrf.mxu3 }
 0x142   :  { %v916_v61 = vpop.f32.mrf.mxu1  ;;  %v1133_v5 = vmul.f32 %v2363_v13, %v2363_v13 }
 0x143   :  { %v819_v39 = vpop.f32.mrf.mxu2  ;;  %v2441_v9 = vadd.f32 %v916_v61, %v2361_v43 }
 0x144   :  { %v1139_v39 = vmul.f32 %v2375_v29, %v2375_v29 }
 0x146   :  { %v1045_v7 = vpop.f32.mrf.mxu0 }
 0x149   :  { %v1002_v11 = vpop.f32.mrf.mxu3 }
 0x14a   :  { %v918_v4 = vpop.f32.mrf.mxu1 }
 0x14b   :  { %v959_v12 = vpop.f32.mrf.mxu2  ;;  %v2444_v22 = vadd.f32 %v918_v4, %v2365_v20 }
 0x14c   :  { %v1003_v42 = vadd.f32 %v1002_v11, %v959_v12  ;;  %v1172_v11 = vadd.f32 %v1136_v0, %v1133_v5 }
 0x14e   :  { %v1047_v26 = vpop.f32.mrf.mxu0  ;;  %v2446_v17 = vadd.f32 %v1045_v7, %v1003_v42  ;;  %v1173_v4 = vadd.f32 %v1172_v11, %v1139_v39 }
 0x151   :  { %v1004_v18 = vpop.f32.mrf.mxu3 }
 0x152   :  { %v921_v19 = vpop.f32.mrf.mxu1 }
 0x153   :  { %v961_v48 = vpop.f32.mrf.mxu2  ;;  %v2449_v24 = vadd.f32 %v921_v19, %v2373_v15 }
 0x154   :  { %v1005_v8 = vadd.f32 %v1004_v18, %v961_v48 }
 0x156   :  { %v1050_v43 = vpop.f32.mrf.mxu0  ;;  %v2451_v25 = vadd.f32 %v1047_v26, %v1005_v8  ;;  %v1145_v26 = vmul.f32 %v2387_v49, %v2387_v49 }
 0x159   :  { %v1007_v27 = vpop.f32.mrf.mxu3 }
 0x15a   :  { %v923_v45 = vpop.f32.mrf.mxu1 }
 0x15b   :  { %v964_v50 = vpop.f32.mrf.mxu2  ;;  %v2454_v20 = vadd.f32 %v923_v45, %v2377_v36 }
 0x15c   :  { %v1008_v28 = vadd.f32 %v1007_v27, %v964_v50  ;;  %v1148_v50 = vmul.f32 %v2391_v60, %v2391_v60 }
 0x15e   :  { %v1052_v31 = vpop.f32.mrf.mxu0  ;;  %v2456_v52 = vadd.f32 %v1050_v43, %v1008_v28 }
 0x161   :  { %v1009_v32 = vpop.f32.mrf.mxu3 }
 0x162   :  { %v926_v40 = vpop.f32.mrf.mxu1 }
 0x163   :  { %v966_v35 = vpop.f32.mrf.mxu2  ;;  %v2459_v15 = vadd.f32 %v926_v40, %v2385_v34  ;;  %v1080_v34 = vadd.f32 %v1079_v54, %v2375_v29  ;;  %v1154_v40 = vmul.f32 %v2405_v16, %v2405_v16  ;;  %v1157_v54 = vmul.f32 %v2414_v21, %v2414_v21 }
 0x164   :  { %v1010_v37 = vadd.f32 %v1009_v32, %v966_v35  ;;  %v1151_v32 = vmul.f32 %v2400_v10, %v2400_v10 }
 0x165   :  { %v1081_v61 = vadd.f32 %v1080_v34, %v2379_v33  ;;  %v1160_v34 = vmul.f32 %v2419_v30, %v2419_v30 }
 0x166   :  { %v1055_v41 = vpop.f32.mrf.mxu0  ;;  %v2461_v57 = vadd.f32 %v1052_v31, %v1010_v37 }
 0x167   :  { %v1082_v12 = vadd.f32 %v1081_v61, %v2387_v49  ;;  %v1163_v61 = vmul.f32 %v2428_v2, %v2428_v2 }
 0x169   :  { %v1012_v44 = vpop.f32.mrf.mxu3  ;;  %v1083_v18 = vadd.f32 %v1082_v12, %v2391_v60  ;;  %v1166_v12 = vmul.f32 %v2433_v47, %v2433_v47 }
 0x16a   :  { %v928_v62 = vpop.f32.mrf.mxu1 }
 0x16b   :  { %v969_v53 = vpop.f32.mrf.mxu2  ;;  %v2466_v6 = vadd.f32 %v928_v62, %v2389_v59  ;;  %v1142_v59 = vmul.f32 %v2379_v33, %v2379_v33  ;;  %v1084_v28 = vadd.f32 %v1083_v18, %v2400_v10  ;;  %v1169_v18 = vmul.f32 %v2438_v58, %v2438_v58 }
 0x16c   :  { %v1013_v36 = vadd.f32 %v1012_v44, %v969_v53 }
 0x16d   :  { %v1174_v27 = vadd.f32 %v1173_v4, %v1142_v59  ;;  %v1085_v35 = vadd.f32 %v1084_v28, %v2405_v16 }
 0x16e   :  { %v1057_v56 = vpop.f32.mrf.mxu0  ;;  %v2471_v3 = vadd.f32 %v1055_v41, %v1013_v36 }
 0x16f   :  { %v1175_v31 = vadd.f32 %v1174_v27, %v1145_v26  ;;  %v1086_v41 = vadd.f32 %v1085_v35, %v2414_v21 }
 0x171   :  { %v1014_v7 = vpop.f32.mrf.mxu3  ;;  %v1087_v36 = vadd.f32 %v1086_v41, %v2419_v30 }
 0x172   :  { %v931_v8 = vpop.f32.mrf.mxu1 }
 0x173   :  { %v971_v42 = vpop.f32.mrf.mxu2  ;;  %v2485_v19 = vadd.f32 %v931_v8, %v2398_v1  ;;  %v1176_v1 = vadd.f32 %v1175_v31, %v1148_v50  ;;  %v1088_v5 = vadd.f32 %v1087_v36, %v2428_v2 }
 0x174   :  { %v1015_v48 = vadd.f32 %v1014_v7, %v971_v42 }
 0x175   :  { %v1177_v53 = vadd.f32 %v1176_v1, %v1151_v32  ;;  %v1089_v7 = vadd.f32 %v1088_v5, %v2433_v47  ;;  %v1097_v5 = vadd.f32 %v2444_v22, %v2441_v9  ;;  %v1141_v47 = vmul.f32 %v2456_v52, %v2456_v52 }
 0x176   :  { %v2487_v43 = vpop.f32.mrf.mxu0  ;;  %v2492_v45 = vadd.f32 %v1057_v56, %v1015_v48  ;;  %v1152_v2 = vmul.f32 %v2485_v19, %v2485_v19 }
 0x177   :  { %v1178_v0 = vadd.f32 %v1177_v53, %v1154_v40  ;;  %v1090_v42 = vadd.f32 %v1089_v7, %v2438_v58 }
 0x179   :  { %v2497_v37 = vpop.f32.mrf.mxu3  ;;  %v1179_v39 = vadd.f32 %v1178_v0, %v1157_v54  ;;  %v1091_v50 = vrot.slane %v1090_v42, 4  ;;  %v1137_v54 = vmul.f32 %v2444_v22, %v2444_v22 }
 0x17a   :  { %v933_v62 = vpop.f32.mrf.mxu1 }
 0x17b   :  { %v2502_v44 = vpop.f32.mrf.mxu2  ;;  %v1180_v59 = vadd.f32 %v1179_v39, %v1160_v34  ;;  %v1092_v32 = vadd.f32 %v1091_v50, %v1090_v42  ;;  %v1134_v34 = vmul.f32 %v2441_v9, %v2441_v9  ;;  %v1140_v39 = vmul.f32 %v2449_v24, %v2449_v24 }
 0x17c   :  { %v1018_v30 = vadd.f32 %v2497_v37, %v2502_v44 }
 0x17d   :  { %v1181_v26 = vadd.f32 %v1180_v59, %v1163_v61  ;;  %v1093_v53 = vrot.slane %v1092_v32, 2  ;;  %v1190_v7 = vadd.f32 %v1137_v54, %v1134_v34  ;;  %v1098_v59 = vadd.f32 %v1097_v5, %v2449_v24 }
 0x17e   :  { %v2507_v56 = vpop.f32.mrf.mxu0  ;;  %v1149_v34 = vmul.f32 %v2466_v6, %v2466_v6  ;;  %v2548_v5 = vadd.f32 %v933_v62, %v2403_v51 }
 0x17f   :  { %v1182_v27 = vadd.f32 %v1181_v26, %v1166_v12  ;;  %v1094_v61 = vadd.f32 %v1093_v53, %v1092_v32  ;;  %v1143_v12 = vmul.f32 %v2454_v20, %v2454_v20  ;;  %v1099_v50 = vadd.f32 %v1098_v59, %v2454_v20 }
 0x180   :  { %v1138_v32 = vmul.f32 %v2451_v25, %v2451_v25  ;;  %v1115_v59 = vadd.f32 %v2451_v25, %v2446_v17 }
 0x181   :  { %v2515_v11 = vpop.f32.mrf.mxu3  ;;  %v1183_v28 = vadd.f32 %v1182_v27, %v1169_v18  ;;  %v1191_v27 = vadd.f32 %v1190_v7, %v1140_v39  ;;  %v1095_v58 = vrot.slane %v1094_v61, 1  ;;  %v1100_v54 = vadd.f32 %v1099_v50, %v2459_v15 }
 0x182   :  { %v936_v48 = vpop.f32.mrf.mxu1  ;;  %v1135_v7 = vmul.f32 %v2446_v17, %v2446_v17 }
 0x183   :  { %v976_v4 = vpop.f32.mrf.mxu2  ;;  %v1184_v1 = vrot.slane %v1183_v28, 4  ;;  %v1192_v53 = vadd.f32 %v1191_v27, %v1143_v12  ;;  %v1101_v50 = vadd.f32 %v1100_v54, %v2466_v6  ;;  %v2562_v51 = vadd.f32 %v936_v48, %v2411_v23 }
 0x184   :  { %v1208_v62 = vadd.f32 %v1138_v32, %v1135_v7  ;;  %v1147_v7 = vmul.f32 %v2471_v3, %v2471_v3 }
 0x185   :  { %v1185_v36 = vadd.f32 %v1184_v1, %v1183_v28  ;;  %v1146_v28 = vmul.f32 %v2459_v15, %v2459_v15 }
 0x186   :  { %v2522_v8 = vpop.f32.mrf.mxu0  ;;  %v1209_v48 = vadd.f32 %v1208_v62, %v1141_v47  ;;  %v1150_v47 = vmul.f32 %v2492_v45, %v2492_v45 }
 0x187   :  { %v1186_v26 = vrot.slane %v1185_v36, 2  ;;  %v1193_v27 = vadd.f32 %v1192_v53, %v1146_v28  ;;  %v1102_v28 = vadd.f32 %v1101_v50, %v2485_v19  ;;  %v1155_v53 = vmul.f32 %v2548_v5, %v2548_v5 }
 0x188   :  { %v2588_v50 = vadd.f32 %v2487_v43, %v1018_v30 }
 0x189   :  { %v1022_v31 = vpop.f32.mrf.mxu3  ;;  %v2550_v39 = vadd.f32 %v1186_v26, %v1185_v36  ;;  %v1116_v36 = vadd.f32 %v1115_v59, %v2456_v52  ;;  %v1144_v26 = vmul.f32 %v2461_v57, %v2461_v57  ;;  %v1194_v21 = vadd.f32 %v1193_v27, %v1149_v34 }
 0x18a   :  { %v938_v40 = vpop.f32.mrf.mxu1  ;;  %v1020_v59 = vadd.f32 %v2515_v11, %v976_v4  ;;  %v1103_v44 = vadd.f32 %v1102_v28, %v2548_v5  ;;  %v1158_v34 = vmul.f32 %v2562_v51, %v2562_v51 }
 0x18b   :  { %v979_v35 = vpop.f32.mrf.mxu2  ;;  %v2573_v54 = vadd.f32 %v938_v40, %v2416_v38  ;;  %v1117_v32 = vadd.f32 %v1116_v36, %v2461_v57  ;;  %v1195_v37 = vadd.f32 %v1194_v21, %v1152_v2  ;;  %v1210_v40 = vadd.f32 %v1209_v48, %v1144_v26 }
 0x18c   :  { %v1023_v62 = vadd.f32 %v1022_v31, %v979_v35  ;;  %v1104_v21 = vadd.f32 %v1103_v44, %v2562_v51  ;;  %v2598_v36 = vadd.f32 %v2507_v56, %v1020_v59 }
 0x18d   :  { %v1196_v11 = vadd.f32 %v1195_v37, %v1155_v53  ;;  %v1161_v2 = vmul.f32 %v2573_v54, %v2573_v54  ;;  %v1211_v30 = vadd.f32 %v1210_v40, %v1147_v7 }
 0x18e   :  { %v2524_v41 = vpop.f32.mrf.mxu0  ;;  %v1105_v31 = vadd.f32 %v1104_v21, %v2573_v54  ;;  %v1156_v7 = vmul.f32 %v2598_v36, %v2598_v36 }
 0x18f   :  { %v1197_v43 = vadd.f32 %v1196_v11, %v1158_v34  ;;  %v1212_v56 = vadd.f32 %v1211_v30, %v1150_v47 }
 0x191   :  { %v1024_v0 = vpop.f32.mrf.mxu3 }
 0x192   :  { %v941_v18 = vpop.f32.mrf.mxu1 }
 0x193   :  { %v981_v42 = vpop.f32.mrf.mxu2  ;;  %v2583_v27 = vadd.f32 %v941_v18, %v2425_v63  ;;  %v1096_v63 = vadd.f32 %v1095_v58, %v1094_v61  ;;  %v1118_v18 = vadd.f32 %v1117_v32, %v2471_v3  ;;  %v1198_v61 = vadd.f32 %v1197_v43, %v1161_v2 }
 0x194   :  { %v1025_v26 = vadd.f32 %v1024_v0, %v981_v42 }
 0x195   :  { %2999 = vst [vmem:[#allocation21_spill] sm:$0xff] %v2583_v27  ;;  %v1164_v35 = vmul.f32 %v2583_v27, %v2583_v27  ;;  %v1119_v53 = vadd.f32 %v1118_v18, %v2492_v45  ;;  %v1106_v0 = vadd.f32 %v1105_v31, %v2583_v27  ;;  %v2745_v27 = vld [vmem:[#allocation7 + $0x8c] sm:$0xf] }
 0x196   :  { %v2540_v1 = vpop.f32.mrf.mxu0  ;;  %v2616_v59 = vadd.f32 %v2524_v41, %v1025_v26  ;;  %3010 = vst [vmem:[#allocation32_spill] sm:$0xff] %v2745_v27 }
 0x197   :  { %v1120_v32 = vadd.f32 %v1119_v53, %v2588_v50 }
 0x198   :  { %3001 = vst [vmem:[#allocation23_spill] sm:$0xff] %v2616_v59 }
 0x199   :  { %v1027_v12 = vpop.f32.mrf.mxu3 }
 0x19a   :  { %v943_v16 = vpop.f32.mrf.mxu1 }
 0x19b   :  { %v984_v23 = vpop.f32.mrf.mxu2  ;;  %v2594_v4 = vadd.f32 %v943_v16, %v2430_v46  ;;  %v1153_v16 = vmul.f32 %v2588_v50, %v2588_v50  ;;  %v2607_v46 = vadd.f32 %v2522_v8, %v1023_v62  ;;  %v1121_v62 = vadd.f32 %v1120_v32, %v2598_v36 }
 0x19c   :  { %v1028_v58 = vadd.f32 %v1027_v12, %v984_v23  ;;  %v1188_v12 = vrot.slane %v2550_v39, 1  ;;  %v1199_v23 = vadd.f32 %v1198_v61, %v1164_v35  ;;  %v2638_v35 = vmul.f32 0.010204081, %v1096_v63 }
 0x19d   :  { %3000 = vst [vmem:[#allocation22_spill] sm:$0xff] %v2594_v4  ;;  %v1167_v42 = vmul.f32 %v2594_v4, %v2594_v4  ;;  %v1107_v44 = vadd.f32 %v1106_v0, %v2594_v4  ;;  %v1213_v47 = vadd.f32 %v1212_v56, %v1153_v16  ;;  %v1159_v11 = vmul.f32 %v2607_v46, %v2607_v46  ;;  %v2751_v4 = vld [vmem:[#allocation7 + $0x90] sm:$0xff] }
 0x19e   :  { %v1072_v38 = vpop.f32.mrf.mxu0  ;;  %v2627_v41 = vadd.f32 %v2540_v1, %v1028_v58  ;;  %v1189_v31 = vadd.f32 %v1188_v12, %v2550_v39 }
 0x19f   :  { %v1200_v21 = vadd.f32 %v1199_v23, %v1167_v42  ;;  %v1214_v26 = vadd.f32 %v1213_v47, %v1156_v7 }
 0x1a0   :  { %3003 = vst [vmem:[#allocation25_spill] sm:$0xff] %v2627_v41  ;;  %v1165_v56 = vmul.f32 %v2627_v41, %v2627_v41  ;;  %v1229_v7 = vmul.f32 0.010204081, %v1189_v31 }
 0x1a1   :  { %v1029_v28 = vpop.f32.mrf.mxu3  ;;  %v1215_v16 = vadd.f32 %v1214_v26, %v1159_v11 }
 0x1a2   :  { %v946_v8 = vpop.f32.mrf.mxu1 }
 0x1a3   :  { %v986_v48 = vpop.f32.mrf.mxu2  ;;  %v2621_v34 = vadd.f32 %v946_v8, %v2435_v55  ;;  %v1122_v55 = vadd.f32 %v1121_v62, %v2607_v46 }
 0x1a4   :  { %v1030_v37 = vadd.f32 %v1029_v28, %v986_v48  ;;  %v1162_v28 = vmul.f32 %v2616_v59, %v2616_v59 }
 0x1a5   :  { %3002 = vst [vmem:[#allocation24_spill] sm:$0xff] %v2621_v34  ;;  %v1108_v2 = vadd.f32 %v1107_v44, %v2621_v34  ;;  %v1170_v18 = vmul.f32 %v2621_v34, %v2621_v34  ;;  %v1123_v58 = vadd.f32 %v1122_v55, %v2616_v59  ;;  %v2732_v34 = vld [vmem:[#allocation7 + $0x78] sm:$0xff] }
 0x1a6   :  { %v1075_v40 = vpop.f32.mrf.mxu0  ;;  %v2635_v30 = vadd.f32 %v1072_v38, %v1030_v37  ;;  %v1216_v48 = vadd.f32 %v1215_v16, %v1162_v28  ;;  %v1232_v37 = vmul.f32 %v2638_v35, %v2638_v35  ;;  %3007 = vst [vmem:[#allocation29_spill] sm:$0xff] %v2732_v34 }
 0x1a7   :  { %v1109_v1 = vrot.slane %v1108_v2, 4  ;;  %v1201_v53 = vadd.f32 %v1200_v21, %v1170_v18  ;;  %v1124_v38 = vadd.f32 %v1123_v58, %v2627_v41 }
 0x1a8   :  { %3004 = vst [vmem:[#allocation26_spill] sm:$0xff] %v2635_v30  ;;  %v1168_v32 = vmul.f32 %v2635_v30, %v2635_v30  ;;  %v1217_v44 = vadd.f32 %v1216_v48, %v1165_v56  ;;  %v1235_v28 = vsub.f32 %v1229_v7, %v1232_v37 }
 0x1a9   :  { %v1032_v43 = vpop.f32.mrf.mxu3  ;;  %v1110_v61 = vadd.f32 %v1109_v1, %v1108_v2  ;;  %v1202_v0 = vrot.slane %v1201_v53, 4  ;;  %v1125_v47 = vadd.f32 %v1124_v38, %v2635_v30 }
 0x1aa   :  { %v948_v63 = vpop.f32.mrf.mxu1  ;;  %v1218_v2 = vadd.f32 %v1217_v44, %v1168_v32 }
 0x1ab   :  { %v989_v42 = vpop.f32.mrf.mxu2  ;;  %v1111_v8 = vrot.slane %v1110_v61, 2  ;;  %v1203_v12 = vadd.f32 %v1202_v0, %v1201_v53 }
 0x1ac   :  { %v1033_v39 = vadd.f32 %v1032_v43, %v989_v42  ;;  %v1238_v42 = vmax.f32 %v1235_v28, 0.0 }
 0x1ad   :  { %v1112_v11 = vadd.f32 %v1111_v8, %v1110_v61  ;;  %v1204_v21 = vrot.slane %v1203_v12, 2 }
 0x1ae   :  { %v1077_v23 = vpop.f32.mrf.mxu0  ;;  %v2649_v62 = vadd.f32 %v1075_v40, %v1033_v39  ;;  %v1242_v8 = vadd.f32 1e-05, %v1238_v42 }
 0x1af   :  { %v1113_v43 = vrot.slane %v1112_v11, 1  ;;  %v1205_v31 = vadd.f32 %v1204_v21, %v1203_v12 }
 0x1b0   :  { %3005 = vst [vmem:[#allocation27_spill] sm:$0xff] %v2649_v62  ;;  %v1126_v18 = vadd.f32 %v1125_v47, %v2649_v62  ;;  %v1171_v26 = vmul.f32 %v2649_v62, %v2649_v62  ;;  %2078 = vrsqrt.f32 %v1242_v8  ;;  %vm1251_vm6 = vweird.f32 %v1242_v8 }
 0x1b1   :  { %v1034_v55 = vpop.f32.mrf.mxu3  ;;  %v1114_v16 = vadd.f32 %v1113_v43, %v1112_v11  ;;  %v1206_v58 = vrot.slane %v1205_v31, 1 }
 0x1b2   :  { %v1127_v1 = vrot.slane %v1126_v18, 4  ;;  %v1219_v53 = vadd.f32 %v1218_v2, %v1171_v26 }
 0x1b3   :  { %v991_v56 = vpop.f32.mrf.mxu2  ;;  %v1207_v61 = vadd.f32 %v1206_v58, %v1205_v31  ;;  %v2654_v48 = vmul.f32 0.010204081, %v1114_v16 }
 0x1b4   :  { %v1128_v0 = vadd.f32 %v1127_v1, %v1126_v18  ;;  %v1220_v40 = vrot.slane %v1219_v53, 4 }
 0x1b5   :  { %v1230_v39 = vmul.f32 0.010204081, %v1207_v61  ;;  %v1233_v63 = vmul.f32 %v2654_v48, %v2654_v48 }
 0x1b6   :  { %v1129_v38 = vrot.slane %v1128_v0, 2  ;;  %v1221_v32 = vadd.f32 %v1220_v40, %v1219_v53  ;;  %v2079_v31 = vpop.eup %2078 }
 0x1b7   :  { %v1236_v12 = vsub.f32 %v1230_v39, %v1233_v63  ;;  %v1246_v16 = vmul.f32 %v2079_v31, %v1242_v8  ;;  %vm1252_vm4 = vweird.f32 %v2079_v31 }
 0x1b8   :  { %v1130_v7 = vadd.f32 %v1129_v38, %v1128_v0  ;;  %v1222_v37 = vrot.slane %v1221_v32, 2  ;;  %vm1253_vm9 = vmor %vm1251_vm6, %vm1252_vm4 }
 0x1b9   :  { %v1239_v47 = vmax.f32 %v1236_v12, 0.0  ;;  %v1247_v40 = vmul.f32 %v2079_v31, %v1246_v16 }
 0x1ba   :  { %v1131_v23 = vrot.slane %v1130_v7, 1  ;;  %v1223_v44 = vadd.f32 %v1222_v37, %v1221_v32 }
 0x1bb   :  { %v1243_v2 = vadd.f32 1e-05, %v1239_v47  ;;  %v1248_v32 = vmul.f32 0.5, %v1247_v40 }
 0x1bc   :  { %v1132_v11 = vadd.f32 %v1131_v23, %v1130_v7  ;;  %v1224_v21 = vrot.slane %v1223_v44, 1 }
 0x1bd   :  { %2080 = vrsqrt.f32 %v1243_v2  ;;  %v1249_v37 = vsub.f32 1.5, %v1248_v32  ;;  %vm1261_vm1 = vweird.f32 %v1243_v2  ;;  %v2677_v32 = vld [vmem:[#allocation7 + $0x14] sm:$0xf] }
 0x1be   :  { %v1225_v18 = vadd.f32 %v1224_v21, %v1223_v44  ;;  %v1228_v26 = vmul.f32 0.010204081, %v1132_v11 }
 0x1bf   :  { %v1250_v47 = vmul.f32 %v2079_v31, %v1249_v37 }
 0x1c0   :  { %v1231_v55 = vmul.f32 0.010204081, %v1225_v18  ;;  %v1234_v28 = vmul.f32 %v1228_v26, %v1228_v26 }
 0x1c2   :  { %v1237_v43 = vsub.f32 %v1231_v55, %v1234_v28  ;;  %v1254_v55 = vsel %vm1253_vm9, %v2079_v31, %v1250_v47  ;;  %v2669_v31 = vld [vmem:[#allocation7] sm:$0xff] }
 0x1c3   :  { %v2081_v53 = vpop.eup %2080  ;;  %v1287_v47 = vld [vmem:[#allocation8 + $0x1] ss:$2 sm:$0x7] }
 0x1c4   :  { %v1240_v1 = vmax.f32 %v1237_v43, 0.0  ;;  %v1256_v58 = vmul.f32 %v2081_v53, %v1243_v2  ;;  %vm1262_vm0 = vweird.f32 %v2081_v53  ;;  %v1241_v43 = vld [vmem:[#allocation8] ss:$2 sm:$0x7] }
 0x1c5   :  { %vm1263_vm2 = vmor %vm1261_vm1, %vm1262_vm0 }
 0x1c6   :  { %v1244_v56 = vadd.f32 1e-05, %v1240_v1  ;;  %v1257_v0 = vmul.f32 %v2081_v53, %v1256_v58 }
 0x1c8   :  { %2082 = vrsqrt.f32 %v1244_v56  ;;  %v1258_v42 = vmul.f32 0.5, %v1257_v0  ;;  %vm1271_vm5 = vweird.f32 %v1244_v56 }
 0x1ca   :  { %v1259_v61 = vsub.f32 1.5, %v1258_v42  ;;  %v2671_v42 = vld [vmem:[#allocation7 + $0x8] sm:$0xf] }
 0x1cb   :  { %v3013_v34 = vunpack.c.l.bf16 %v2671_v42 }
 0x1cc   :  { %v1260_v63 = vmul.f32 %v2081_v53, %v1259_v61  ;;  %v2673_v61 = vld [vmem:[#allocation7 + $0xc] sm:$0xff] }
 0x1ce   :  { %v2083_v38 = vpop.eup %2082  ;;  %v1264_v23 = vsel %vm1263_vm2, %v2081_v53, %v1260_v63 }
 0x1cf   :  { %v1266_v39 = vmul.f32 %v2083_v38, %v1244_v56  ;;  %vm1272_vm3 = vweird.f32 %v2083_v38  ;;  %v1278_v11 = vrot.slane %v1264_v23, 7  ;;  %v2689_v23 = vld [vmem:[#allocation7 + $0x30] sm:$0xff] }
 0x1d0   :  { %vm1273_vm7 = vmor %vm1271_vm5, %vm1272_vm3 }
 0x1d1   :  { %v1267_v7 = vmul.f32 %v2083_v38, %v1266_v39  ;;  %v1281_v2 = vsel %vm1280_vm8, %v1254_v55, %v1278_v11  ;;  %v2679_v39 = vld [vmem:[#allocation7 + $0x18] sm:$0xff]  ;;  %v2700_v55 = vld [vmem:[#allocation7 + $0x48] sm:$0xff] }
 0x1d2   :  { %v2740_v11 = vld [vmem:[#allocation7 + $0x84] sm:$0xff] }
 0x1d3   :  { %v1268_v12 = vmul.f32 0.5, %v1267_v7  ;;  %v2683_v7 = vld [vmem:[#allocation7 + $0x24] sm:$0xff]  ;;  %3009 = vst [vmem:[#allocation31_spill] sm:$0xff] %v2740_v11  ;;  %v3012_v11 = vunpack.c.h.bf16 %v2669_v31 }
 0x1d5   :  { %v1269_v44 = vsub.f32 1.5, %v1268_v12 }
 0x1d7   :  { %v1270_v21 = vmul.f32 %v2083_v38, %v1269_v44  ;;  %v2691_v44 = vld [vmem:[#allocation7 + $0x38] sm:$0xf] }
 0x1d9   :  { %v1274_v18 = vsel %vm1273_vm7, %v2083_v38, %v1270_v21  ;;  %v2696_v21 = vld [vmem:[#allocation7 + $0x3c] sm:$0xff] }
 0x1da   :  { %v1279_v28 = vrot.slane %v1274_v18, 6  ;;  %v2698_v18 = vld [vmem:[#allocation7 + $0x44] sm:$0xf] }
 0x1dc   :  { %v1283_v1 = vsel %vm1282_vm10, %v1281_v2, %v1279_v28  ;;  %v2715_v2 = vld [vmem:[#allocation7 + $0x5c] sm:$0xf] }
 0x1dd   :  { %v1285_v53 = vmul.f32 %v1283_v1, %v1241_v43  ;;  %v2717_v43 = vld [vmem:[#allocation7 + $0x60] sm:$0xff] }
 0x1de   :  { %v2734_v1 = vld [vmem:[#allocation7 + $0x80] sm:$0xf] }
 0x1df   :  { %v2660_v16 = vperm.slane %v1285_v53, 1  ;;  %v2662_v58 = vperm.slane %v1285_v53, 2  ;;  %v2666_v56 = vperm.slane %v1285_v53, 0  ;;  %v2706_v53 = vld [vmem:[#allocation7 + $0x50] sm:$0xf]  ;;  %3008 = vst [vmem:[#allocation30_spill] sm:$0xff] %v2734_v1 }
 0x1e1   :  { %v1296_v8 = vmul.f32 %v2660_v16, %v2654_v48  ;;  %v1297_v0 = vmul.f32 %v2662_v58, %v1228_v26  ;;  %v1295_v38 = vmul.f32 %v2666_v56, %v2638_v35  ;;  %v2681_v48 = vld [vmem:[#allocation7 + $0x20] sm:$0xf]  ;;  %v2685_v26 = vld [vmem:[#allocation7 + $0x2c] sm:$0xf]  ;;  %v1372_v62 = vmul.f32 %v2666_v56, %v2363_v13 }
 0x1e2   :  { %v1373_v35 = vmul.f32 %v2660_v16, %v2441_v9  ;;  %v1374_v30 = vmul.f32 %v2662_v58, %v2446_v17  ;;  %v1376_v13 = vmul.f32 %v2660_v16, %v2444_v22  ;;  %v1377_v9 = vmul.f32 %v2662_v58, %v2451_v25 }
 0x1e3   :  { %v1301_v40 = vrot.slane %v1296_v8, 7  ;;  %v1302_v63 = vrot.slane %v1297_v0, 6  ;;  %v2708_v8 = vld [vmem:[#allocation7 + $0x54] sm:$0xff]  ;;  %v2722_v0 = vld [vmem:[#allocation7 + $0x68] sm:$0xf]  ;;  %v3011_v22 = vunpack.c.l.bf16 %v2669_v31  ;;  %v1379_v59 = vmul.f32 %v2660_v16, %v2449_v24 }
 0x1e4   :  { %v1412_v25 = vadd.f32 %v1373_v35, %v3012_v11  ;;  %v3016_v31 = vunpack.c.l.bf16 %v2677_v32  ;;  %v1384_v32 = vmul.f32 %v2666_v56, %v2387_v49 }
 0x1e5   :  { %v1303_v12 = vsel %vm1280_vm8, %v1295_v38, %v1301_v40  ;;  %v2724_v40 = vld [vmem:[#allocation7 + $0x6c] sm:$0xff]  ;;  %v2726_v38 = vld [vmem:[#allocation7 + $0x74] sm:$0xf]  ;;  %v1411_v27 = vadd.f32 %v1372_v62, %v3011_v22  ;;  %v3015_v62 = vunpack.c.h.bf16 %v2673_v61 }
 0x1e6   :  { %v1304_v28 = vsel %vm1282_vm10, %v1303_v12, %v1302_v63  ;;  %3006 = vst [vmem:[#allocation28_spill] sm:$0xff] %v2726_v38  ;;  %v2758_v63 = vld [vmem:[#allocation7 + $0x98] sm:$0xf]  ;;  %v1378_v12 = vmul.f32 %v2666_v56, %v2375_v29  ;;  %v3014_v38 = vunpack.c.l.bf16 %v2673_v61  ;;  %v1381_v29 = vmul.f32 %v2666_v56, %v2379_v33 }
 0x1e7   :  { %v1306_v41 = vsub.f32 %v1287_v47, %v1304_v28  ;;  %v1375_v47 = vmul.f32 %v2666_v56, %v2367_v14  ;;  %v1380_v28 = vmul.f32 %v2662_v58, %v2456_v52  ;;  %v1415_v22 = vadd.f32 %v1376_v13, %v3015_v62 }
 0x1e8   :  { %v1416_v35 = vadd.f32 %v1377_v9, %v3016_v31  ;;  %v1382_v52 = vmul.f32 %v2660_v16, %v2454_v20  ;;  %v1383_v33 = vmul.f32 %v2662_v58, %v2461_v57  ;;  %v3017_v61 = vunpack.c.l.bf16 %v2679_v39 }
 0x1e9   :  { %v2771_v37 = vperm.slane %v1306_v41, 0  ;;  %v2776_v1 = vperm.slane %v1306_v41, 1  ;;  %v2778_v17 = vperm.slane %v1306_v41, 2  ;;  %v1413_v41 = vadd.f32 %v1374_v30, %v3013_v34 }
 0x1ea   :  { %v1414_v14 = vadd.f32 %v1375_v47, %v3014_v38  ;;  %v1417_v11 = vadd.f32 %v1378_v12, %v3017_v61  ;;  %v1385_v38 = vmul.f32 %v2660_v16, %v2459_v15  ;;  %v3018_v47 = vunpack.c.h.bf16 %v2679_v39 }
 0x1eb   :  { %v1457_v24 = vadd.f32 %v2771_v37, %v1411_v27  ;;  %v1458_v42 = vadd.f32 %v2776_v1, %v1412_v25  ;;  %v1459_v34 = vadd.f32 %v2778_v17, %v1413_v41  ;;  %v1461_v27 = vadd.f32 %v2776_v1, %v1415_v22 }
 0x1ec   :  { %v1460_v30 = vadd.f32 %v2771_v37, %v1414_v14  ;;  %v1418_v13 = vadd.f32 %v1379_v59, %v3018_v47  ;;  %v1462_v9 = vadd.f32 %v2778_v17, %v1416_v35  ;;  %v3019_v20 = vunpack.c.l.bf16 %v2681_v48 }
 0x1ed   :  { %v3020_v57 = vunpack.c.l.bf16 %v2683_v7  ;;  %v1463_v12 = vadd.f32 %v2771_v37, %v1417_v11  ;;  %v1496_v41 = vmax.f32 %v1457_v24, 0.0  ;;  %v1497_v49 = vmax.f32 %v1458_v42, 0.0 }
 0x1ee   :  { %v1419_v14 = vadd.f32 %v1380_v28, %v3019_v20  ;;  %v1464_v62 = vadd.f32 %v2776_v1, %v1418_v13  ;;  %v1498_v22 = vmax.f32 %v1459_v34, 0.0  ;;  %v1499_v31 = vmax.f32 %v1460_v30, 0.0 }
 0x1ef   :  { %v1420_v25 = vadd.f32 %v1381_v29, %v3020_v57  ;;  %v1386_v15 = vmul.f32 %v2662_v58, %v2471_v3  ;;  %v3021_v59 = vunpack.c.h.bf16 %v2683_v7  ;;  %v1500_v28 = vmax.f32 %v1461_v27, 0.0  ;;  %1535 = vst [vmem:[#allocation10] sm:$0xff] %v1496_v41  ;;  %v3028_v41 = vld [vmem:[#allocation15_spill] sm:$0xff] }
 0x1f0   :  { %v1465_v48 = vadd.f32 %v2778_v17, %v1419_v14  ;;  %v1387_v29 = vmul.f32 %v2666_v56, %v2391_v60  ;;  %v3022_v24 = vunpack.c.l.bf16 %v2685_v26  ;;  %v1501_v34 = vmax.f32 %v1462_v9, 0.0  ;;  %1536 = vst [vmem:[#allocation10 + $0x8] sm:$0xff] %v1497_v49 }
 0x1f1   :  { %v1421_v39 = vadd.f32 %v1382_v52, %v3021_v59  ;;  %v1466_v42 = vadd.f32 %v2771_v37, %v1420_v25  ;;  %v1388_v3 = vmul.f32 %v2660_v16, %v2466_v6  ;;  %v3023_v7 = vunpack.c.l.bf16 %v2689_v23  ;;  %1537 = vst [vmem:[#allocation10 + $0x10] sm:$0xff] %v1498_v22 }
 0x1f2   :  { %v1422_v35 = vadd.f32 %v1383_v33, %v3022_v24  ;;  %v1502_v61 = vmax.f32 %v1463_v12, 0.0  ;;  %v1389_v60 = vmul.f32 %v2662_v58, %v2492_v45  ;;  %v3024_v26 = vunpack.c.h.bf16 %v2689_v23  ;;  %1538 = vst [vmem:[#allocation10 + $0x18] sm:$0xff] %v1499_v31 }
 0x1f3   :  { %v1423_v30 = vadd.f32 %v1384_v32, %v3023_v7  ;;  %v1467_v52 = vadd.f32 %v2776_v1, %v1421_v39  ;;  %v1503_v27 = vmax.f32 %v1464_v62, 0.0  ;;  %v1390_v6 = vmul.f32 %v2666_v56, %v2400_v10  ;;  %1539 = vst [vmem:[#allocation10 + $0x20] sm:$0xff] %v1500_v28 }
 0x1f4   :  { %v1424_v33 = vadd.f32 %v1385_v38, %v3024_v26  ;;  %v1468_v11 = vadd.f32 %v2778_v17, %v1422_v35  ;;  %v3025_v47 = vunpack.c.l.bf16 %v2691_v44  ;;  %v1504_v9 = vmax.f32 %v1465_v48, 0.0  ;;  %1540 = vst [vmem:[#allocation10 + $0x28] sm:$0xff] %v1501_v34  ;;  %v3032_v35 = vld [vmem:[#allocation16_spill] sm:$0xff] }
 0x1f5   :  { %v1469_v13 = vadd.f32 %v2771_v37, %v1423_v30  ;;  %v1391_v45 = vmul.f32 %v2660_v16, %v2485_v19  ;;  %v3026_v23 = vunpack.c.l.bf16 %v2696_v21  ;;  %v1505_v14 = vmax.f32 %v1466_v42, 0.0  ;;  %1541 = vst [vmem:[#allocation10 + $0x30] sm:$0xff] %v1502_v61 }
 0x1f6   :  { %v1425_v32 = vadd.f32 %v1386_v15, %v3025_v47  ;;  %v1470_v20 = vadd.f32 %v2776_v1, %v1424_v33  ;;  %v1392_v10 = vmul.f32 %v2662_v58, %v2588_v50  ;;  %v3027_v44 = vunpack.c.h.bf16 %v2696_v21  ;;  %1542 = vst [vmem:[#allocation10 + $0x38] sm:$0xff] %v1503_v27  ;;  %v3036_v27 = vld [vmem:[#allocation17_spill] sm:$0xff] }
 0x1f7   :  { %v1426_v38 = vadd.f32 %v1387_v29, %v3026_v23  ;;  %v1506_v12 = vmax.f32 %v1467_v52, 0.0  ;;  %v1393_v19 = vmul.f32 %v2666_v56, %v3028_v41  ;;  %v3029_v62 = vunpack.c.l.bf16 %v2698_v18  ;;  %1543 = vst [vmem:[#allocation10 + $0x40] sm:$0xff] %v1504_v9 }
 0x1f8   :  { %v1427_v57 = vadd.f32 %v1388_v3, %v3027_v44  ;;  %v1471_v25 = vadd.f32 %v2778_v17, %v1425_v32  ;;  %v1507_v31 = vmax.f32 %v1468_v11, 0.0  ;;  %v1394_v50 = vmul.f32 %v2660_v16, %v2548_v5  ;;  %1544 = vst [vmem:[#allocation10 + $0x48] sm:$0xff] %v1505_v14 }
 0x1f9   :  { %v1428_v49 = vadd.f32 %v1389_v60, %v3029_v62  ;;  %v1472_v22 = vadd.f32 %v2771_v37, %v1426_v38  ;;  %v3030_v21 = vunpack.c.l.bf16 %v2700_v55  ;;  %v1508_v39 = vmax.f32 %v1469_v13, 0.0  ;;  %1545 = vst [vmem:[#allocation10 + $0x50] sm:$0xff] %v1506_v12  ;;  %v3039_v38 = vld [vmem:[#allocation23_spill] sm:$0xff]  ;;  %v3043_v62 = vld [vmem:[#allocation21_spill] sm:$0xff] }
 0x1fa   :  { %v1473_v59 = vadd.f32 %v2776_v1, %v1427_v57  ;;  %v1395_v48 = vmul.f32 %v2662_v58, %v2598_v36  ;;  %v3031_v18 = vunpack.c.h.bf16 %v2700_v55  ;;  %v1509_v24 = vmax.f32 %v1470_v20, 0.0  ;;  %1546 = vst [vmem:[#allocation10 + $0x58] sm:$0xff] %v1507_v31  ;;  %v3041_v57 = vld [vmem:[#allocation18_spill] sm:$0xff] }
 0x1fb   :  { %v1429_v15 = vadd.f32 %v1390_v6, %v3030_v21  ;;  %v1474_v29 = vadd.f32 %v2778_v17, %v1428_v49  ;;  %v1396_v5 = vmul.f32 %v2666_v56, %v3032_v35  ;;  %v3033_v42 = vunpack.c.l.bf16 %v2706_v53  ;;  %1547 = vst [vmem:[#allocation10 + $0x60] sm:$0xff] %v1508_v39  ;;  %v3045_v21 = vld [vmem:[#allocation25_spill] sm:$0xff] }
 0x1fc   :  { %v1430_v28 = vadd.f32 %v1391_v45, %v3031_v18  ;;  %v1510_v7 = vmax.f32 %v1471_v25, 0.0  ;;  %v1397_v36 = vmul.f32 %v2660_v16, %v2562_v51  ;;  %v3034_v55 = vunpack.c.l.bf16 %v2708_v8  ;;  %1548 = vst [vmem:[#allocation10 + $0x68] sm:$0xff] %v1509_v24  ;;  %v3047_v18 = vld [vmem:[#allocation19_spill] sm:$0xff] }
 0x1fd   :  { %v1431_v34 = vadd.f32 %v1392_v10, %v3033_v42  ;;  %v1475_v3 = vadd.f32 %v2771_v37, %v1429_v15  ;;  %v1511_v61 = vmax.f32 %v1472_v22, 0.0  ;;  %v1398_v60 = vmul.f32 %v2662_v58, %v2607_v46 }
 0x1fe   :  { %v1432_v30 = vadd.f32 %v1393_v19, %v3034_v55  ;;  %v1476_v52 = vadd.f32 %v2776_v1, %v1430_v28  ;;  %v3035_v53 = vunpack.c.h.bf16 %v2708_v8  ;;  %v1512_v11 = vmax.f32 %v1473_v59, 0.0  ;;  %1549 = vst [vmem:[#allocation10 + $0x70] sm:$0xff] %v1510_v7  ;;  %v3051_v7 = vld [vmem:[#allocation29_spill] sm:$0xff] }
 0x1ff   :  { %v1477_v33 = vadd.f32 %v2778_v17, %v1431_v34  ;;  %v1399_v51 = vmul.f32 %v2666_v56, %v3036_v27  ;;  %v3037_v6 = vunpack.c.l.bf16 %v2715_v2  ;;  %v1513_v13 = vmax.f32 %v1474_v29, 0.0  ;;  %1550 = vst [vmem:[#allocation10 + $0x78] sm:$0xff] %v1511_v61  ;;  %v3048_v29 = vld [vmem:[#allocation28_spill] sm:$0xff]  ;;  %v3050_v34 = vld [vmem:[#allocation22_spill] sm:$0xff] }
 0x200   :  { %v1433_v26 = vadd.f32 %v1394_v50, %v3035_v53  ;;  %v1478_v32 = vadd.f32 %v2771_v37, %v1432_v30  ;;  %v1400_v46 = vmul.f32 %v2660_v16, %v2573_v54  ;;  %v3038_v8 = vunpack.c.l.bf16 %v2717_v43  ;;  %1551 = vst [vmem:[#allocation10 + $0x80] sm:$0xff] %v1512_v11  ;;  %v3055_v11 = vld [vmem:[#allocation20_spill] sm:$0xff] }
 0x201   :  { %v1434_v47 = vadd.f32 %v1395_v48, %v3037_v6  ;;  %v1514_v23 = vmax.f32 %v1475_v3, 0.0  ;;  %v1401_v20 = vmul.f32 %v2662_v58, %v3039_v38  ;;  %v3040_v2 = vunpack.c.h.bf16 %v2717_v43  ;;  %1552 = vst [vmem:[#allocation10 + $0x88] sm:$0xff] %v1513_v13 }
 0x202   :  { %v1435_v9 = vadd.f32 %v1396_v5, %v3038_v8  ;;  %v1479_v45 = vadd.f32 %v2776_v1, %v1433_v26  ;;  %v1515_v44 = vmax.f32 %v1476_v52, 0.0  ;;  %v1402_v54 = vmul.f32 %v2666_v56, %v3041_v57  ;;  %v3053_v52 = vld [vmem:[#allocation26_spill] sm:$0xff] }
 0x203   :  { %v1436_v14 = vadd.f32 %v1397_v36, %v3040_v2  ;;  %v1480_v10 = vadd.f32 %v2778_v17, %v1434_v47  ;;  %v3042_v25 = vunpack.c.l.bf16 %v2722_v0  ;;  %v1516_v19 = vmax.f32 %v1477_v33, 0.0  ;;  %1553 = vst [vmem:[#allocation10 + $0x90] sm:$0xff] %v1514_v23  ;;  %v3061_v2 = vld [vmem:[#allocation27_spill] sm:$0xff] }
 0x204   :  { %v1481_v41 = vadd.f32 %v2771_v37, %v1435_v9  ;;  %v1403_v49 = vmul.f32 %v2660_v16, %v3043_v62  ;;  %v3044_v43 = vunpack.c.l.bf16 %v2724_v40  ;;  %v1517_v50 = vmax.f32 %v1478_v32, 0.0  ;;  %1554 = vst [vmem:[#allocation10 + $0x98] sm:$0xff] %v1515_v44  ;;  %v3059_v9 = vld [vmem:[#allocation31_spill] sm:$0xff] }
 0x205   :  { %v1437_v12 = vadd.f32 %v1398_v60, %v3042_v25  ;;  %v1482_v31 = vadd.f32 %v2776_v1, %v1436_v14  ;;  %v1404_v15 = vmul.f32 %v2662_v58, %v3045_v21  ;;  %v3046_v0 = vunpack.c.h.bf16 %v2724_v40  ;;  %1555 = vst [vmem:[#allocation10 + $0xa0] sm:$0xff] %v1516_v19 }
 0x206   :  { %v1438_v22 = vadd.f32 %v1399_v51, %v3044_v43  ;;  %v1518_v48 = vmax.f32 %v1479_v45, 0.0  ;;  %v1405_v28 = vmul.f32 %v2666_v56, %v3047_v18  ;;  %v3049_v24 = vunpack.c.l.bf16 %v3048_v29  ;;  %1556 = vst [vmem:[#allocation10 + $0xa8] sm:$0xff] %v1517_v50  ;;  %v3056_v51 = vld [vmem:[#allocation30_spill] sm:$0xff] }
 0x207   :  { %v1439_v59 = vadd.f32 %v1400_v46, %v3046_v0  ;;  %v1483_v39 = vadd.f32 %v2778_v17, %v1437_v12  ;;  %v1519_v42 = vmax.f32 %v1480_v10, 0.0  ;;  %v1406_v3 = vmul.f32 %v2660_v16, %v3050_v34  ;;  %v3058_v46 = vld [vmem:[#allocation24_spill] sm:$0xff] }
 0x208   :  { %v1440_v35 = vadd.f32 %v1401_v20, %v3049_v24  ;;  %v1484_v5 = vadd.f32 %v2771_v37, %v1438_v22  ;;  %v3052_v40 = vunpack.c.l.bf16 %v3051_v7  ;;  %v1520_v30 = vmax.f32 %v1481_v41, 0.0  ;;  %1557 = vst [vmem:[#allocation10 + $0xb0] sm:$0xff] %v1518_v48 }
 0x209   :  { %v1485_v55 = vadd.f32 %v2776_v1, %v1439_v59  ;;  %v1407_v61 = vmul.f32 %v2662_v58, %v3053_v52  ;;  %v3054_v60 = vunpack.c.h.bf16 %v3051_v7  ;;  %v1521_v33 = vmax.f32 %v1482_v31, 0.0  ;;  %1558 = vst [vmem:[#allocation10 + $0xb8] sm:$0xff] %v1519_v42 }
 0x20a   :  { %v1441_v36 = vadd.f32 %v1402_v54, %v3052_v40  ;;  %v1486_v26 = vadd.f32 %v2778_v17, %v1440_v35  ;;  %v1408_v27 = vmul.f32 %v2666_v56, %v3055_v11  ;;  %v3057_v6 = vunpack.c.l.bf16 %v3056_v51  ;;  %1559 = vst [vmem:[#allocation10 + $0xc0] sm:$0xff] %v1520_v30  ;;  %v3063_v54 = vld [vmem:[#allocation32_spill] sm:$0xff] }
 0x20b   :  { %v1442_v53 = vadd.f32 %v1403_v49, %v3054_v60  ;;  %v1522_v13 = vmax.f32 %v1483_v39, 0.0  ;;  %v1409_v8 = vmul.f32 %v2660_v16, %v3058_v46  ;;  %v3060_v45 = vunpack.c.l.bf16 %v3059_v9  ;;  %1560 = vst [vmem:[#allocation10 + $0xc8] sm:$0xff] %v1521_v33 }
 0x20c   :  { %v1443_v47 = vadd.f32 %v1404_v15, %v3057_v6  ;;  %v1487_v32 = vadd.f32 %v2771_v37, %v1441_v36  ;;  %v1523_v20 = vmax.f32 %v1484_v5, 0.0  ;;  %v1410_v56 = vmul.f32 %v2662_v58, %v3061_v2 }
 0x20d   :  { %v1444_v23 = vadd.f32 %v1405_v28, %v3060_v45  ;;  %v1488_v38 = vadd.f32 %v2776_v1, %v1442_v53  ;;  %v3062_v14 = vunpack.c.h.bf16 %v3059_v9  ;;  %v1524_v57 = vmax.f32 %v1485_v55, 0.0  ;;  %1561 = vst [vmem:[#allocation10 + $0xd0] sm:$0xff] %v1522_v13 }
 0x20e   :  { %v1489_v44 = vadd.f32 %v2778_v17, %v1443_v47  ;;  %v3064_v25 = vunpack.c.l.bf16 %v3063_v54  ;;  %v1525_v41 = vmax.f32 %v1486_v26, 0.0  ;;  %v3065_v19 = vunpack.c.l.bf16 %v2751_v4  ;;  %1562 = vst [vmem:[#allocation10 + $0xd8] sm:$0xff] %v1523_v20 }
 0x20f   :  { %v1445_v10 = vadd.f32 %v1406_v3, %v3062_v14  ;;  %v1490_v12 = vadd.f32 %v2771_v37, %v1444_v23  ;;  %v1526_v58 = vmax.f32 %v1487_v32, 0.0  ;;  %v3066_v43 = vunpack.c.h.bf16 %v2751_v4  ;;  %1563 = vst [vmem:[#allocation10 + $0xe0] sm:$0xff] %v1524_v57 }
 0x210   :  { %v1446_v16 = vadd.f32 %v1407_v61, %v3064_v25  ;;  %v1447_v62 = vadd.f32 %v1408_v27, %v3065_v19  ;;  %v1527_v50 = vmax.f32 %v1488_v38, 0.0  ;;  %v3067_v21 = vunpack.c.l.bf16 %v2758_v63  ;;  %1564 = vst [vmem:[#allocation10 + $0xe8] sm:$0xff] %v1525_v41 }
 0x211   :  { %v1491_v49 = vadd.f32 %v2776_v1, %v1445_v10  ;;  %v1448_v22 = vadd.f32 %v1409_v8, %v3066_v43  ;;  %v1528_v59 = vmax.f32 %v1489_v44, 0.0  ;;  %v1529_v48 = vmax.f32 %v1490_v12, 0.0  ;;  %1565 = vst [vmem:[#allocation10 + $0xf0] sm:$0xff] %v1526_v58 }
 0x212   :  { %v1492_v31 = vadd.f32 %v2778_v17, %v1446_v16  ;;  %v1449_v15 = vadd.f32 %v1410_v56, %v3067_v21  ;;  %v1493_v0 = vadd.f32 %v2771_v37, %v1447_v62  ;;  %1566 = vst [vmem:[#allocation10 + $0xf8] sm:$0xff] %v1527_v50 }
 0x213   :  { %v1494_v39 = vadd.f32 %v2776_v1, %v1448_v22  ;;  %v1530_v28 = vmax.f32 %v1491_v49, 0.0  ;;  %1567 = vst [vmem:[#allocation10 + $0x100] sm:$0xff] %v1528_v59 }
 0x214   :  { %v1495_v18 = vadd.f32 %v2778_v17, %v1449_v15  ;;  %v1531_v4 = vmax.f32 %v1492_v31, 0.0  ;;  %v1532_v29 = vmax.f32 %v1493_v0, 0.0  ;;  %1568 = vst [vmem:[#allocation10 + $0x108] sm:$0xff] %v1529_v48 }
 0x215   :  { %v1533_v37 = vmax.f32 %v1494_v39, 0.0  ;;  %1569 = vst [vmem:[#allocation10 + $0x110] sm:$0xff] %v1530_v28 }
 0x216   :  { %v1534_v63 = vmax.f32 %v1495_v18, 0.0  ;;  %1570 = vst [vmem:[#allocation10 + $0x118] sm:$0xff] %v1531_v4 }
 0x217   :  { %1571 = vst [vmem:[#allocation10 + $0x120] sm:$0xff] %v1532_v29 }
 0x218   :  { %1572 = vst [vmem:[#allocation10 + $0x128] sm:$0xff] %v1533_v37 }
 0x219   :  { %1573 = vst [vmem:[#allocation10 + $0x130] sm:$0xff] %v1534_v63 }
 0x21a   :  { %1586 = dma.vmem_to_hbm [thread:$0]  %s1579_s3, 4992, %s1581_s11, [#allocation4], %s2219_s12, %s2219_s12, %s2220_s13  }
 0x21b   :  { %2210 = dma.done.wait [#allocation4], 4992  }
 0x21c   :  { %2211 = vsyncadd [#allocation4], 4294962304 }
 0x21d   :  { %1591 = vsyncpa [#allocation3], 1 }
 0x21e   :  { %1592 = vsyncpa [#allocation6], 1 }
 0x21f   :  { %1593 = vsyncpa [#allocation9], 1 }
 0x220   :  { %1594 = vsyncpa [#allocation4], 1 }

// kernel: tpu_custom_call.1
= control target key start
LH: loop header
LB: loop body
LE: loop exit
PB: predicated region body
PF: predicated region fallthrough
CT: control target
= control target key end

     0   :  { %9 = vsyncpa [#allocation3], 0  ;;  %s2968_s0 = inlined_call_operand.hbm [shape: bf16[104,384], index: 0, kind: input, shape index: {}]   ;;  %s2969_s1 = inlined_call_operand.hbm [shape: bf16[384,384], index: 1, kind: input, shape index: {}]   ;;  %s2970_s2 = inlined_call_operand.hbm [shape: bf16[104,384], index: 2, kind: input, shape index: {}]   ;;  %s2971_s3 = inlined_call_operand.hbm [shape: f32[2,384], index: 3, kind: input, shape index: {}]   ;;  %s2972_s4 = inlined_call_operand.hbm [shape: f32[104,384], index: 4, kind: output, shape index: {}]  }
   0x1   :  { %10 = vsyncpa [#allocation6], 0 }
   0x2   :  { %11 = vsyncpa [#allocation9], 0 }
   0x3   :  { %12 = vsyncpa [#allocation4], 0  ;;  %s30_s17 = sshll.u32 %s2969_s1, 4  ;;  %s2212_s18 = smov [#allocation5]   ;;  %s31_s17 = int_to_ptr.hbm [resolvable:$true] %s30_s17 }
   0x4   :  { %s32_s19 = sshll.u32 %s2212_s18, 4  ;;  %s17_s22 = sshll.u32 %s2968_s0, 4  ;;  %s33_s19 = int_to_ptr.vmem [resolvable:$true] %s32_s19  ;;  %s18_s22 = int_to_ptr.hbm [resolvable:$true] %s17_s22 }
   0x5   :  { %s2213_s23 = smov 192   ;;  %s2214_s24 = smov 12  }
   0x6   :  { %38 = dma.hbm_to_vmem [thread:$0]  %s31_s17, 9216, %s33_s19, [#allocation6], %s2213_s23, %s2213_s23, %s2214_s24  }
   0x7   :  { %s2215_s25 = smov [#allocation2]   ;;  %s43_s29 = sshll.u32 %s2970_s2, 4  ;;  %s44_s29 = int_to_ptr.hbm [resolvable:$true] %s43_s29 }
   0x8   :  { %s19_s26 = sshll.u32 %s2215_s25, 4  ;;  %s57_s5 = sshll.u32 %s2971_s3, 4  ;;  %s20_s26 = int_to_ptr.vmem [resolvable:$true] %s19_s26  ;;  %s58_s5 = int_to_ptr.hbm [resolvable:$true] %s57_s5 }
   0x9   :  { %25 = dma.hbm_to_vmem [thread:$0]  %s18_s22, 2496, %s20_s26, [#allocation3], %s2213_s23, %s2213_s23, %s2214_s24  }
   0xa   :  { %s2216_s6 = smov [#allocation7]   ;;  %s2217_s0 = smov [#allocation8]  }
   0xb   :  { %s45_s7 = sshll.u32 %s2216_s6, 4  ;;  %s59_s8 = sshll.u32 %s2217_s0, 4  ;;  %s46_s7 = int_to_ptr.vmem [resolvable:$true] %s45_s7  ;;  %s60_s8 = int_to_ptr.vmem [resolvable:$true] %s59_s8 }
   0xc   :  { %51 = dma.hbm_to_vmem [thread:$0]  %s44_s29, 2496, %s46_s7, [#allocation6], %s2213_s23, %s2213_s23, %s2214_s24  }
   0xd   :  { %62 = dma.hbm_to_vmem [thread:$0]  %s58_s5, 96, %s60_s8, [#allocation9]  }
   0xe   :  { %2204 = dma.done.wait [#allocation3], 2496  }
   0xf   :  { %2205 = vsyncadd [#allocation3], 4294964800 }
  0x10   :  { %2206 = dma.done.wait [#allocation6], 11712  }
  0x11   :  { %2207 = vsyncadd [#allocation6], 4294955584 }
  0x12   :  { %2208 = dma.done.wait [#allocation9], 96  }
  0x13   :  { %2209 = vsyncadd [#allocation9], 4294967200  ;;  %v1753_v0 = vld [vmem:[#allocation5 + $0xa8] sm:$0xf]  ;;  %v1995_v1 = vld [vmem:[#allocation5 + $0xb0] sm:$0xf0] }
  0x14   :  { %v1741_v2 = vld [vmem:[#allocation5 + $0x90] sm:$0xf]  ;;  %v1754_v3 = vor.u32 %v1995_v1, %v1753_v0  ;;  %v1992_v4 = vld [vmem:[#allocation5 + $0x98] sm:$0xf0]  ;;  %v1729_v6 = vld [vmem:[#allocation5 + $0x78] sm:$0xf] }
  0x15   :  { %v1742_v5 = vor.u32 %v1992_v4, %v1741_v2  ;;  %v1989_v7 = vld [vmem:[#allocation5 + $0x80] sm:$0xf0]  ;;  %v1717_v9 = vld [vmem:[#allocation5 + $0x60] sm:$0xf]  ;;  %v1986_v10 = vld [vmem:[#allocation5 + $0x68] sm:$0xf0] }
  0x16   :  { %692 = vmatpush.bf16.msra.mxu0 %v1754_v3  ;;  %2045 = vmatpush.bf16.msra.mxu1 %v1754_v3  ;;  %v1730_v8 = vor.u32 %v1989_v7, %v1729_v6  ;;  %v1718_v11 = vor.u32 %v1986_v10, %v1717_v9  ;;  %v1705_v12 = vld [vmem:[#allocation5 + $0x48] sm:$0xf]  ;;  %v1983_v13 = vld [vmem:[#allocation5 + $0x50] sm:$0xf0]  ;;  %v1693_v15 = vld [vmem:[#allocation5 + $0x30] sm:$0xf] }
  0x17   :  { %2046 = vmatpush.bf16.msra.mxu2 %v1754_v3  ;;  %2047 = vmatpush.bf16.msra.mxu3 %v1754_v3  ;;  %v1706_v14 = vor.u32 %v1983_v13, %v1705_v12  ;;  %v1980_v16 = vld [vmem:[#allocation5 + $0x38] sm:$0xf0]  ;;  %v1681_v18 = vld [vmem:[#allocation5 + $0x18] sm:$0xf]  ;;  %v1977_v19 = vld [vmem:[#allocation5 + $0x20] sm:$0xf0] }
  0x18   :  { %v1694_v17 = vor.u32 %v1980_v16, %v1693_v15  ;;  %v1682_v20 = vor.u32 %v1977_v19, %v1681_v18  ;;  %v1669_v21 = vld [vmem:[#allocation5] sm:$0xf]  ;;  %v1974_v22 = vld [vmem:[#allocation5 + $0x8] sm:$0xf0]  ;;  %v1755_v24 = vld [vmem:[#allocation5 + $0xb4] sm:$0xf0] }
  0x19   :  { %v1994_v23 = vld [vmem:[#allocation5 + $0xac] sm:$0xf]  ;;  %v1597_v25 = vld [vmem:[#allocation2] sm:$0xf]  ;;  %v2258_v26 = vld [vmem:[#allocation2 + $0x90] sm:$0xff]  ;;  %v1670_v30 = vor.u32 %v1974_v22, %v1669_v21  ;;  %vm1280_vm8 = vcmask 1040384  }
  0x1a   :  { %693 = vmatpush.bf16.msra.mxu0 %v1742_v5  ;;  %2048 = vmatpush.bf16.msra.mxu1 %v1742_v5  ;;  %v1956_v27 = vld [vmem:[#allocation2 + $0x8] sm:$0xf0]  ;;  %v1945_v28 = vld [vmem:[#allocation5 + $0x228] sm:$0xf]  ;;  %v2043_v29 = vld [vmem:[#allocation5 + $0x230] sm:$0xf0]  ;;  %v263_v37 = vunpack.c.l.b16 %v2258_v26  ;;  %v1758_v38 = vor.u32 %v1994_v23, %v1755_v24 }
  0x1b   :  { %2049 = vmatpush.bf16.msra.mxu2 %v1742_v5  ;;  %2050 = vmatpush.bf16.msra.mxu3 %v1742_v5  ;;  %v1621_v31 = vld [vmem:[#allocation2 + $0x30] sm:$0xf]  ;;  %v1962_v32 = vld [vmem:[#allocation2 + $0x38] sm:$0xf0]  ;;  %v1645_v33 = vld [vmem:[#allocation2 + $0x60] sm:$0xf]  ;;  %v1946_v39 = vor.u32 %v2043_v29, %v1945_v28  ;;  %v2261_v43 = vor.u32 %v1956_v27, %v1597_v25 }
  0x1c   :  { %v1968_v34 = vld [vmem:[#allocation2 + $0x68] sm:$0xf0]  ;;  %v1849_v35 = vld [vmem:[#allocation5 + $0x168] sm:$0xf]  ;;  %v2019_v36 = vld [vmem:[#allocation5 + $0x170] sm:$0xf0]  ;;  %v2263_v44 = vor.u32 %v1962_v32, %v1621_v31  ;;  %v2267_v53 = vpack.c.b16 %v263_v37, %v263_v37 }
  0x1d   :  { %v2018_v40 = vld [vmem:[#allocation5 + $0x16c] sm:$0xf]  ;;  %v1851_v41 = vld [vmem:[#allocation5 + $0x174] sm:$0xf0]  ;;  %v1991_v42 = vld [vmem:[#allocation5 + $0x94] sm:$0xf]  ;;  %v2265_v48 = vor.u32 %v1968_v34, %v1645_v33  ;;  %v1850_v49 = vor.u32 %v2019_v36, %v1849_v35 }
  0x1e   :  { %694 = vmatpush.bf16.msra.mxu0 %v1730_v8  ;;  %2051 = vmatpush.bf16.msra.mxu1 %v1730_v8  ;;  %v1743_v45 = vld [vmem:[#allocation5 + $0x9c] sm:$0xf0]  ;;  %v1933_v46 = vld [vmem:[#allocation5 + $0x210] sm:$0xf]  ;;  %v2040_v47 = vld [vmem:[#allocation5 + $0x218] sm:$0xf0]  ;;  %v1854_v50 = vor.u32 %v2018_v40, %v1851_v41 }
  0x1f   :  { %2052 = vmatpush.bf16.msra.mxu2 %v1730_v8  ;;  %2053 = vmatpush.bf16.msra.mxu3 %v1730_v8  ;;  %v1837_v51 = vld [vmem:[#allocation5 + $0x150] sm:$0xf]  ;;  %v2016_v52 = vld [vmem:[#allocation5 + $0x158] sm:$0xf0]  ;;  %v1746_v54 = vor.u32 %v1991_v42, %v1743_v45  ;;  %v1934_v55 = vor.u32 %v2040_v47, %v1933_v46  ;;  %v2015_v56 = vld [vmem:[#allocation5 + $0x154] sm:$0xf] }
  0x20   :  { %v1839_v57 = vld [vmem:[#allocation5 + $0x15c] sm:$0xf0]  ;;  %v1988_v58 = vld [vmem:[#allocation5 + $0x7c] sm:$0xf]  ;;  %v1731_v59 = vld [vmem:[#allocation5 + $0x84] sm:$0xf0]  ;;  %v1838_v62 = vor.u32 %v2016_v52, %v1837_v51 }
  0x21   :  { %v1921_v60 = vld [vmem:[#allocation5 + $0x1f8] sm:$0xf]  ;;  %v2037_v61 = vld [vmem:[#allocation5 + $0x200] sm:$0xf0]  ;;  %v1842_v63 = vor.u32 %v2015_v56, %v1839_v57  ;;  %v1734_v2 = vor.u32 %v1988_v58, %v1731_v59  ;;  %v2012_v4 = vld [vmem:[#allocation5 + $0x13c] sm:$0xf] }
  0x22   :  { %695 = vmatpush.bf16.msra.mxu0 %v1718_v11  ;;  %2054 = vmatpush.bf16.msra.mxu1 %v1718_v11  ;;  %v1825_v0 = vld [vmem:[#allocation5 + $0x138] sm:$0xf]  ;;  %v2013_v1 = vld [vmem:[#allocation5 + $0x140] sm:$0xf0]  ;;  %v1922_v3 = vor.u32 %v2037_v61, %v1921_v60  ;;  %v1827_v5 = vld [vmem:[#allocation5 + $0x144] sm:$0xf0] }
  0x23   :  { %2055 = vmatpush.bf16.msra.mxu2 %v1718_v11  ;;  %2056 = vmatpush.bf16.msra.mxu3 %v1718_v11  ;;  %v1985_v6 = vld [vmem:[#allocation5 + $0x64] sm:$0xf]  ;;  %v1719_v7 = vld [vmem:[#allocation5 + $0x6c] sm:$0xf0]  ;;  %v1909_v8 = vld [vmem:[#allocation5 + $0x1e0] sm:$0xf]  ;;  %v1826_v10 = vor.u32 %v2013_v1, %v1825_v0  ;;  %v1830_v12 = vor.u32 %v2012_v4, %v1827_v5 }
  0x24   :  { %v2034_v9 = vld [vmem:[#allocation5 + $0x1e8] sm:$0xf0]  ;;  %v1813_v11 = vld [vmem:[#allocation5 + $0x120] sm:$0xf]  ;;  %v1815_v15 = vld [vmem:[#allocation5 + $0x12c] sm:$0xf0]  ;;  %v1722_v16 = vor.u32 %v1985_v6, %v1719_v7 }
  0x25   :  { %v2010_v13 = vld [vmem:[#allocation5 + $0x128] sm:$0xf0]  ;;  %v1707_v19 = vld [vmem:[#allocation5 + $0x54] sm:$0xf0]  ;;  %v1959_v21 = vld [vmem:[#allocation2 + $0x20] sm:$0xf0] }
  0x26   :  { %696 = vmatpush.bf16.msra.mxu0 %v1706_v14  ;;  %2057 = vmatpush.bf16.msra.mxu1 %v1706_v14  ;;  %v1982_v18 = vld [vmem:[#allocation5 + $0x4c] sm:$0xf]  ;;  %v1897_v22 = vld [vmem:[#allocation5 + $0x1c8] sm:$0xf]  ;;  %v2031_v23 = vld [vmem:[#allocation5 + $0x1d0] sm:$0xf0]  ;;  %v1814_v24 = vor.u32 %v2010_v13, %v1813_v11 }
  0x27   :  { %2058 = vmatpush.bf16.msra.mxu2 %v1706_v14  ;;  %2059 = vmatpush.bf16.msra.mxu3 %v1706_v14  ;;  %v2009_v14 = vld [vmem:[#allocation5 + $0x124] sm:$0xf]  ;;  %v1633_v25 = vld [vmem:[#allocation2 + $0x48] sm:$0xf]  ;;  %v1965_v27 = vld [vmem:[#allocation2 + $0x50] sm:$0xf0]  ;;  %v1710_v33 = vor.u32 %v1982_v18, %v1707_v19  ;;  %v1898_v34 = vor.u32 %v2031_v23, %v1897_v22 }
  0x28   :  { %v1657_v28 = vld [vmem:[#allocation2 + $0x78] sm:$0xf]  ;;  %v1818_v29 = vor.u32 %v2009_v14, %v1815_v15  ;;  %v1801_v31 = vld [vmem:[#allocation5 + $0x108] sm:$0xf]  ;;  %v2007_v32 = vld [vmem:[#allocation5 + $0x110] sm:$0xf0] }
  0x29   :  { %v2006_v35 = vld [vmem:[#allocation5 + $0x10c] sm:$0xf]  ;;  %v1803_v36 = vld [vmem:[#allocation5 + $0x114] sm:$0xf0]  ;;  %v1979_v37 = vld [vmem:[#allocation5 + $0x34] sm:$0xf]  ;;  %v1802_v46 = vor.u32 %v2007_v32, %v1801_v31 }
  0x2a   :  { %697 = vmatpush.bf16.msra.mxu0 %v1694_v17  ;;  %2060 = vmatpush.bf16.msra.mxu1 %v1694_v17  ;;  %v1695_v40 = vld [vmem:[#allocation5 + $0x3c] sm:$0xf0]  ;;  %v1885_v41 = vld [vmem:[#allocation5 + $0x1b0] sm:$0xf]  ;;  %v2028_v42 = vld [vmem:[#allocation5 + $0x1b8] sm:$0xf0]  ;;  %v1806_v47 = vor.u32 %v2006_v35, %v1803_v36 }
  0x2b   :  { %2061 = vmatpush.bf16.msra.mxu2 %v1694_v17  ;;  %2062 = vmatpush.bf16.msra.mxu3 %v1694_v17  ;;  %v1910_v17 = vor.u32 %v2034_v9, %v1909_v8  ;;  %v1698_v51 = vor.u32 %v1979_v37, %v1695_v40  ;;  %v1886_v52 = vor.u32 %v2028_v42, %v1885_v41  ;;  %v1976_v56 = vld [vmem:[#allocation5 + $0x1c] sm:$0xf]  ;;  %v1683_v57 = vld [vmem:[#allocation5 + $0x24] sm:$0xf0]  ;;  %v1873_v58 = vld [vmem:[#allocation5 + $0x198] sm:$0xf] }
  0x2c   :  { %v2025_v59 = vld [vmem:[#allocation5 + $0x1a0] sm:$0xf0]  ;;  %v2000_v0 = vld [vmem:[#allocation5 + $0xdc] sm:$0xf]  ;;  %v1686_v1 = vor.u32 %v1976_v56, %v1683_v57  ;;  %v1671_v5 = vld [vmem:[#allocation5 + $0xc] sm:$0xf0] }
  0x2d   :  { %v1973_v4 = vld [vmem:[#allocation5 + $0x4] sm:$0xf]  ;;  %v1861_v6 = vld [vmem:[#allocation5 + $0x180] sm:$0xf]  ;;  %v2022_v7 = vld [vmem:[#allocation5 + $0x188] sm:$0xf0] }
  0x2e   :  { %698 = vmatpush.bf16.msra.mxu0 %v1682_v20  ;;  %2063 = vmatpush.bf16.msra.mxu1 %v1682_v20  ;;  %v1761_v8 = vld [vmem:[#allocation5 + $0xb0] sm:$0xf]  ;;  %v1765_v14 = vld [vmem:[#allocation5 + $0xc0] sm:$0xf]  ;;  %v1998_v15 = vld [vmem:[#allocation5 + $0xc8] sm:$0xf0]  ;;  %v1862_v18 = vor.u32 %v2022_v7, %v1861_v6 }
  0x2f   :  { %2064 = vmatpush.bf16.msra.mxu2 %v1682_v20  ;;  %2065 = vmatpush.bf16.msra.mxu3 %v1682_v20  ;;  %v1609_v20 = vld [vmem:[#allocation2 + $0x18] sm:$0xf]  ;;  %v1857_v11 = vld [vmem:[#allocation5 + $0x170] sm:$0xf]  ;;  %v1993_v31 = vld [vmem:[#allocation5 + $0xa0] sm:$0xf0] }
  0x30   :  { %v1767_v19 = vld [vmem:[#allocation5 + $0xcc] sm:$0xf0]  ;;  %v1845_v37 = vld [vmem:[#allocation5 + $0x158] sm:$0xf]  ;;  %v2017_v40 = vld [vmem:[#allocation5 + $0x160] sm:$0xf0] }
  0x31   :  { %v2039_v41 = vld [vmem:[#allocation5 + $0x214] sm:$0xf]  ;;  %v1821_v6 = vld [vmem:[#allocation5 + $0x128] sm:$0xf]  ;;  %vm1282_vm10 = vcmask 1041408   ;;  %s2218_s2 = smov [#allocation10]  }
  0x32   :  { %699 = vmatpush.bf16.msra.mxu0 %v1670_v30  ;;  %2066 = vmatpush.bf16.msra.mxu1 %v1670_v30  ;;  %v2011_v7 = vld [vmem:[#allocation5 + $0x130] sm:$0xf0]  ;;  %s1578_s3 = sshll.u32 %s2218_s2, 4  ;;  %s1580_s11 = sshll.u32 %s2972_s4, 4  ;;  %s1579_s3 = int_to_ptr.vmem [resolvable:$true] %s1578_s3  ;;  %s1581_s11 = int_to_ptr.hbm [resolvable:$true] %s1580_s11 }
  0x33   :  { %2067 = vmatpush.bf16.msra.mxu2 %v1670_v30  ;;  %2068 = vmatpush.bf16.msra.mxu3 %v1670_v30  ;;  %v1971_v30 = vld [vmem:[#allocation2 + $0x80] sm:$0xf0]  ;;  %s2219_s12 = smov 384   ;;  %s2220_s13 = smov 24  }
  0x34   :  { %v2277_v45 = vor.u32 %v1971_v30, %v1657_v28  ;;  %v1766_v28 = vor.u32 %v1998_v15, %v1765_v14  ;;  %v1749_v30 = vld [vmem:[#allocation5 + $0x98] sm:$0xf] }
  0x35   :  { %700 = vmatmul.bf16.vlgmr.msra.gmra.mxu0 %v2261_v43  ;;  %710 = vmatmul.bf16.vlgmr.msra.gmra.mxu1 %v2263_v44 }
  0x36   :  { %720 = vmatmul.bf16.vlgmr.msra.gmra.mxu2 %v2265_v48  ;;  %735 = vmatpush.bf16.msrb.mxu1 %v1850_v49  ;;  %v1789_v49 = vld [vmem:[#allocation5 + $0xf0] sm:$0xf] }
  0x37   :  { %821 = vmatpush.bf16.msrb.mxu3 %v1758_v38  ;;  %778 = vmatpush.bf16.msrb.mxu2 %v1946_v39  ;;  %v2273_v38 = vor.u32 %v1959_v21, %v1609_v20  ;;  %v2275_v39 = vor.u32 %v1965_v27, %v1633_v25  ;;  %v1955_v20 = vld [vmem:[#allocation2 + $0x4] sm:$0xf]  ;;  %v2042_v21 = vld [vmem:[#allocation5 + $0x22c] sm:$0xf]  ;;  %v1953_v25 = vld [vmem:[#allocation5 + $0x230] sm:$0xf] }
  0x38   :  { %864 = vmatpush.bf16.msrb.mxu0 %v1854_v50  ;;  %730 = vmatmul.bf16.vlgmr.msra.gmra.mxu3 %v2267_v53  ;;  %v2004_v50 = vld [vmem:[#allocation5 + $0xf8] sm:$0xf0] }
  0x39   :  { %v1790_v60 = vor.u32 %v2004_v50, %v1789_v49  ;;  %v2044_v27 = vld [vmem:[#allocation5 + $0x238] sm:$0xf0]  ;;  %v1941_v49 = vld [vmem:[#allocation5 + $0x218] sm:$0xf]  ;;  %v2041_v50 = vld [vmem:[#allocation5 + $0x220] sm:$0xf0] }
  0x3a   :  { %736 = vmatpush.bf16.msrb.mxu1 %v1838_v62  ;;  %v1777_v62 = vld [vmem:[#allocation5 + $0xd8] sm:$0xf]  ;;  %v1954_v36 = vor.u32 %v2044_v27, %v1953_v25  ;;  %v1942_v57 = vor.u32 %v2041_v50, %v1941_v49  ;;  %v1809_v25 = vld [vmem:[#allocation5 + $0x110] sm:$0xf]  ;;  %v2008_v27 = vld [vmem:[#allocation5 + $0x118] sm:$0xf0] }
  0x3b   :  { %822 = vmatpush.bf16.msrb.mxu3 %v1746_v54  ;;  %779 = vmatpush.bf16.msrb.mxu2 %v1934_v55  ;;  %v2003_v54 = vld [vmem:[#allocation5 + $0xf4] sm:$0xf]  ;;  %v1791_v55 = vld [vmem:[#allocation5 + $0xfc] sm:$0xf0]  ;;  %v1981_v49 = vld [vmem:[#allocation5 + $0x40] sm:$0xf0] }
  0x3c   :  { %865 = vmatpush.bf16.msrb.mxu0 %v1842_v63  ;;  %v1794_v61 = vor.u32 %v2003_v54, %v1791_v55  ;;  %v2001_v63 = vld [vmem:[#allocation5 + $0xe0] sm:$0xf0]  ;;  %v1990_v54 = vld [vmem:[#allocation5 + $0x88] sm:$0xf0]  ;;  %v1846_v55 = vor.u32 %v2017_v40, %v1845_v37  ;;  %v1905_v40 = vld [vmem:[#allocation5 + $0x1d0] sm:$0xf] }
  0x3d   :  { %v1778_v9 = vor.u32 %v2001_v63, %v1777_v62  ;;  %v1923_v62 = vld [vmem:[#allocation5 + $0x204] sm:$0xf0]  ;;  %v1929_v63 = vld [vmem:[#allocation5 + $0x200] sm:$0xf]  ;;  %v1797_v50 = vld [vmem:[#allocation5 + $0xf8] sm:$0xf] }
  0x3e   :  { %737 = vmatpush.bf16.msrb.mxu1 %v1826_v10  ;;  %v1996_v10 = vld [vmem:[#allocation5 + $0xb8] sm:$0xf0] }
  0x3f   :  { %823 = vmatpush.bf16.msrb.mxu3 %v1734_v2  ;;  %780 = vmatpush.bf16.msrb.mxu2 %v1922_v3  ;;  %v1874_v2 = vor.u32 %v2025_v59, %v1873_v58  ;;  %v1779_v3 = vld [vmem:[#allocation5 + $0xe4] sm:$0xf0]  ;;  %v1762_v22 = vor.u32 %v1996_v10, %v1761_v8  ;;  %v1833_v58 = vld [vmem:[#allocation5 + $0x140] sm:$0xf]  ;;  %v2014_v59 = vld [vmem:[#allocation5 + $0x148] sm:$0xf0] }
  0x40   :  { %866 = vmatpush.bf16.msrb.mxu0 %v1830_v12  ;;  %v2020_v12 = vld [vmem:[#allocation5 + $0x178] sm:$0xf0]  ;;  %v1782_v13 = vor.u32 %v2000_v0, %v1779_v3  ;;  %v1834_v0 = vor.u32 %v2014_v59, %v1833_v58  ;;  %v1987_v3 = vld [vmem:[#allocation5 + $0x70] sm:$0xf0]  ;;  %v1958_v10 = vld [vmem:[#allocation2 + $0x1c] sm:$0xf] }
  0x41   :  { %v1858_v23 = vor.u32 %v2020_v12, %v1857_v11  ;;  %v1611_v11 = vld [vmem:[#allocation2 + $0x24] sm:$0xf0]  ;;  %v1617_v12 = vld [vmem:[#allocation2 + $0x20] sm:$0xf]  ;;  %v1641_v58 = vld [vmem:[#allocation2 + $0x50] sm:$0xf] }
  0x42   :  { %738 = vmatpush.bf16.msrb.mxu1 %v1814_v24  ;;  %v1947_v24 = vld [vmem:[#allocation5 + $0x234] sm:$0xf0]  ;;  %v2290_v14 = vor.u32 %v1958_v10, %v1611_v11  ;;  %v1966_v59 = vld [vmem:[#allocation2 + $0x58] sm:$0xf0]  ;;  %v1875_v10 = vld [vmem:[#allocation5 + $0x1a4] sm:$0xf0] }
  0x43   :  { %824 = vmatpush.bf16.msrb.mxu3 %v1722_v16  ;;  %781 = vmatpush.bf16.msrb.mxu2 %v1910_v17  ;;  %v1997_v16 = vld [vmem:[#allocation5 + $0xc4] sm:$0xf]  ;;  %v1674_v17 = vor.u32 %v1973_v4, %v1671_v5  ;;  %v1950_v35 = vor.u32 %v2042_v21, %v1947_v24  ;;  %v1713_v21 = vld [vmem:[#allocation5 + $0x50] sm:$0xf] }
  0x44   :  { %867 = vmatpush.bf16.msrb.mxu0 %v1818_v29  ;;  %v1599_v29 = vld [vmem:[#allocation2 + $0xc] sm:$0xf0]  ;;  %v1770_v32 = vor.u32 %v1997_v16, %v1767_v19  ;;  %v2033_v16 = vld [vmem:[#allocation5 + $0x1e4] sm:$0xf] }
  0x45   :  { %705 = vmatmul.bf16.gmra.mxu0 %v2273_v38  ;;  %715 = vmatmul.bf16.gmra.mxu1 %v2275_v39  ;;  %v2282_v42 = vor.u32 %v1955_v20, %v1599_v29  ;;  %v2035_v20 = vld [vmem:[#allocation5 + $0x1f0] sm:$0xf0]  ;;  %v1961_v29 = vld [vmem:[#allocation2 + $0x34] sm:$0xf] }
  0x46   :  { %725 = vmatmul.bf16.gmra.mxu2 %v2277_v45  ;;  %739 = vmatpush.bf16.msrb.mxu1 %v1802_v46  ;;  %v1750_v46 = vor.u32 %v1993_v31, %v1749_v30  ;;  %v1623_v30 = vld [vmem:[#allocation2 + $0x3c] sm:$0xf0]  ;;  %v1629_v31 = vld [vmem:[#allocation2 + $0x38] sm:$0xf] }
  0x47   :  { %825 = vmatpush.bf16.msrb.mxu3 %v1710_v33  ;;  %782 = vmatpush.bf16.msrb.mxu2 %v1898_v34  ;;  %v1605_v33 = vld [vmem:[#allocation2 + $0x8] sm:$0xf]  ;;  %v1957_v34 = vld [vmem:[#allocation2 + $0x10] sm:$0xf0] }
  0x48   :  { %868 = vmatpush.bf16.msrb.mxu0 %v1806_v47  ;;  %v1935_v47 = vld [vmem:[#allocation5 + $0x21c] sm:$0xf0] }
  0x49   :  { %v1938_v56 = vor.u32 %v2039_v41, %v1935_v47  ;;  %v2032_v41 = vld [vmem:[#allocation5 + $0x1d8] sm:$0xf0] }
  0x4a   :  { %740 = vmatpush.bf16.msrb.mxu1 %v1790_v60  ;;  %v1906_v47 = vor.u32 %v2032_v41, %v1905_v40  ;;  %v1970_v41 = vld [vmem:[#allocation2 + $0x7c] sm:$0xf] }
  0x4b   :  { %826 = vmatpush.bf16.msrb.mxu3 %v1698_v51  ;;  %783 = vmatpush.bf16.msrb.mxu2 %v1886_v52  ;;  %v2284_v51 = vor.u32 %v1957_v34, %v1605_v33  ;;  %v1737_v52 = vld [vmem:[#allocation5 + $0x80] sm:$0xf]  ;;  %v2298_v33 = vor.u32 %v1961_v29, %v1623_v30  ;;  %v1999_v29 = vld [vmem:[#allocation5 + $0xd0] sm:$0xf0] }
  0x4c   :  { %869 = vmatpush.bf16.msrb.mxu0 %v1794_v61  ;;  %v1738_v60 = vor.u32 %v1990_v54, %v1737_v52  ;;  %v2036_v61 = vld [vmem:[#allocation5 + $0x1fc] sm:$0xf]  ;;  %v2005_v52 = vld [vmem:[#allocation5 + $0x100] sm:$0xf0] }
  0x4d   :  { %v1926_v4 = vor.u32 %v2036_v61, %v1923_v62  ;;  %v2308_v61 = vor.u32 %v1966_v59, %v1641_v58  ;;  %v2027_v62 = vld [vmem:[#allocation5 + $0x1b4] sm:$0xf] }
  0x4e   :  { %741 = vmatpush.bf16.msrb.mxu1 %v1778_v9  ;;  %v1822_v9 = vor.u32 %v2011_v7, %v1821_v6  ;;  %v1785_v6 = vld [vmem:[#allocation5 + $0xe0] sm:$0xf] }
  0x4f   :  { %827 = vmatpush.bf16.msrb.mxu3 %v1686_v1  ;;  %784 = vmatpush.bf16.msrb.mxu2 %v1874_v2  ;;  %v2038_v1 = vld [vmem:[#allocation5 + $0x208] sm:$0xf0]  ;;  %v1725_v2 = vld [vmem:[#allocation5 + $0x68] sm:$0xf] }
  0x50   :  { %870 = vmatpush.bf16.msrb.mxu0 %v1782_v13  ;;  %v1930_v5 = vor.u32 %v2038_v1, %v1929_v63  ;;  %v1726_v8 = vor.u32 %v1987_v3, %v1725_v2  ;;  %v1960_v13 = vld [vmem:[#allocation2 + $0x28] sm:$0xf0]  ;;  %v1887_v63 = vld [vmem:[#allocation5 + $0x1bc] sm:$0xf0]  ;;  %v2029_v2 = vld [vmem:[#allocation5 + $0x1c0] sm:$0xf0] }
  0x51   :  { %v2292_v15 = vor.u32 %v1960_v13, %v1617_v12  ;;  %v1890_v1 = vor.u32 %v2027_v62, %v1887_v63  ;;  %v1881_v13 = vld [vmem:[#allocation5 + $0x1a0] sm:$0xf] }
  0x52   :  { %742 = vmatpush.bf16.msrb.mxu1 %v1766_v28  ;;  %v1810_v28 = vor.u32 %v2008_v27, %v1809_v25  ;;  %v1975_v25 = vld [vmem:[#allocation5 + $0x10] sm:$0xf0]  ;;  %v1773_v27 = vld [vmem:[#allocation5 + $0xc8] sm:$0xf] }
  0x53   :  { %828 = vmatpush.bf16.msrb.mxu3 %v1674_v17  ;;  %785 = vmatpush.bf16.msrb.mxu2 %v1862_v18  ;;  %v1911_v17 = vld [vmem:[#allocation5 + $0x1ec] sm:$0xf0]  ;;  %v1917_v18 = vld [vmem:[#allocation5 + $0x1e8] sm:$0xf]  ;;  %v1774_v30 = vor.u32 %v1999_v29, %v1773_v27 }
  0x54   :  { %871 = vmatpush.bf16.msrb.mxu0 %v1770_v32  ;;  %v1914_v19 = vor.u32 %v2033_v16, %v1911_v17  ;;  %v1963_v32 = vld [vmem:[#allocation2 + $0x40] sm:$0xf0]  ;;  %v2026_v16 = vld [vmem:[#allocation5 + $0x1a8] sm:$0xf0] }
  0x55   :  { %743 = vmatmul.bf16.vlgmr.msrb.gmra.mxu1 %v2282_v42  ;;  %v2300_v34 = vor.u32 %v1963_v32, %v1629_v31  ;;  %v1882_v17 = vor.u32 %v2026_v16, %v1881_v13  ;;  %v2021_v31 = vld [vmem:[#allocation5 + $0x184] sm:$0xf]  ;;  %v1863_v32 = vld [vmem:[#allocation5 + $0x18c] sm:$0xf0] }
  0x56   :  { %829 = vmatmul.bf16.vlgmr.msrb.gmra.mxu3 %v2261_v43  ;;  %907 = vmatpush.bf16.msra.mxu1 %v1950_v35  ;;  %v2030_v35 = vld [vmem:[#allocation5 + $0x1cc] sm:$0xf] }
  0x57   :  { %950 = vmatpush.bf16.msra.mxu2 %v1762_v22  ;;  %993 = vmatpush.bf16.msra.mxu3 %v1858_v23  ;;  %v1984_v22 = vld [vmem:[#allocation5 + $0x58] sm:$0xf0]  ;;  %v1918_v23 = vor.u32 %v2035_v20, %v1917_v18  ;;  %v1967_v18 = vld [vmem:[#allocation2 + $0x64] sm:$0xf]  ;;  %v1653_v20 = vld [vmem:[#allocation2 + $0x68] sm:$0xf] }
  0x58   :  { %1036 = vmatpush.bf16.msra.mxu0 %v1954_v36  ;;  %786 = vmatmul.bf16.vlgmr.msrb.gmra.mxu2 %v2284_v51  ;;  %v1714_v24 = vor.u32 %v1984_v22, %v1713_v21  ;;  %v1899_v36 = vld [vmem:[#allocation5 + $0x1d4] sm:$0xf0] }
  0x59   :  { %872 = vmatmul.bf16.vlgmr.msrb.gmra.mxu0 %v2282_v42  ;;  %v1902_v37 = vor.u32 %v2030_v35, %v1899_v36  ;;  %v1969_v21 = vld [vmem:[#allocation2 + $0x70] sm:$0xf0]  ;;  %v1869_v35 = vld [vmem:[#allocation5 + $0x188] sm:$0xf]  ;;  %v1866_v36 = vor.u32 %v2021_v31, %v1863_v32 }
  0x5a   :  { %908 = vmatpush.bf16.msra.mxu1 %v1938_v56  ;;  %v1964_v56 = vld [vmem:[#allocation2 + $0x4c] sm:$0xf] }
  0x5b   :  { %951 = vmatpush.bf16.msra.mxu2 %v1750_v46  ;;  %994 = vmatpush.bf16.msra.mxu3 %v1846_v55  ;;  %v1701_v46 = vld [vmem:[#allocation5 + $0x38] sm:$0xf]  ;;  %v1798_v55 = vor.u32 %v2005_v52, %v1797_v50 }
  0x5c   :  { %1037 = vmatpush.bf16.msra.mxu0 %v1942_v57  ;;  %v1702_v54 = vor.u32 %v1981_v49, %v1701_v46  ;;  %v1635_v57 = vld [vmem:[#allocation2 + $0x54] sm:$0xf0]  ;;  %v1659_v46 = vld [vmem:[#allocation2 + $0x84] sm:$0xf0]  ;;  %v1972_v49 = vld [vmem:[#allocation2 + $0x88] sm:$0xf0] }
  0x5d   :  { %v2322_v50 = vor.u32 %v1970_v41, %v1659_v46 }
  0x5e   :  { %909 = vmatpush.bf16.msra.mxu1 %v1926_v4  ;;  %v1689_v4 = vld [vmem:[#allocation5 + $0x20] sm:$0xf] }
  0x5f   :  { %952 = vmatpush.bf16.msra.mxu2 %v1738_v60  ;;  %995 = vmatpush.bf16.msra.mxu3 %v1834_v0  ;;  %v2306_v60 = vor.u32 %v1964_v56, %v1635_v57  ;;  %v1893_v0 = vld [vmem:[#allocation5 + $0x1b8] sm:$0xf] }
  0x60   :  { %1038 = vmatpush.bf16.msra.mxu0 %v1930_v5  ;;  %v1894_v3 = vor.u32 %v2029_v2, %v1893_v0  ;;  %v1978_v5 = vld [vmem:[#allocation5 + $0x28] sm:$0xf0] }
  0x61   :  { %v1690_v7 = vor.u32 %v1978_v5, %v1689_v4 }
  0x62   :  { %910 = vmatpush.bf16.msra.mxu1 %v1914_v19  ;;  %v1647_v19 = vld [vmem:[#allocation2 + $0x6c] sm:$0xf0] }
  0x63   :  { %953 = vmatpush.bf16.msra.mxu2 %v1726_v8  ;;  %996 = vmatpush.bf16.msra.mxu3 %v1822_v9  ;;  %v2002_v8 = vld [vmem:[#allocation5 + $0xe8] sm:$0xf0]  ;;  %v2024_v9 = vld [vmem:[#allocation5 + $0x19c] sm:$0xf]  ;;  %v2314_v22 = vor.u32 %v1967_v18, %v1647_v19 }
  0x64   :  { %1039 = vmatpush.bf16.msra.mxu0 %v1918_v23  ;;  %v1786_v11 = vor.u32 %v2002_v8, %v1785_v6  ;;  %v1878_v12 = vor.u32 %v2024_v9, %v1875_v10  ;;  %v2316_v23 = vor.u32 %v1969_v21, %v1653_v20 }
  0x65   :  { %748 = vmatmul.bf16.gmra.mxu1 %v2290_v14 }
  0x66   :  { %834 = vmatmul.bf16.gmra.mxu3 %v2273_v38  ;;  %911 = vmatpush.bf16.msra.mxu1 %v1902_v37  ;;  %v2023_v37 = vld [vmem:[#allocation5 + $0x190] sm:$0xf0] }
  0x67   :  { %954 = vmatpush.bf16.msra.mxu2 %v1714_v24  ;;  %997 = vmatpush.bf16.msra.mxu3 %v1810_v28  ;;  %v1677_v24 = vld [vmem:[#allocation5 + $0x8] sm:$0xf]  ;;  %v1870_v40 = vor.u32 %v2023_v37, %v1869_v35 }
  0x68   :  { %791 = vmatmul.bf16.gmra.mxu2 %v2292_v15  ;;  %1040 = vmatpush.bf16.msra.mxu0 %v1906_v47  ;;  %v1678_v28 = vor.u32 %v1975_v25, %v1677_v24  ;;  %v1665_v47 = vld [vmem:[#allocation2 + $0x80] sm:$0xf] }
  0x69   :  { %877 = vmatmul.bf16.gmra.mxu0 %v2290_v14  ;;  %v2324_v52 = vor.u32 %v1972_v49, %v1665_v47 }
  0x6a   :  { %912 = vmatpush.bf16.msra.mxu1 %v1890_v1 }
  0x6b   :  { %955 = vmatpush.bf16.msra.mxu2 %v1702_v54  ;;  %998 = vmatpush.bf16.msra.mxu3 %v1798_v55  ;;  %v104_v54 = vld [vmem:[#allocation2 + $0x98] sm:$0xf]  ;;  %v264_v55 = vunpack.c.h.b16 %v2258_v26 }
  0x6c   :  { %1041 = vmatpush.bf16.msra.mxu0 %v1894_v3  ;;  %v265_v56 = vunpack.c.l.b16 %v104_v54 }
  0x6d   :  { %v2331_v57 = vpack.c.b16 %v264_v55, %v264_v55 }
  0x6e   :  { %913 = vmatpush.bf16.msra.mxu1 %v1878_v12  ;;  %v2333_v62 = vpack.c.b16 %v265_v56, %v265_v56 }
  0x6f   :  { %956 = vmatpush.bf16.msra.mxu2 %v1690_v7  ;;  %999 = vmatpush.bf16.msra.mxu3 %v1786_v11 }
  0x70   :  { %1042 = vmatpush.bf16.msra.mxu0 %v1882_v17 }
  0x72   :  { %914 = vmatpush.bf16.msra.mxu1 %v1866_v36 }
  0x73   :  { %957 = vmatpush.bf16.msra.mxu2 %v1678_v28  ;;  %1000 = vmatpush.bf16.msra.mxu3 %v1774_v30 }
  0x74   :  { %1043 = vmatpush.bf16.msra.mxu0 %v1870_v40 }
  0x75   :  { %753 = vmatmul.bf16.gmra.mxu1 %v2298_v33 }
  0x76   :  { %839 = vmatmul.bf16.gmra.mxu3 %v2263_v44 }
  0x78   :  { %796 = vmatmul.bf16.gmra.mxu2 %v2300_v34 }
  0x79   :  { %882 = vmatmul.bf16.gmra.mxu0 %v2298_v33 }
  0x85   :  { %758 = vmatmul.bf16.gmra.mxu1 %v2306_v60 }
  0x86   :  { %844 = vmatmul.bf16.gmra.mxu3 %v2275_v39 }
  0x88   :  { %801 = vmatmul.bf16.gmra.mxu2 %v2308_v61 }
  0x89   :  { %887 = vmatmul.bf16.gmra.mxu0 %v2306_v60 }
  0x95   :  { %763 = vmatmul.bf16.gmra.mxu1 %v2314_v22 }
  0x96   :  { %849 = vmatmul.bf16.gmra.mxu3 %v2265_v48 }
  0x98   :  { %806 = vmatmul.bf16.gmra.mxu2 %v2316_v23 }
  0x99   :  { %892 = vmatmul.bf16.gmra.mxu0 %v2314_v22 }
  0xa5   :  { %768 = vmatmul.bf16.gmra.mxu1 %v2322_v50 }
  0xa6   :  { %854 = vmatmul.bf16.gmra.mxu3 %v2277_v45 }
  0xa8   :  { %811 = vmatmul.bf16.gmra.mxu2 %v2324_v52 }
  0xa9   :  { %897 = vmatmul.bf16.gmra.mxu0 %v2322_v50 }
  0xb2   :  { %v701_v58 = vpop.f32.mrf.mxu0  ;;  %v711_v59 = vpop.f32.mrf.mxu1 }
  0xb5   :  { %773 = vmatmul.bf16.gmra.mxu1 %v2331_v57 }
  0xb6   :  { %859 = vmatmul.bf16.gmra.mxu3 %v2267_v53 }
  0xb8   :  { %816 = vmatmul.bf16.gmra.mxu2 %v2333_v62 }
  0xb9   :  { %902 = vmatmul.bf16.gmra.mxu0 %v2331_v57  ;;  %v2339_v63 = vpop.f32.mrf.mxu2 }
  0xba   :  { %v703_v0 = vpop.f32.mrf.mxu0  ;;  %v713_v1 = vpop.f32.mrf.mxu1 }
  0xbb   :  { %v2341_v26 = vpop.f32.mrf.mxu3 }
  0xc1   :  { %v2343_v2 = vpop.f32.mrf.mxu2 }
  0xc2   :  { %v706_v3 = vpop.f32.mrf.mxu0  ;;  %v2345_v4 = vpop.f32.mrf.mxu1 }
  0xc3   :  { %v733_v5 = vpop.f32.mrf.mxu3 }
  0xc5   :  { %915 = vmatmul.bf16.vlgmr.msra.gmra.mxu1 %v2284_v51 }
  0xc6   :  { %1001 = vmatmul.bf16.vlgmr.msra.gmra.mxu3 %v2282_v42 }
  0xc8   :  { %958 = vmatmul.bf16.vlgmr.msra.gmra.mxu2 %v2261_v43 }
  0xc9   :  { %1044 = vmatmul.bf16.vlgmr.msra.gmra.mxu0 %v2284_v51  ;;  %v2351_v6 = vpop.f32.mrf.mxu2 }
  0xca   :  { %v708_v7 = vpop.f32.mrf.mxu0  ;;  %v2353_v8 = vpop.f32.mrf.mxu1 }
  0xd1   :  { %v2355_v9 = vpop.f32.mrf.mxu2 }
  0xd2   :  { %v744_v10 = vpop.f32.mrf.mxu1 }
  0xd3   :  { %v745_v11 = vadd.f32 %v744_v10, %v701_v58 }
  0xd5   :  { %920 = vmatmul.bf16.gmra.mxu1 %v2292_v15 }
  0xd6   :  { %v873_v12 = vpop.f32.mrf.mxu0  ;;  %1006 = vmatmul.bf16.gmra.mxu3 %v2290_v14 }
  0xd8   :  { %963 = vmatmul.bf16.gmra.mxu2 %v2273_v38 }
  0xd9   :  { %v830_v42 = vpop.f32.mrf.mxu3  ;;  %1049 = vmatmul.bf16.gmra.mxu0 %v2292_v15 }
  0xda   :  { %v2361_v43 = vadd.f32 %v873_v12, %v830_v42  ;;  %v746_v16 = vpop.f32.mrf.mxu1 }
  0xdb   :  { %v787_v51 = vpop.f32.mrf.mxu2  ;;  %v747_v17 = vadd.f32 %v746_v16, %v703_v0 }
  0xdc   :  { %v2363_v13 = vadd.f32 %v787_v51, %v745_v11 }
  0xde   :  { %v875_v18 = vpop.f32.mrf.mxu0 }
  0xe1   :  { %v832_v19 = vpop.f32.mrf.mxu3 }
  0xe2   :  { %v2365_v20 = vadd.f32 %v875_v18, %v832_v19  ;;  %v749_v24 = vpop.f32.mrf.mxu1 }
  0xe3   :  { %v789_v21 = vpop.f32.mrf.mxu2  ;;  %v750_v25 = vadd.f32 %v749_v24, %v706_v3 }
  0xe4   :  { %v2367_v14 = vadd.f32 %v789_v21, %v747_v17 }
  0xe5   :  { %925 = vmatmul.bf16.gmra.mxu1 %v2300_v34 }
  0xe6   :  { %v878_v27 = vpop.f32.mrf.mxu0  ;;  %1011 = vmatmul.bf16.gmra.mxu3 %v2298_v33 }
  0xe8   :  { %968 = vmatmul.bf16.gmra.mxu2 %v2263_v44 }
  0xe9   :  { %v835_v38 = vpop.f32.mrf.mxu3  ;;  %1054 = vmatmul.bf16.gmra.mxu0 %v2300_v34 }
  0xea   :  { %v2373_v15 = vadd.f32 %v878_v27, %v835_v38  ;;  %v751_v30 = vpop.f32.mrf.mxu1 }
  0xeb   :  { %v792_v28 = vpop.f32.mrf.mxu2  ;;  %v752_v31 = vadd.f32 %v751_v30, %v708_v7 }
  0xec   :  { %v2375_v29 = vadd.f32 %v792_v28, %v750_v25 }
  0xee   :  { %v880_v32 = vpop.f32.mrf.mxu0 }
  0xf1   :  { %v837_v35 = vpop.f32.mrf.mxu3 }
  0xf2   :  { %v2377_v36 = vadd.f32 %v880_v32, %v837_v35  ;;  %v754_v40 = vpop.f32.mrf.mxu1 }
  0xf3   :  { %v794_v37 = vpop.f32.mrf.mxu2  ;;  %v755_v41 = vadd.f32 %v754_v40, %v711_v59 }
  0xf4   :  { %v2379_v33 = vadd.f32 %v794_v37, %v752_v31 }
  0xf5   :  { %930 = vmatmul.bf16.gmra.mxu1 %v2308_v61 }
  0xf6   :  { %v883_v46 = vpop.f32.mrf.mxu0  ;;  %1016 = vmatmul.bf16.gmra.mxu3 %v2306_v60 }
  0xf8   :  { %973 = vmatmul.bf16.gmra.mxu2 %v2275_v39 }
  0xf9   :  { %v840_v44 = vpop.f32.mrf.mxu3  ;;  %1059 = vmatmul.bf16.gmra.mxu0 %v2308_v61 }
  0xfa   :  { %v2385_v34 = vadd.f32 %v883_v46, %v840_v44  ;;  %v756_v54 = vpop.f32.mrf.mxu1 }
  0xfb   :  { %v797_v47 = vpop.f32.mrf.mxu2  ;;  %v757_v55 = vadd.f32 %v756_v54, %v713_v1 }
  0xfc   :  { %v2387_v49 = vadd.f32 %v797_v47, %v755_v41 }
  0xfe   :  { %v885_v56 = vpop.f32.mrf.mxu0 }
 0x101   :  { %v842_v58 = vpop.f32.mrf.mxu3 }
 0x102   :  { %v2389_v59 = vadd.f32 %v885_v56, %v842_v58  ;;  %v759_v3 = vpop.f32.mrf.mxu1 }
 0x103   :  { %v799_v0 = vpop.f32.mrf.mxu2  ;;  %v760_v5 = vadd.f32 %v759_v3, %v2345_v4 }
 0x104   :  { %v2391_v60 = vadd.f32 %v799_v0, %v757_v55 }
 0x105   :  { %935 = vmatmul.bf16.gmra.mxu1 %v2316_v23 }
 0x106   :  { %v888_v39 = vpop.f32.mrf.mxu0  ;;  %1021 = vmatmul.bf16.gmra.mxu3 %v2314_v22 }
 0x108   :  { %978 = vmatmul.bf16.gmra.mxu2 %v2265_v48 }
 0x109   :  { %v845_v61 = vpop.f32.mrf.mxu3  ;;  %1064 = vmatmul.bf16.gmra.mxu0 %v2316_v23 }
 0x10a   :  { %v2398_v1 = vadd.f32 %v888_v39, %v845_v61  ;;  %v761_v11 = vpop.f32.mrf.mxu1 }
 0x10b   :  { %v802_v7 = vpop.f32.mrf.mxu2  ;;  %v762_v12 = vadd.f32 %v761_v11, %v2353_v8 }
 0x10c   :  { %v2400_v10 = vadd.f32 %v802_v7, %v760_v5 }
 0x10e   :  { %v890_v42 = vpop.f32.mrf.mxu0 }
 0x111   :  { %v847_v4 = vpop.f32.mrf.mxu3 }
 0x112   :  { %v2403_v51 = vadd.f32 %v890_v42, %v847_v4  ;;  %v764_v17 = vpop.f32.mrf.mxu1 }
 0x113   :  { %v804_v22 = vpop.f32.mrf.mxu2  ;;  %v765_v8 = vadd.f32 %v764_v17, %v2339_v63 }
 0x114   :  { %v2405_v16 = vadd.f32 %v804_v22, %v762_v12 }
 0x115   :  { %940 = vmatmul.bf16.gmra.mxu1 %v2324_v52 }
 0x116   :  { %2993 = vst [vmem:[#allocation15_spill] sm:$0xff] %v2405_v16  ;;  %v893_v18 = vpop.f32.mrf.mxu0  ;;  %1026 = vmatmul.bf16.gmra.mxu3 %v2322_v50 }
 0x118   :  { %983 = vmatmul.bf16.gmra.mxu2 %v2277_v45 }
 0x119   :  { %v850_v48 = vpop.f32.mrf.mxu3  ;;  %1069 = vmatmul.bf16.gmra.mxu0 %v2324_v52 }
 0x11a   :  { %v2411_v23 = vadd.f32 %v893_v18, %v850_v48  ;;  %v766_v24 = vpop.f32.mrf.mxu1 }
 0x11b   :  { %v807_v19 = vpop.f32.mrf.mxu2  ;;  %v767_v50 = vadd.f32 %v766_v24, %v2343_v2 }
 0x11c   :  { %v2414_v21 = vadd.f32 %v807_v19, %v765_v8 }
 0x11e   :  { %2994 = vst [vmem:[#allocation16_spill] sm:$0xff] %v2414_v21  ;;  %v895_v25 = vpop.f32.mrf.mxu0 }
 0x121   :  { %v852_v27 = vpop.f32.mrf.mxu3 }
 0x122   :  { %v2416_v38 = vadd.f32 %v895_v25, %v852_v27  ;;  %v769_v45 = vpop.f32.mrf.mxu1 }
 0x123   :  { %v809_v28 = vpop.f32.mrf.mxu2  ;;  %v770_v32 = vadd.f32 %v769_v45, %v2351_v6 }
 0x124   :  { %v2419_v30 = vadd.f32 %v809_v28, %v767_v50 }
 0x125   :  { %945 = vmatmul.bf16.gmra.mxu1 %v2333_v62 }
 0x126   :  { %2995 = vst [vmem:[#allocation17_spill] sm:$0xff] %v2419_v30  ;;  %v898_v31 = vpop.f32.mrf.mxu0  ;;  %1031 = vmatmul.bf16.gmra.mxu3 %v2331_v57 }
 0x128   :  { %988 = vmatmul.bf16.gmra.mxu2 %v2267_v53 }
 0x129   :  { %v855_v52 = vpop.f32.mrf.mxu3  ;;  %1074 = vmatmul.bf16.gmra.mxu0 %v2333_v62 }
 0x12a   :  { %v2425_v63 = vadd.f32 %v898_v31, %v855_v52  ;;  %v771_v37 = vpop.f32.mrf.mxu1 }
 0x12b   :  { %v812_v35 = vpop.f32.mrf.mxu2  ;;  %v772_v57 = vadd.f32 %v771_v37, %v2355_v9 }
 0x12c   :  { %v2428_v2 = vadd.f32 %v812_v35, %v770_v32 }
 0x12e   :  { %2996 = vst [vmem:[#allocation18_spill] sm:$0xff] %v2428_v2  ;;  %v900_v40 = vpop.f32.mrf.mxu0 }
 0x131   :  { %v857_v41 = vpop.f32.mrf.mxu3 }
 0x132   :  { %v2430_v46 = vadd.f32 %v900_v40, %v857_v41  ;;  %v774_v53 = vpop.f32.mrf.mxu1 }
 0x133   :  { %v814_v44 = vpop.f32.mrf.mxu2  ;;  %v775_v6 = vadd.f32 %v774_v53, %v2341_v26 }
 0x134   :  { %v2433_v47 = vadd.f32 %v814_v44, %v772_v57 }
 0x136   :  { %2997 = vst [vmem:[#allocation19_spill] sm:$0xff] %v2433_v47  ;;  %v903_v54 = vpop.f32.mrf.mxu0 }
 0x139   :  { %v860_v62 = vpop.f32.mrf.mxu3 }
 0x13a   :  { %v2435_v55 = vadd.f32 %v903_v54, %v860_v62  ;;  %v776_v0 = vpop.f32.mrf.mxu1  ;;  %v1079_v54 = vadd.f32 %v2367_v14, %v2363_v13 }
 0x13b   :  { %v817_v56 = vpop.f32.mrf.mxu2  ;;  %v1136_v0 = vmul.f32 %v2367_v14, %v2367_v14 }
 0x13c   :  { %v2438_v58 = vadd.f32 %v817_v56, %v775_v6 }
 0x13e   :  { %2998 = vst [vmem:[#allocation20_spill] sm:$0xff] %v2438_v58  ;;  %v905_v3 = vpop.f32.mrf.mxu0 }
 0x141   :  { %v862_v5 = vpop.f32.mrf.mxu3 }
 0x142   :  { %v916_v61 = vpop.f32.mrf.mxu1  ;;  %v1133_v5 = vmul.f32 %v2363_v13, %v2363_v13 }
 0x143   :  { %v819_v39 = vpop.f32.mrf.mxu2  ;;  %v2441_v9 = vadd.f32 %v916_v61, %v2361_v43 }
 0x144   :  { %v1139_v39 = vmul.f32 %v2375_v29, %v2375_v29 }
 0x146   :  { %v1045_v7 = vpop.f32.mrf.mxu0 }
 0x149   :  { %v1002_v11 = vpop.f32.mrf.mxu3 }
 0x14a   :  { %v918_v4 = vpop.f32.mrf.mxu1 }
 0x14b   :  { %v959_v12 = vpop.f32.mrf.mxu2  ;;  %v2444_v22 = vadd.f32 %v918_v4, %v2365_v20 }
 0x14c   :  { %v1003_v42 = vadd.f32 %v1002_v11, %v959_v12  ;;  %v1172_v11 = vadd.f32 %v1136_v0, %v1133_v5 }
 0x14e   :  { %v1047_v26 = vpop.f32.mrf.mxu0  ;;  %v2446_v17 = vadd.f32 %v1045_v7, %v1003_v42  ;;  %v1173_v4 = vadd.f32 %v1172_v11, %v1139_v39 }
 0x151   :  { %v1004_v18 = vpop.f32.mrf.mxu3 }
 0x152   :  { %v921_v19 = vpop.f32.mrf.mxu1 }
 0x153   :  { %v961_v48 = vpop.f32.mrf.mxu2  ;;  %v2449_v24 = vadd.f32 %v921_v19, %v2373_v15 }
 0x154   :  { %v1005_v8 = vadd.f32 %v1004_v18, %v961_v48 }
 0x156   :  { %v1050_v43 = vpop.f32.mrf.mxu0  ;;  %v2451_v25 = vadd.f32 %v1047_v26, %v1005_v8  ;;  %v1145_v26 = vmul.f32 %v2387_v49, %v2387_v49 }
 0x159   :  { %v1007_v27 = vpop.f32.mrf.mxu3 }
 0x15a   :  { %v923_v45 = vpop.f32.mrf.mxu1 }
 0x15b   :  { %v964_v50 = vpop.f32.mrf.mxu2  ;;  %v2454_v20 = vadd.f32 %v923_v45, %v2377_v36 }
 0x15c   :  { %v1008_v28 = vadd.f32 %v1007_v27, %v964_v50  ;;  %v1148_v50 = vmul.f32 %v2391_v60, %v2391_v60 }
 0x15e   :  { %v1052_v31 = vpop.f32.mrf.mxu0  ;;  %v2456_v52 = vadd.f32 %v1050_v43, %v1008_v28 }
 0x161   :  { %v1009_v32 = vpop.f32.mrf.mxu3 }
 0x162   :  { %v926_v40 = vpop.f32.mrf.mxu1 }
 0x163   :  { %v966_v35 = vpop.f32.mrf.mxu2  ;;  %v2459_v15 = vadd.f32 %v926_v40, %v2385_v34  ;;  %v1080_v34 = vadd.f32 %v1079_v54, %v2375_v29  ;;  %v1154_v40 = vmul.f32 %v2405_v16, %v2405_v16  ;;  %v1157_v54 = vmul.f32 %v2414_v21, %v2414_v21 }
 0x164   :  { %v1010_v37 = vadd.f32 %v1009_v32, %v966_v35  ;;  %v1151_v32 = vmul.f32 %v2400_v10, %v2400_v10 }
 0x165   :  { %v1081_v61 = vadd.f32 %v1080_v34, %v2379_v33  ;;  %v1160_v34 = vmul.f32 %v2419_v30, %v2419_v30 }
 0x166   :  { %v1055_v41 = vpop.f32.mrf.mxu0  ;;  %v2461_v57 = vadd.f32 %v1052_v31, %v1010_v37 }
 0x167   :  { %v1082_v12 = vadd.f32 %v1081_v61, %v2387_v49  ;;  %v1163_v61 = vmul.f32 %v2428_v2, %v2428_v2 }
 0x169   :  { %v1012_v44 = vpop.f32.mrf.mxu3  ;;  %v1083_v18 = vadd.f32 %v1082_v12, %v2391_v60  ;;  %v1166_v12 = vmul.f32 %v2433_v47, %v2433_v47 }
 0x16a   :  { %v928_v62 = vpop.f32.mrf.mxu1 }
 0x16b   :  { %v969_v53 = vpop.f32.mrf.mxu2  ;;  %v2466_v6 = vadd.f32 %v928_v62, %v2389_v59  ;;  %v1142_v59 = vmul.f32 %v2379_v33, %v2379_v33  ;;  %v1084_v28 = vadd.f32 %v1083_v18, %v2400_v10  ;;  %v1169_v18 = vmul.f32 %v2438_v58, %v2438_v58 }
 0x16c   :  { %v1013_v36 = vadd.f32 %v1012_v44, %v969_v53 }
 0x16d   :  { %v1174_v27 = vadd.f32 %v1173_v4, %v1142_v59  ;;  %v1085_v35 = vadd.f32 %v1084_v28, %v2405_v16 }
 0x16e   :  { %v1057_v56 = vpop.f32.mrf.mxu0  ;;  %v2471_v3 = vadd.f32 %v1055_v41, %v1013_v36 }
 0x16f   :  { %v1175_v31 = vadd.f32 %v1174_v27, %v1145_v26  ;;  %v1086_v41 = vadd.f32 %v1085_v35, %v2414_v21 }
 0x171   :  { %v1014_v7 = vpop.f32.mrf.mxu3  ;;  %v1087_v36 = vadd.f32 %v1086_v41, %v2419_v30 }
 0x172   :  { %v931_v8 = vpop.f32.mrf.mxu1 }
 0x173   :  { %v971_v42 = vpop.f32.mrf.mxu2  ;;  %v2485_v19 = vadd.f32 %v931_v8, %v2398_v1  ;;  %v1176_v1 = vadd.f32 %v1175_v31, %v1148_v50  ;;  %v1088_v5 = vadd.f32 %v1087_v36, %v2428_v2 }
 0x174   :  { %v1015_v48 = vadd.f32 %v1014_v7, %v971_v42 }
 0x175   :  { %v1177_v53 = vadd.f32 %v1176_v1, %v1151_v32  ;;  %v1089_v7 = vadd.f32 %v1088_v5, %v2433_v47  ;;  %v1097_v5 = vadd.f32 %v2444_v22, %v2441_v9  ;;  %v1141_v47 = vmul.f32 %v2456_v52, %v2456_v52 }
 0x176   :  { %v2487_v43 = vpop.f32.mrf.mxu0  ;;  %v2492_v45 = vadd.f32 %v1057_v56, %v1015_v48  ;;  %v1152_v2 = vmul.f32 %v2485_v19, %v2485_v19 }
 0x177   :  { %v1178_v0 = vadd.f32 %v1177_v53, %v1154_v40  ;;  %v1090_v42 = vadd.f32 %v1089_v7, %v2438_v58 }
 0x179   :  { %v2497_v37 = vpop.f32.mrf.mxu3  ;;  %v1179_v39 = vadd.f32 %v1178_v0, %v1157_v54  ;;  %v1091_v50 = vrot.slane %v1090_v42, 4  ;;  %v1137_v54 = vmul.f32 %v2444_v22, %v2444_v22 }
 0x17a   :  { %v933_v62 = vpop.f32.mrf.mxu1 }
 0x17b   :  { %v2502_v44 = vpop.f32.mrf.mxu2  ;;  %v1180_v59 = vadd.f32 %v1179_v39, %v1160_v34  ;;  %v1092_v32 = vadd.f32 %v1091_v50, %v1090_v42  ;;  %v1134_v34 = vmul.f32 %v2441_v9, %v2441_v9  ;;  %v1140_v39 = vmul.f32 %v2449_v24, %v2449_v24 }
 0x17c   :  { %v1018_v30 = vadd.f32 %v2497_v37, %v2502_v44 }
 0x17d   :  { %v1181_v26 = vadd.f32 %v1180_v59, %v1163_v61  ;;  %v1093_v53 = vrot.slane %v1092_v32, 2  ;;  %v1190_v7 = vadd.f32 %v1137_v54, %v1134_v34  ;;  %v1098_v59 = vadd.f32 %v1097_v5, %v2449_v24 }
 0x17e   :  { %v2507_v56 = vpop.f32.mrf.mxu0  ;;  %v1149_v34 = vmul.f32 %v2466_v6, %v2466_v6  ;;  %v2548_v5 = vadd.f32 %v933_v62, %v2403_v51 }
 0x17f   :  { %v1182_v27 = vadd.f32 %v1181_v26, %v1166_v12  ;;  %v1094_v61 = vadd.f32 %v1093_v53, %v1092_v32  ;;  %v1143_v12 = vmul.f32 %v2454_v20, %v2454_v20  ;;  %v1099_v50 = vadd.f32 %v1098_v59, %v2454_v20 }
 0x180   :  { %v1138_v32 = vmul.f32 %v2451_v25, %v2451_v25  ;;  %v1115_v59 = vadd.f32 %v2451_v25, %v2446_v17 }
 0x181   :  { %v2515_v11 = vpop.f32.mrf.mxu3  ;;  %v1183_v28 = vadd.f32 %v1182_v27, %v1169_v18  ;;  %v1191_v27 = vadd.f32 %v1190_v7, %v1140_v39  ;;  %v1095_v58 = vrot.slane %v1094_v61, 1  ;;  %v1100_v54 = vadd.f32 %v1099_v50, %v2459_v15 }
 0x182   :  { %v936_v48 = vpop.f32.mrf.mxu1  ;;  %v1135_v7 = vmul.f32 %v2446_v17, %v2446_v17 }
 0x183   :  { %v976_v4 = vpop.f32.mrf.mxu2  ;;  %v1184_v1 = vrot.slane %v1183_v28, 4  ;;  %v1192_v53 = vadd.f32 %v1191_v27, %v1143_v12  ;;  %v1101_v50 = vadd.f32 %v1100_v54, %v2466_v6  ;;  %v2562_v51 = vadd.f32 %v936_v48, %v2411_v23 }
 0x184   :  { %v1208_v62 = vadd.f32 %v1138_v32, %v1135_v7  ;;  %v1147_v7 = vmul.f32 %v2471_v3, %v2471_v3 }
 0x185   :  { %v1185_v36 = vadd.f32 %v1184_v1, %v1183_v28  ;;  %v1146_v28 = vmul.f32 %v2459_v15, %v2459_v15 }
 0x186   :  { %v2522_v8 = vpop.f32.mrf.mxu0  ;;  %v1209_v48 = vadd.f32 %v1208_v62, %v1141_v47  ;;  %v1150_v47 = vmul.f32 %v2492_v45, %v2492_v45 }
 0x187   :  { %v1186_v26 = vrot.slane %v1185_v36, 2  ;;  %v1193_v27 = vadd.f32 %v1192_v53, %v1146_v28  ;;  %v1102_v28 = vadd.f32 %v1101_v50, %v2485_v19  ;;  %v1155_v53 = vmul.f32 %v2548_v5, %v2548_v5 }
 0x188   :  { %v2588_v50 = vadd.f32 %v2487_v43, %v1018_v30 }
 0x189   :  { %v1022_v31 = vpop.f32.mrf.mxu3  ;;  %v2550_v39 = vadd.f32 %v1186_v26, %v1185_v36  ;;  %v1116_v36 = vadd.f32 %v1115_v59, %v2456_v52  ;;  %v1144_v26 = vmul.f32 %v2461_v57, %v2461_v57  ;;  %v1194_v21 = vadd.f32 %v1193_v27, %v1149_v34 }
 0x18a   :  { %v938_v40 = vpop.f32.mrf.mxu1  ;;  %v1020_v59 = vadd.f32 %v2515_v11, %v976_v4  ;;  %v1103_v44 = vadd.f32 %v1102_v28, %v2548_v5  ;;  %v1158_v34 = vmul.f32 %v2562_v51, %v2562_v51 }
 0x18b   :  { %v979_v35 = vpop.f32.mrf.mxu2  ;;  %v2573_v54 = vadd.f32 %v938_v40, %v2416_v38  ;;  %v1117_v32 = vadd.f32 %v1116_v36, %v2461_v57  ;;  %v1195_v37 = vadd.f32 %v1194_v21, %v1152_v2  ;;  %v1210_v40 = vadd.f32 %v1209_v48, %v1144_v26 }
 0x18c   :  { %v1023_v62 = vadd.f32 %v1022_v31, %v979_v35  ;;  %v1104_v21 = vadd.f32 %v1103_v44, %v2562_v51  ;;  %v2598_v36 = vadd.f32 %v2507_v56, %v1020_v59 }
 0x18d   :  { %v1196_v11 = vadd.f32 %v1195_v37, %v1155_v53  ;;  %v1161_v2 = vmul.f32 %v2573_v54, %v2573_v54  ;;  %v1211_v30 = vadd.f32 %v1210_v40, %v1147_v7 }
 0x18e   :  { %v2524_v41 = vpop.f32.mrf.mxu0  ;;  %v1105_v31 = vadd.f32 %v1104_v21, %v2573_v54  ;;  %v1156_v7 = vmul.f32 %v2598_v36, %v2598_v36 }
 0x18f   :  { %v1197_v43 = vadd.f32 %v1196_v11, %v1158_v34  ;;  %v1212_v56 = vadd.f32 %v1211_v30, %v1150_v47 }
 0x191   :  { %v1024_v0 = vpop.f32.mrf.mxu3 }
 0x192   :  { %v941_v18 = vpop.f32.mrf.mxu1 }
 0x193   :  { %v981_v42 = vpop.f32.mrf.mxu2  ;;  %v2583_v27 = vadd.f32 %v941_v18, %v2425_v63  ;;  %v1096_v63 = vadd.f32 %v1095_v58, %v1094_v61  ;;  %v1118_v18 = vadd.f32 %v1117_v32, %v2471_v3  ;;  %v1198_v61 = vadd.f32 %v1197_v43, %v1161_v2 }
 0x194   :  { %v1025_v26 = vadd.f32 %v1024_v0, %v981_v42 }
 0x195   :  { %2999 = vst [vmem:[#allocation21_spill] sm:$0xff] %v2583_v27  ;;  %v1164_v35 = vmul.f32 %v2583_v27, %v2583_v27  ;;  %v1119_v53 = vadd.f32 %v1118_v18, %v2492_v45  ;;  %v1106_v0 = vadd.f32 %v1105_v31, %v2583_v27  ;;  %v2745_v27 = vld [vmem:[#allocation7 + $0x8c] sm:$0xf] }
 0x196   :  { %v2540_v1 = vpop.f32.mrf.mxu0  ;;  %v2616_v59 = vadd.f32 %v2524_v41, %v1025_v26  ;;  %3010 = vst [vmem:[#allocation32_spill] sm:$0xff] %v2745_v27 }
 0x197   :  { %v1120_v32 = vadd.f32 %v1119_v53, %v2588_v50 }
 0x198   :  { %3001 = vst [vmem:[#allocation23_spill] sm:$0xff] %v2616_v59 }
 0x199   :  { %v1027_v12 = vpop.f32.mrf.mxu3 }
 0x19a   :  { %v943_v16 = vpop.f32.mrf.mxu1 }
 0x19b   :  { %v984_v23 = vpop.f32.mrf.mxu2  ;;  %v2594_v4 = vadd.f32 %v943_v16, %v2430_v46  ;;  %v1153_v16 = vmul.f32 %v2588_v50, %v2588_v50  ;;  %v2607_v46 = vadd.f32 %v2522_v8, %v1023_v62  ;;  %v1121_v62 = vadd.f32 %v1120_v32, %v2598_v36 }
 0x19c   :  { %v1028_v58 = vadd.f32 %v1027_v12, %v984_v23  ;;  %v1188_v12 = vrot.slane %v2550_v39, 1  ;;  %v1199_v23 = vadd.f32 %v1198_v61, %v1164_v35  ;;  %v2638_v35 = vmul.f32 0.010204081, %v1096_v63 }
 0x19d   :  { %3000 = vst [vmem:[#allocation22_spill] sm:$0xff] %v2594_v4  ;;  %v1167_v42 = vmul.f32 %v2594_v4, %v2594_v4  ;;  %v1107_v44 = vadd.f32 %v1106_v0, %v2594_v4  ;;  %v1213_v47 = vadd.f32 %v1212_v56, %v1153_v16  ;;  %v1159_v11 = vmul.f32 %v2607_v46, %v2607_v46  ;;  %v2751_v4 = vld [vmem:[#allocation7 + $0x90] sm:$0xff] }
 0x19e   :  { %v1072_v38 = vpop.f32.mrf.mxu0  ;;  %v2627_v41 = vadd.f32 %v2540_v1, %v1028_v58  ;;  %v1189_v31 = vadd.f32 %v1188_v12, %v2550_v39 }
 0x19f   :  { %v1200_v21 = vadd.f32 %v1199_v23, %v1167_v42  ;;  %v1214_v26 = vadd.f32 %v1213_v47, %v1156_v7 }
 0x1a0   :  { %3003 = vst [vmem:[#allocation25_spill] sm:$0xff] %v2627_v41  ;;  %v1165_v56 = vmul.f32 %v2627_v41, %v2627_v41  ;;  %v1229_v7 = vmul.f32 0.010204081, %v1189_v31 }
 0x1a1   :  { %v1029_v28 = vpop.f32.mrf.mxu3  ;;  %v1215_v16 = vadd.f32 %v1214_v26, %v1159_v11 }
 0x1a2   :  { %v946_v8 = vpop.f32.mrf.mxu1 }
 0x1a3   :  { %v986_v48 = vpop.f32.mrf.mxu2  ;;  %v2621_v34 = vadd.f32 %v946_v8, %v2435_v55  ;;  %v1122_v55 = vadd.f32 %v1121_v62, %v2607_v46 }
 0x1a4   :  { %v1030_v37 = vadd.f32 %v1029_v28, %v986_v48  ;;  %v1162_v28 = vmul.f32 %v2616_v59, %v2616_v59 }
 0x1a5   :  { %3002 = vst [vmem:[#allocation24_spill] sm:$0xff] %v2621_v34  ;;  %v1108_v2 = vadd.f32 %v1107_v44, %v2621_v34  ;;  %v1170_v18 = vmul.f32 %v2621_v34, %v2621_v34  ;;  %v1123_v58 = vadd.f32 %v1122_v55, %v2616_v59  ;;  %v2732_v34 = vld [vmem:[#allocation7 + $0x78] sm:$0xff] }
 0x1a6   :  { %v1075_v40 = vpop.f32.mrf.mxu0  ;;  %v2635_v30 = vadd.f32 %v1072_v38, %v1030_v37  ;;  %v1216_v48 = vadd.f32 %v1215_v16, %v1162_v28  ;;  %v1232_v37 = vmul.f32 %v2638_v35, %v2638_v35  ;;  %3007 = vst [vmem:[#allocation29_spill] sm:$0xff] %v2732_v34 }
 0x1a7   :  { %v1109_v1 = vrot.slane %v1108_v2, 4  ;;  %v1201_v53 = vadd.f32 %v1200_v21, %v1170_v18  ;;  %v1124_v38 = vadd.f32 %v1123_v58, %v2627_v41 }
 0x1a8   :  { %3004 = vst [vmem:[#allocation26_spill] sm:$0xff] %v2635_v30  ;;  %v1168_v32 = vmul.f32 %v2635_v30, %v2635_v30  ;;  %v1217_v44 = vadd.f32 %v1216_v48, %v1165_v56  ;;  %v1235_v28 = vsub.f32 %v1229_v7, %v1232_v37 }
 0x1a9   :  { %v1032_v43 = vpop.f32.mrf.mxu3  ;;  %v1110_v61 = vadd.f32 %v1109_v1, %v1108_v2  ;;  %v1202_v0 = vrot.slane %v1201_v53, 4  ;;  %v1125_v47 = vadd.f32 %v1124_v38, %v2635_v30 }
 0x1aa   :  { %v948_v63 = vpop.f32.mrf.mxu1  ;;  %v1218_v2 = vadd.f32 %v1217_v44, %v1168_v32 }
 0x1ab   :  { %v989_v42 = vpop.f32.mrf.mxu2  ;;  %v1111_v8 = vrot.slane %v1110_v61, 2  ;;  %v1203_v12 = vadd.f32 %v1202_v0, %v1201_v53 }
 0x1ac   :  { %v1033_v39 = vadd.f32 %v1032_v43, %v989_v42  ;;  %v1238_v42 = vmax.f32 %v1235_v28, 0.0 }
 0x1ad   :  { %v1112_v11 = vadd.f32 %v1111_v8, %v1110_v61  ;;  %v1204_v21 = vrot.slane %v1203_v12, 2 }
 0x1ae   :  { %v1077_v23 = vpop.f32.mrf.mxu0  ;;  %v2649_v62 = vadd.f32 %v1075_v40, %v1033_v39  ;;  %v1242_v8 = vadd.f32 1e-05, %v1238_v42 }
 0x1af   :  { %v1113_v43 = vrot.slane %v1112_v11, 1  ;;  %v1205_v31 = vadd.f32 %v1204_v21, %v1203_v12 }
 0x1b0   :  { %3005 = vst [vmem:[#allocation27_spill] sm:$0xff] %v2649_v62  ;;  %v1126_v18 = vadd.f32 %v1125_v47, %v2649_v62  ;;  %v1171_v26 = vmul.f32 %v2649_v62, %v2649_v62  ;;  %2078 = vrsqrt.f32 %v1242_v8  ;;  %vm1251_vm6 = vweird.f32 %v1242_v8 }
 0x1b1   :  { %v1034_v55 = vpop.f32.mrf.mxu3  ;;  %v1114_v16 = vadd.f32 %v1113_v43, %v1112_v11  ;;  %v1206_v58 = vrot.slane %v1205_v31, 1 }
 0x1b2   :  { %v1127_v1 = vrot.slane %v1126_v18, 4  ;;  %v1219_v53 = vadd.f32 %v1218_v2, %v1171_v26 }
 0x1b3   :  { %v991_v56 = vpop.f32.mrf.mxu2  ;;  %v1207_v61 = vadd.f32 %v1206_v58, %v1205_v31  ;;  %v2654_v48 = vmul.f32 0.010204081, %v1114_v16 }
 0x1b4   :  { %v1128_v0 = vadd.f32 %v1127_v1, %v1126_v18  ;;  %v1220_v40 = vrot.slane %v1219_v53, 4 }
 0x1b5   :  { %v1230_v39 = vmul.f32 0.010204081, %v1207_v61  ;;  %v1233_v63 = vmul.f32 %v2654_v48, %v2654_v48 }
 0x1b6   :  { %v1129_v38 = vrot.slane %v1128_v0, 2  ;;  %v1221_v32 = vadd.f32 %v1220_v40, %v1219_v53  ;;  %v2079_v31 = vpop.eup %2078 }
 0x1b7   :  { %v1236_v12 = vsub.f32 %v1230_v39, %v1233_v63  ;;  %v1246_v16 = vmul.f32 %v2079_v31, %v1242_v8  ;;  %vm1252_vm4 = vweird.f32 %v2079_v31 }
 0x1b8   :  { %v1130_v7 = vadd.f32 %v1129_v38, %v1128_v0  ;;  %v1222_v37 = vrot.slane %v1221_v32, 2  ;;  %vm1253_vm9 = vmor %vm1251_vm6, %vm1252_vm4 }
 0x1b9   :  { %v1239_v47 = vmax.f32 %v1236_v12, 0.0  ;;  %v1247_v40 = vmul.f32 %v2079_v31, %v1246_v16 }
 0x1ba   :  { %v1131_v23 = vrot.slane %v1130_v7, 1  ;;  %v1223_v44 = vadd.f32 %v1222_v37, %v1221_v32 }
 0x1bb   :  { %v1243_v2 = vadd.f32 1e-05, %v1239_v47  ;;  %v1248_v32 = vmul.f32 0.5, %v1247_v40 }
 0x1bc   :  { %v1132_v11 = vadd.f32 %v1131_v23, %v1130_v7  ;;  %v1224_v21 = vrot.slane %v1223_v44, 1 }
 0x1bd   :  { %2080 = vrsqrt.f32 %v1243_v2  ;;  %v1249_v37 = vsub.f32 1.5, %v1248_v32  ;;  %vm1261_vm1 = vweird.f32 %v1243_v2  ;;  %v2677_v32 = vld [vmem:[#allocation7 + $0x14] sm:$0xf] }
 0x1be   :  { %v1225_v18 = vadd.f32 %v1224_v21, %v1223_v44  ;;  %v1228_v26 = vmul.f32 0.010204081, %v1132_v11 }
 0x1bf   :  { %v1250_v47 = vmul.f32 %v2079_v31, %v1249_v37 }
 0x1c0   :  { %v1231_v55 = vmul.f32 0.010204081, %v1225_v18  ;;  %v1234_v28 = vmul.f32 %v1228_v26, %v1228_v26 }
 0x1c2   :  { %v1237_v43 = vsub.f32 %v1231_v55, %v1234_v28  ;;  %v1254_v55 = vsel %vm1253_vm9, %v2079_v31, %v1250_v47  ;;  %v2669_v31 = vld [vmem:[#allocation7] sm:$0xff] }
 0x1c3   :  { %v2081_v53 = vpop.eup %2080  ;;  %v1287_v47 = vld [vmem:[#allocation8 + $0x1] ss:$2 sm:$0x7] }
 0x1c4   :  { %v1240_v1 = vmax.f32 %v1237_v43, 0.0  ;;  %v1256_v58 = vmul.f32 %v2081_v53, %v1243_v2  ;;  %vm1262_vm0 = vweird.f32 %v2081_v53  ;;  %v1241_v43 = vld [vmem:[#allocation8] ss:$2 sm:$0x7] }
 0x1c5   :  { %vm1263_vm2 = vmor %vm1261_vm1, %vm1262_vm0 }
 0x1c6   :  { %v1244_v56 = vadd.f32 1e-05, %v1240_v1  ;;  %v1257_v0 = vmul.f32 %v2081_v53, %v1256_v58 }
 0x1c8   :  { %2082 = vrsqrt.f32 %v1244_v56  ;;  %v1258_v42 = vmul.f32 0.5, %v1257_v0  ;;  %vm1271_vm5 = vweird.f32 %v1244_v56 }
 0x1ca   :  { %v1259_v61 = vsub.f32 1.5, %v1258_v42  ;;  %v2671_v42 = vld [vmem:[#allocation7 + $0x8] sm:$0xf] }
 0x1cb   :  { %v3013_v34 = vunpack.c.l.bf16 %v2671_v42 }
 0x1cc   :  { %v1260_v63 = vmul.f32 %v2081_v53, %v1259_v61  ;;  %v2673_v61 = vld [vmem:[#allocation7 + $0xc] sm:$0xff] }
 0x1ce   :  { %v2083_v38 = vpop.eup %2082  ;;  %v1264_v23 = vsel %vm1263_vm2, %v2081_v53, %v1260_v63 }
 0x1cf   :  { %v1266_v39 = vmul.f32 %v2083_v38, %v1244_v56  ;;  %vm1272_vm3 = vweird.f32 %v2083_v38  ;;  %v1278_v11 = vrot.slane %v1264_v23, 7  ;;  %v2689_v23 = vld [vmem:[#allocation7 + $0x30] sm:$0xff] }
 0x1d0   :  { %vm1273_vm7 = vmor %vm1271_vm5, %vm1272_vm3 }
 0x1d1   :  { %v1267_v7 = vmul.f32 %v2083_v38, %v1266_v39  ;;  %v1281_v2 = vsel %vm1280_vm8, %v1254_v55, %v1278_v11  ;;  %v2679_v39 = vld [vmem:[#allocation7 + $0x18] sm:$0xff]  ;;  %v2700_v55 = vld [vmem:[#allocation7 + $0x48] sm:$0xff] }
 0x1d2   :  { %v2740_v11 = vld [vmem:[#allocation7 + $0x84] sm:$0xff] }
 0x1d3   :  { %v1268_v12 = vmul.f32 0.5, %v1267_v7  ;;  %v2683_v7 = vld [vmem:[#allocation7 + $0x24] sm:$0xff]  ;;  %3009 = vst [vmem:[#allocation31_spill] sm:$0xff] %v2740_v11  ;;  %v3012_v11 = vunpack.c.h.bf16 %v2669_v31 }
 0x1d5   :  { %v1269_v44 = vsub.f32 1.5, %v1268_v12 }
 0x1d7   :  { %v1270_v21 = vmul.f32 %v2083_v38, %v1269_v44  ;;  %v2691_v44 = vld [vmem:[#allocation7 + $0x38] sm:$0xf] }
 0x1d9   :  { %v1274_v18 = vsel %vm1273_vm7, %v2083_v38, %v1270_v21  ;;  %v2696_v21 = vld [vmem:[#allocation7 + $0x3c] sm:$0xff] }
 0x1da   :  { %v1279_v28 = vrot.slane %v1274_v18, 6  ;;  %v2698_v18 = vld [vmem:[#allocation7 + $0x44] sm:$0xf] }
 0x1dc   :  { %v1283_v1 = vsel %vm1282_vm10, %v1281_v2, %v1279_v28  ;;  %v2715_v2 = vld [vmem:[#allocation7 + $0x5c] sm:$0xf] }
 0x1dd   :  { %v1285_v53 = vmul.f32 %v1283_v1, %v1241_v43  ;;  %v2717_v43 = vld [vmem:[#allocation7 + $0x60] sm:$0xff] }
 0x1de   :  { %v2734_v1 = vld [vmem:[#allocation7 + $0x80] sm:$0xf] }
 0x1df   :  { %v2660_v16 = vperm.slane %v1285_v53, 1  ;;  %v2662_v58 = vperm.slane %v1285_v53, 2  ;;  %v2666_v56 = vperm.slane %v1285_v53, 0  ;;  %v2706_v53 = vld [vmem:[#allocation7 + $0x50] sm:$0xf]  ;;  %3008 = vst [vmem:[#allocation30_spill] sm:$0xff] %v2734_v1 }
 0x1e1   :  { %v1296_v8 = vmul.f32 %v2660_v16, %v2654_v48  ;;  %v1297_v0 = vmul.f32 %v2662_v58, %v1228_v26  ;;  %v1295_v38 = vmul.f32 %v2666_v56, %v2638_v35  ;;  %v2681_v48 = vld [vmem:[#allocation7 + $0x20] sm:$0xf]  ;;  %v2685_v26 = vld [vmem:[#allocation7 + $0x2c] sm:$0xf]  ;;  %v1372_v62 = vmul.f32 %v2666_v56, %v2363_v13 }
 0x1e2   :  { %v1373_v35 = vmul.f32 %v2660_v16, %v2441_v9  ;;  %v1374_v30 = vmul.f32 %v2662_v58, %v2446_v17  ;;  %v1376_v13 = vmul.f32 %v2660_v16, %v2444_v22  ;;  %v1377_v9 = vmul.f32 %v2662_v58, %v2451_v25 }
 0x1e3   :  { %v1301_v40 = vrot.slane %v1296_v8, 7  ;;  %v1302_v63 = vrot.slane %v1297_v0, 6  ;;  %v2708_v8 = vld [vmem:[#allocation7 + $0x54] sm:$0xff]  ;;  %v2722_v0 = vld [vmem:[#allocation7 + $0x68] sm:$0xf]  ;;  %v3011_v22 = vunpack.c.l.bf16 %v2669_v31  ;;  %v1379_v59 = vmul.f32 %v2660_v16, %v2449_v24 }
 0x1e4   :  { %v1412_v25 = vadd.f32 %v1373_v35, %v3012_v11  ;;  %v3016_v31 = vunpack.c.l.bf16 %v2677_v32  ;;  %v1384_v32 = vmul.f32 %v2666_v56, %v2387_v49 }
 0x1e5   :  { %v1303_v12 = vsel %vm1280_vm8, %v1295_v38, %v1301_v40  ;;  %v2724_v40 = vld [vmem:[#allocation7 + $0x6c] sm:$0xff]  ;;  %v2726_v38 = vld [vmem:[#allocation7 + $0x74] sm:$0xf]  ;;  %v1411_v27 = vadd.f32 %v1372_v62, %v3011_v22  ;;  %v3015_v62 = vunpack.c.h.bf16 %v2673_v61 }
 0x1e6   :  { %v1304_v28 = vsel %vm1282_vm10, %v1303_v12, %v1302_v63  ;;  %3006 = vst [vmem:[#allocation28_spill] sm:$0xff] %v2726_v38  ;;  %v2758_v63 = vld [vmem:[#allocation7 + $0x98] sm:$0xf]  ;;  %v1378_v12 = vmul.f32 %v2666_v56, %v2375_v29  ;;  %v3014_v38 = vunpack.c.l.bf16 %v2673_v61  ;;  %v1381_v29 = vmul.f32 %v2666_v56, %v2379_v33 }
 0x1e7   :  { %v1306_v41 = vsub.f32 %v1287_v47, %v1304_v28  ;;  %v1375_v47 = vmul.f32 %v2666_v56, %v2367_v14  ;;  %v1380_v28 = vmul.f32 %v2662_v58, %v2456_v52  ;;  %v1415_v22 = vadd.f32 %v1376_v13, %v3015_v62 }
 0x1e8   :  { %v1416_v35 = vadd.f32 %v1377_v9, %v3016_v31  ;;  %v1382_v52 = vmul.f32 %v2660_v16, %v2454_v20  ;;  %v1383_v33 = vmul.f32 %v2662_v58, %v2461_v57  ;;  %v3017_v61 = vunpack.c.l.bf16 %v2679_v39 }
 0x1e9   :  { %v2771_v37 = vperm.slane %v1306_v41, 0  ;;  %v2776_v1 = vperm.slane %v1306_v41, 1  ;;  %v2778_v17 = vperm.slane %v1306_v41, 2  ;;  %v1413_v41 = vadd.f32 %v1374_v30, %v3013_v34 }
 0x1ea   :  { %v1414_v14 = vadd.f32 %v1375_v47, %v3014_v38  ;;  %v1417_v11 = vadd.f32 %v1378_v12, %v3017_v61  ;;  %v1385_v38 = vmul.f32 %v2660_v16, %v2459_v15  ;;  %v3018_v47 = vunpack.c.h.bf16 %v2679_v39 }
 0x1eb   :  { %v1457_v24 = vadd.f32 %v2771_v37, %v1411_v27  ;;  %v1458_v42 = vadd.f32 %v2776_v1, %v1412_v25  ;;  %v1459_v34 = vadd.f32 %v2778_v17, %v1413_v41  ;;  %v1461_v27 = vadd.f32 %v2776_v1, %v1415_v22 }
 0x1ec   :  { %v1460_v30 = vadd.f32 %v2771_v37, %v1414_v14  ;;  %v1418_v13 = vadd.f32 %v1379_v59, %v3018_v47  ;;  %v1462_v9 = vadd.f32 %v2778_v17, %v1416_v35  ;;  %v3019_v20 = vunpack.c.l.bf16 %v2681_v48 }
 0x1ed   :  { %v3020_v57 = vunpack.c.l.bf16 %v2683_v7  ;;  %v1463_v12 = vadd.f32 %v2771_v37, %v1417_v11  ;;  %v1496_v41 = vmax.f32 %v1457_v24, 0.0  ;;  %v1497_v49 = vmax.f32 %v1458_v42, 0.0 }
 0x1ee   :  { %v1419_v14 = vadd.f32 %v1380_v28, %v3019_v20  ;;  %v1464_v62 = vadd.f32 %v2776_v1, %v1418_v13  ;;  %v1498_v22 = vmax.f32 %v1459_v34, 0.0  ;;  %v1499_v31 = vmax.f32 %v1460_v30, 0.0 }
 0x1ef   :  { %v1420_v25 = vadd.f32 %v1381_v29, %v3020_v57  ;;  %v1386_v15 = vmul.f32 %v2662_v58, %v2471_v3  ;;  %v3021_v59 = vunpack.c.h.bf16 %v2683_v7  ;;  %v1500_v28 = vmax.f32 %v1461_v27, 0.0  ;;  %1535 = vst [vmem:[#allocation10] sm:$0xff] %v1496_v41  ;;  %v3028_v41 = vld [vmem:[#allocation15_spill] sm:$0xff] }
 0x1f0   :  { %v1465_v48 = vadd.f32 %v2778_v17, %v1419_v14  ;;  %v1387_v29 = vmul.f32 %v2666_v56, %v2391_v60  ;;  %v3022_v24 = vunpack.c.l.bf16 %v2685_v26  ;;  %v1501_v34 = vmax.f32 %v1462_v9, 0.0  ;;  %1536 = vst [vmem:[#allocation10 + $0x8] sm:$0xff] %v1497_v49 }
 0x1f1   :  { %v1421_v39 = vadd.f32 %v1382_v52, %v3021_v59  ;;  %v1466_v42 = vadd.f32 %v2771_v37, %v1420_v25  ;;  %v1388_v3 = vmul.f32 %v2660_v16, %v2466_v6  ;;  %v3023_v7 = vunpack.c.l.bf16 %v2689_v23  ;;  %1537 = vst [vmem:[#allocation10 + $0x10] sm:$0xff] %v1498_v22 }
 0x1f2   :  { %v1422_v35 = vadd.f32 %v1383_v33, %v3022_v24  ;;  %v1502_v61 = vmax.f32 %v1463_v12, 0.0  ;;  %v1389_v60 = vmul.f32 %v2662_v58, %v2492_v45  ;;  %v3024_v26 = vunpack.c.h.bf16 %v2689_v23  ;;  %1538 = vst [vmem:[#allocation10 + $0x18] sm:$0xff] %v1499_v31 }
 0x1f3   :  { %v1423_v30 = vadd.f32 %v1384_v32, %v3023_v7  ;;  %v1467_v52 = vadd.f32 %v2776_v1, %v1421_v39  ;;  %v1503_v27 = vmax.f32 %v1464_v62, 0.0  ;;  %v1390_v6 = vmul.f32 %v2666_v56, %v2400_v10  ;;  %1539 = vst [vmem:[#allocation10 + $0x20] sm:$0xff] %v1500_v28 }
 0x1f4   :  { %v1424_v33 = vadd.f32 %v1385_v38, %v3024_v26  ;;  %v1468_v11 = vadd.f32 %v2778_v17, %v1422_v35  ;;  %v3025_v47 = vunpack.c.l.bf16 %v2691_v44  ;;  %v1504_v9 = vmax.f32 %v1465_v48, 0.0  ;;  %1540 = vst [vmem:[#allocation10 + $0x28] sm:$0xff] %v1501_v34  ;;  %v3032_v35 = vld [vmem:[#allocation16_spill] sm:$0xff] }
 0x1f5   :  { %v1469_v13 = vadd.f32 %v2771_v37, %v1423_v30  ;;  %v1391_v45 = vmul.f32 %v2660_v16, %v2485_v19  ;;  %v3026_v23 = vunpack.c.l.bf16 %v2696_v21  ;;  %v1505_v14 = vmax.f32 %v1466_v42, 0.0  ;;  %1541 = vst [vmem:[#allocation10 + $0x30] sm:$0xff] %v1502_v61 }
 0x1f6   :  { %v1425_v32 = vadd.f32 %v1386_v15, %v3025_v47  ;;  %v1470_v20 = vadd.f32 %v2776_v1, %v1424_v33  ;;  %v1392_v10 = vmul.f32 %v2662_v58, %v2588_v50  ;;  %v3027_v44 = vunpack.c.h.bf16 %v2696_v21  ;;  %1542 = vst [vmem:[#allocation10 + $0x38] sm:$0xff] %v1503_v27  ;;  %v3036_v27 = vld [vmem:[#allocation17_spill] sm:$0xff] }
 0x1f7   :  { %v1426_v38 = vadd.f32 %v1387_v29, %v3026_v23  ;;  %v1506_v12 = vmax.f32 %v1467_v52, 0.0  ;;  %v1393_v19 = vmul.f32 %v2666_v56, %v3028_v41  ;;  %v3029_v62 = vunpack.c.l.bf16 %v2698_v18  ;;  %1543 = vst [vmem:[#allocation10 + $0x40] sm:$0xff] %v1504_v9 }
 0x1f8   :  { %v1427_v57 = vadd.f32 %v1388_v3, %v3027_v44  ;;  %v1471_v25 = vadd.f32 %v2778_v17, %v1425_v32  ;;  %v1507_v31 = vmax.f32 %v1468_v11, 0.0  ;;  %v1394_v50 = vmul.f32 %v2660_v16, %v2548_v5  ;;  %1544 = vst [vmem:[#allocation10 + $0x48] sm:$0xff] %v1505_v14 }
 0x1f9   :  { %v1428_v49 = vadd.f32 %v1389_v60, %v3029_v62  ;;  %v1472_v22 = vadd.f32 %v2771_v37, %v1426_v38  ;;  %v3030_v21 = vunpack.c.l.bf16 %v2700_v55  ;;  %v1508_v39 = vmax.f32 %v1469_v13, 0.0  ;;  %1545 = vst [vmem:[#allocation10 + $0x50] sm:$0xff] %v1506_v12  ;;  %v3039_v38 = vld [vmem:[#allocation23_spill] sm:$0xff]  ;;  %v3043_v62 = vld [vmem:[#allocation21_spill] sm:$0xff] }
 0x1fa   :  { %v1473_v59 = vadd.f32 %v2776_v1, %v1427_v57  ;;  %v1395_v48 = vmul.f32 %v2662_v58, %v2598_v36  ;;  %v3031_v18 = vunpack.c.h.bf16 %v2700_v55  ;;  %v1509_v24 = vmax.f32 %v1470_v20, 0.0  ;;  %1546 = vst [vmem:[#allocation10 + $0x58] sm:$0xff] %v1507_v31  ;;  %v3041_v57 = vld [vmem:[#allocation18_spill] sm:$0xff] }
 0x1fb   :  { %v1429_v15 = vadd.f32 %v1390_v6, %v3030_v21  ;;  %v1474_v29 = vadd.f32 %v2778_v17, %v1428_v49  ;;  %v1396_v5 = vmul.f32 %v2666_v56, %v3032_v35  ;;  %v3033_v42 = vunpack.c.l.bf16 %v2706_v53  ;;  %1547 = vst [vmem:[#allocation10 + $0x60] sm:$0xff] %v1508_v39  ;;  %v3045_v21 = vld [vmem:[#allocation25_spill] sm:$0xff] }
 0x1fc   :  { %v1430_v28 = vadd.f32 %v1391_v45, %v3031_v18  ;;  %v1510_v7 = vmax.f32 %v1471_v25, 0.0  ;;  %v1397_v36 = vmul.f32 %v2660_v16, %v2562_v51  ;;  %v3034_v55 = vunpack.c.l.bf16 %v2708_v8  ;;  %1548 = vst [vmem:[#allocation10 + $0x68] sm:$0xff] %v1509_v24  ;;  %v3047_v18 = vld [vmem:[#allocation19_spill] sm:$0xff] }
 0x1fd   :  { %v1431_v34 = vadd.f32 %v1392_v10, %v3033_v42  ;;  %v1475_v3 = vadd.f32 %v2771_v37, %v1429_v15  ;;  %v1511_v61 = vmax.f32 %v1472_v22, 0.0  ;;  %v1398_v60 = vmul.f32 %v2662_v58, %v2607_v46 }
 0x1fe   :  { %v1432_v30 = vadd.f32 %v1393_v19, %v3034_v55  ;;  %v1476_v52 = vadd.f32 %v2776_v1, %v1430_v28  ;;  %v3035_v53 = vunpack.c.h.bf16 %v2708_v8  ;;  %v1512_v11 = vmax.f32 %v1473_v59, 0.0  ;;  %1549 = vst [vmem:[#allocation10 + $0x70] sm:$0xff] %v1510_v7  ;;  %v3051_v7 = vld [vmem:[#allocation29_spill] sm:$0xff] }
 0x1ff   :  { %v1477_v33 = vadd.f32 %v2778_v17, %v1431_v34  ;;  %v1399_v51 = vmul.f32 %v2666_v56, %v3036_v27  ;;  %v3037_v6 = vunpack.c.l.bf16 %v2715_v2  ;;  %v1513_v13 = vmax.f32 %v1474_v29, 0.0  ;;  %1550 = vst [vmem:[#allocation10 + $0x78] sm:$0xff] %v1511_v61  ;;  %v3048_v29 = vld [vmem:[#allocation28_spill] sm:$0xff]  ;;  %v3050_v34 = vld [vmem:[#allocation22_spill] sm:$0xff] }
 0x200   :  { %v1433_v26 = vadd.f32 %v1394_v50, %v3035_v53  ;;  %v1478_v32 = vadd.f32 %v2771_v37, %v1432_v30  ;;  %v1400_v46 = vmul.f32 %v2660_v16, %v2573_v54  ;;  %v3038_v8 = vunpack.c.l.bf16 %v2717_v43  ;;  %1551 = vst [vmem:[#allocation10 + $0x80] sm:$0xff] %v1512_v11  ;;  %v3055_v11 = vld [vmem:[#allocation20_spill] sm:$0xff] }
 0x201   :  { %v1434_v47 = vadd.f32 %v1395_v48, %v3037_v6  ;;  %v1514_v23 = vmax.f32 %v1475_v3, 0.0  ;;  %v1401_v20 = vmul.f32 %v2662_v58, %v3039_v38  ;;  %v3040_v2 = vunpack.c.h.bf16 %v2717_v43  ;;  %1552 = vst [vmem:[#allocation10 + $0x88] sm:$0xff] %v1513_v13 }
 0x202   :  { %v1435_v9 = vadd.f32 %v1396_v5, %v3038_v8  ;;  %v1479_v45 = vadd.f32 %v2776_v1, %v1433_v26  ;;  %v1515_v44 = vmax.f32 %v1476_v52, 0.0  ;;  %v1402_v54 = vmul.f32 %v2666_v56, %v3041_v57  ;;  %v3053_v52 = vld [vmem:[#allocation26_spill] sm:$0xff] }
 0x203   :  { %v1436_v14 = vadd.f32 %v1397_v36, %v3040_v2  ;;  %v1480_v10 = vadd.f32 %v2778_v17, %v1434_v47  ;;  %v3042_v25 = vunpack.c.l.bf16 %v2722_v0  ;;  %v1516_v19 = vmax.f32 %v1477_v33, 0.0  ;;  %1553 = vst [vmem:[#allocation10 + $0x90] sm:$0xff] %v1514_v23  ;;  %v3061_v2 = vld [vmem:[#allocation27_spill] sm:$0xff] }
 0x204   :  { %v1481_v41 = vadd.f32 %v2771_v37, %v1435_v9  ;;  %v1403_v49 = vmul.f32 %v2660_v16, %v3043_v62  ;;  %v3044_v43 = vunpack.c.l.bf16 %v2724_v40  ;;  %v1517_v50 = vmax.f32 %v1478_v32, 0.0  ;;  %1554 = vst [vmem:[#allocation10 + $0x98] sm:$0xff] %v1515_v44  ;;  %v3059_v9 = vld [vmem:[#allocation31_spill] sm:$0xff] }
 0x205   :  { %v1437_v12 = vadd.f32 %v1398_v60, %v3042_v25  ;;  %v1482_v31 = vadd.f32 %v2776_v1, %v1436_v14  ;;  %v1404_v15 = vmul.f32 %v2662_v58, %v3045_v21  ;;  %v3046_v0 = vunpack.c.h.bf16 %v2724_v40  ;;  %1555 = vst [vmem:[#allocation10 + $0xa0] sm:$0xff] %v1516_v19 }
 0x206   :  { %v1438_v22 = vadd.f32 %v1399_v51, %v3044_v43  ;;  %v1518_v48 = vmax.f32 %v1479_v45, 0.0  ;;  %v1405_v28 = vmul.f32 %v2666_v56, %v3047_v18  ;;  %v3049_v24 = vunpack.c.l.bf16 %v3048_v29  ;;  %1556 = vst [vmem:[#allocation10 + $0xa8] sm:$0xff] %v1517_v50  ;;  %v3056_v51 = vld [vmem:[#allocation30_spill] sm:$0xff] }
 0x207   :  { %v1439_v59 = vadd.f32 %v1400_v46, %v3046_v0  ;;  %v1483_v39 = vadd.f32 %v2778_v17, %v1437_v12  ;;  %v1519_v42 = vmax.f32 %v1480_v10, 0.0  ;;  %v1406_v3 = vmul.f32 %v2660_v16, %v3050_v34  ;;  %v3058_v46 = vld [vmem:[#allocation24_spill] sm:$0xff] }
 0x208   :  { %v1440_v35 = vadd.f32 %v1401_v20, %v3049_v24  ;;  %v1484_v5 = vadd.f32 %v2771_v37, %v1438_v22  ;;  %v3052_v40 = vunpack.c.l.bf16 %v3051_v7  ;;  %v1520_v30 = vmax.f32 %v1481_v41, 0.0  ;;  %1557 = vst [vmem:[#allocation10 + $0xb0] sm:$0xff] %v1518_v48 }
 0x209   :  { %v1485_v55 = vadd.f32 %v2776_v1, %v1439_v59  ;;  %v1407_v61 = vmul.f32 %v2662_v58, %v3053_v52  ;;  %v3054_v60 = vunpack.c.h.bf16 %v3051_v7  ;;  %v1521_v33 = vmax.f32 %v1482_v31, 0.0  ;;  %1558 = vst [vmem:[#allocation10 + $0xb8] sm:$0xff] %v1519_v42 }
 0x20a   :  { %v1441_v36 = vadd.f32 %v1402_v54, %v3052_v40  ;;  %v1486_v26 = vadd.f32 %v2778_v17, %v1440_v35  ;;  %v1408_v27 = vmul.f32 %v2666_v56, %v3055_v11  ;;  %v3057_v6 = vunpack.c.l.bf16 %v3056_v51  ;;  %1559 = vst [vmem:[#allocation10 + $0xc0] sm:$0xff] %v1520_v30  ;;  %v3063_v54 = vld [vmem:[#allocation32_spill] sm:$0xff] }
 0x20b   :  { %v1442_v53 = vadd.f32 %v1403_v49, %v3054_v60  ;;  %v1522_v13 = vmax.f32 %v1483_v39, 0.0  ;;  %v1409_v8 = vmul.f32 %v2660_v16, %v3058_v46  ;;  %v3060_v45 = vunpack.c.l.bf16 %v3059_v9  ;;  %1560 = vst [vmem:[#allocation10 + $0xc8] sm:$0xff] %v1521_v33 }
 0x20c   :  { %v1443_v47 = vadd.f32 %v1404_v15, %v3057_v6  ;;  %v1487_v32 = vadd.f32 %v2771_v37, %v1441_v36  ;;  %v1523_v20 = vmax.f32 %v1484_v5, 0.0  ;;  %v1410_v56 = vmul.f32 %v2662_v58, %v3061_v2 }
 0x20d   :  { %v1444_v23 = vadd.f32 %v1405_v28, %v3060_v45  ;;  %v1488_v38 = vadd.f32 %v2776_v1, %v1442_v53  ;;  %v3062_v14 = vunpack.c.h.bf16 %v3059_v9  ;;  %v1524_v57 = vmax.f32 %v1485_v55, 0.0  ;;  %1561 = vst [vmem:[#allocation10 + $0xd0] sm:$0xff] %v1522_v13 }
 0x20e   :  { %v1489_v44 = vadd.f32 %v2778_v17, %v1443_v47  ;;  %v3064_v25 = vunpack.c.l.bf16 %v3063_v54  ;;  %v1525_v41 = vmax.f32 %v1486_v26, 0.0  ;;  %v3065_v19 = vunpack.c.l.bf16 %v2751_v4  ;;  %1562 = vst [vmem:[#allocation10 + $0xd8] sm:$0xff] %v1523_v20 }
 0x20f   :  { %v1445_v10 = vadd.f32 %v1406_v3, %v3062_v14  ;;  %v1490_v12 = vadd.f32 %v2771_v37, %v1444_v23  ;;  %v1526_v58 = vmax.f32 %v1487_v32, 0.0  ;;  %v3066_v43 = vunpack.c.h.bf16 %v2751_v4  ;;  %1563 = vst [vmem:[#allocation10 + $0xe0] sm:$0xff] %v1524_v57 }
 0x210   :  { %v1446_v16 = vadd.f32 %v1407_v61, %v3064_v25  ;;  %v1447_v62 = vadd.f32 %v1408_v27, %v3065_v19  ;;  %v1527_v50 = vmax.f32 %v1488_v38, 0.0  ;;  %v3067_v21 = vunpack.c.l.bf16 %v2758_v63  ;;  %1564 = vst [vmem:[#allocation10 + $0xe8] sm:$0xff] %v1525_v41 }
 0x211   :  { %v1491_v49 = vadd.f32 %v2776_v1, %v1445_v10  ;;  %v1448_v22 = vadd.f32 %v1409_v8, %v3066_v43  ;;  %v1528_v59 = vmax.f32 %v1489_v44, 0.0  ;;  %v1529_v48 = vmax.f32 %v1490_v12, 0.0  ;;  %1565 = vst [vmem:[#allocation10 + $0xf0] sm:$0xff] %v1526_v58 }
 0x212   :  { %v1492_v31 = vadd.f32 %v2778_v17, %v1446_v16  ;;  %v1449_v15 = vadd.f32 %v1410_v56, %v3067_v21  ;;  %v1493_v0 = vadd.f32 %v2771_v37, %v1447_v62  ;;  %1566 = vst [vmem:[#allocation10 + $0xf8] sm:$0xff] %v1527_v50 }
 0x213   :  { %v1494_v39 = vadd.f32 %v2776_v1, %v1448_v22  ;;  %v1530_v28 = vmax.f32 %v1491_v49, 0.0  ;;  %1567 = vst [vmem:[#allocation10 + $0x100] sm:$0xff] %v1528_v59 }
 0x214   :  { %v1495_v18 = vadd.f32 %v2778_v17, %v1449_v15  ;;  %v1531_v4 = vmax.f32 %v1492_v31, 0.0  ;;  %v1532_v29 = vmax.f32 %v1493_v0, 0.0  ;;  %1568 = vst [vmem:[#allocation10 + $0x108] sm:$0xff] %v1529_v48 }
 0x215   :  { %v1533_v37 = vmax.f32 %v1494_v39, 0.0  ;;  %1569 = vst [vmem:[#allocation10 + $0x110] sm:$0xff] %v1530_v28 }
 0x216   :  { %v1534_v63 = vmax.f32 %v1495_v18, 0.0  ;;  %1570 = vst [vmem:[#allocation10 + $0x118] sm:$0xff] %v1531_v4 }
 0x217   :  { %1571 = vst [vmem:[#allocation10 + $0x120] sm:$0xff] %v1532_v29 }
 0x218   :  { %1572 = vst [vmem:[#allocation10 + $0x128] sm:$0xff] %v1533_v37 }
 0x219   :  { %1573 = vst [vmem:[#allocation10 + $0x130] sm:$0xff] %v1534_v63 }
 0x21a   :  { %1586 = dma.vmem_to_hbm [thread:$0]  %s1579_s3, 4992, %s1581_s11, [#allocation4], %s2219_s12, %s2219_s12, %s2220_s13  }
 0x21b   :  { %2210 = dma.done.wait [#allocation4], 4992  }
 0x21c   :  { %2211 = vsyncadd [#allocation4], 4294962304 }
 0x21d   :  { %1591 = vsyncpa [#allocation3], 1 }
 0x21e   :  { %1592 = vsyncpa [#allocation6], 1 }
 0x21f   :  { %1593 = vsyncpa [#allocation9], 1 }
 0x220   :  { %1594 = vsyncpa [#allocation4], 1 }

</bundles_post_ra>
